<compile_context>
chip_gen: v6e
topology: v6e:2x2x1
jax: 0.10.0
libtpu: 0.0.40
codegen_flags: <defaults>
</compile_context>

<pallas_src>
import functools

import jax
import jax.numpy as jnp
from jax.experimental import pallas as pl
from jax.experimental.pallas import tpu as pltpu

_NEG = -1e30                      # "minus infinity" for padded CRF tags (finite: no inf*0 NaNs)
_ROW_TILE = 512                   # row (sublane) tile for projection kernels
_HEAD_ROW_TILE = 128              # smaller row tile for the head kernel (f32 epilogue intermediate)
_RESIDENT_VMEM_BUDGET = 40 << 20  # conservative working-set bound (v7x: 64 MiB physical VMEM)


# ----------------------------------------------------------------------------
# Tiling helpers
# ----------------------------------------------------------------------------
def _row_block(m, tile):
    """Row (second-minor) block: multiple of 16 (bf16 packing) dividing m.

    Prefers >= 2 grid steps so the parallel M axis can shard across the two
    TensorCores on v7x; falls back to the full dimension for small/awkward M.
    """
    if m > 16 and m % 16 == 0:
        best = None
        c = (min(tile, m) // 16) * 16
        while c >= 16:
            if m % c == 0:
                if m // c >= 2:
                    return c
                if best is None:
                    best = c
            c -= 16
        if best is not None:
            return best
    # TODO(synk): for large M not a multiple of 16, switch to a pl.cdiv grid with
    #             a masked ragged last tile instead of one full-extent block.
    return m


def _lane_block(dim, tile):
    """Lane / contraction block: multiple of 128 dividing dim (else full dim)."""
    if dim <= tile:
        return dim
    c = (tile // 128) * 128
    while c >= 128:
        if dim % c == 0:
            return c
        c -= 128
    return dim


def _compiler_params(semantics, est_bytes):
    kwargs = dict(dimension_semantics=semantics)
    if est_bytes > (16 << 20):  # above v5e's default scoped-VMEM limit
        kwargs["vmem_limit_bytes"] = int(min(est_bytes * 3 // 2 + (4 << 20), 64 << 20))
    return pltpu.CompilerParams(**kwargs)


# ----------------------------------------------------------------------------
# Pallas kernel 1: linear  y = act(x @ W + b)   (weight-resident main path)
# ----------------------------------------------------------------------------
def _resident_linear_kernel(x_ref, w_ref, b_ref, o_ref, *, activation):
    y = jnp.dot(x_ref[...], w_ref[...], preferred_element_type=jnp.float32) + b_ref[...]
    if activation == "gelu":
        # TODO(synk): HF BERT uses exact erf-gelu; tanh approximation kept (EUP path).
        y = jax.nn.gelu(y)
    o_ref[...] = y.astype(o_ref.dtype)


def _tiled_linear_kernel(x_ref, w_ref, b_ref, o_ref, acc_ref, *, activation):
    @pl.when(pl.program_id(2) == 0)
    def _():
        acc_ref[...] = jnp.zeros_like(acc_ref)

    acc_ref[...] += jnp.dot(x_ref[...], w_ref[...], preferred_element_type=jnp.float32)

    @pl.when(pl.program_id(2) == pl.num_programs(2) - 1)
    def _():
        y = acc_ref[...] + b_ref[...]
        if activation == "gelu":
            y = jax.nn.gelu(y)
        o_ref[...] = y.astype(o_ref.dtype)


def pallas_linear(x, w, b, activation=None):
    """y = act(x @ W + b).  x bf16 [M,K], w bf16 [K,N], b f32 [1,N] -> bf16 [M,N]."""
    m, k = x.shape
    n = w.shape[1]
    tm = _row_block(m, _ROW_TILE)
    # Working set: 2x x/out blocks (double buffer), 2x weight (budgeted), bias, f32 temp.
    est = (2 * tm * k * x.dtype.itemsize + 2 * k * n * w.dtype.itemsize
           + 2 * tm * n * 2 + 2 * n * 4 + tm * n * 4)
    if est <= _RESIDENT_VMEM_BUDGET:
        kernel = functools.partial(_resident_linear_kernel, activation=activation)
        return pl.pallas_call(
            kernel,
            out_shape=jax.ShapeDtypeStruct((m, n), jnp.bfloat16),
            grid_spec=pltpu.PrefetchScalarGridSpec(
                num_scalar_prefetch=0, grid=(m // tm,),
                in_specs=[pl.BlockSpec((tm, k), lambda i: (i, 0)),
                          pl.BlockSpec((k, n), lambda i: (0, 0)),   # weight resident
                          pl.BlockSpec((1, n), lambda i: (0, 0))],
                out_specs=pl.BlockSpec((tm, n), lambda i: (i, 0))),
            compiler_params=_compiler_params(("parallel",), est),
        )(x, w, b)

    # Fallback: weight too large for VMEM -> classic (M, N, K) tiling, big tiles.
    tn, tk = _lane_block(n, 512), _lane_block(k, 512)
    est = 2 * (tm * tk * 2 + tk * tn * 2 + tm * tn * 2 + tn * 4) + tm * tn * 4
    kernel = functools.partial(_tiled_linear_kernel, activation=activation)
    return pl.pallas_call(
        kernel,
        out_shape=jax.ShapeDtypeStruct((m, n), jnp.bfloat16),
        grid_spec=pltpu.PrefetchScalarGridSpec(
            num_scalar_prefetch=0, grid=(m // tm, n // tn, k // tk),
            in_specs=[pl.BlockSpec((tm, tk), lambda i, j, kk: (i, kk)),
                      pl.BlockSpec((tk, tn), lambda i, j, kk: (kk, j)),
                      pl.BlockSpec((1, tn), lambda i, j, kk: (0, j))],
            out_specs=pl.BlockSpec((tm, tn), lambda i, j, kk: (i, j)),
            scratch_shapes=[pltpu.VMEM((tm, tn), jnp.float32)]),
        compiler_params=_compiler_params(("parallel", "parallel", "arbitrary"), est),
    )(x, w, b)


# ----------------------------------------------------------------------------
# Pallas kernel 2: linear fused with residual add + LayerNorm epilogue
#   y = LN(res + x @ W + b) * g + beta        (LN over the full feature dim N)
# ----------------------------------------------------------------------------
def _resident_linear_res_ln_kernel(x_ref, w_ref, b_ref, res_ref, g_ref, beta_ref, o_ref):
    y = (jnp.dot(x_ref[...], w_ref[...], preferred_element_type=jnp.float32)
         + b_ref[...] + res_ref[...].astype(jnp.float32))
    mu = jnp.mean(y, axis=-1, keepdims=True)
    var = jnp.mean(jnp.square(y - mu), axis=-1, keepdims=True)
    o_ref[...] = ((y - mu) * jax.lax.rsqrt(var + 1e-12)
                  * g_ref[...] + beta_ref[...]).astype(o_ref.dtype)


def _tiled_linear_res_ln_kernel(x_ref, w_ref, b_ref, res_ref, g_ref, beta_ref,
                                o_ref, acc_ref):
    @pl.when(pl.program_id(1) == 0)
    def _():
        acc_ref[...] = jnp.zeros_like(acc_ref)

    acc_ref[...] += jnp.dot(x_ref[...], w_ref[...], preferred_element_type=jnp.float32)

    @pl.when(pl.program_id(1) == pl.num_programs(1) - 1)
    def _():
        y = acc_ref[...] + b_ref[...] + res_ref[...].astype(jnp.float32)
        mu = jnp.mean(y, axis=-1, keepdims=True)
        var = jnp.mean(jnp.square(y - mu), axis=-1, keepdims=True)
        o_ref[...] = ((y - mu) * jax.lax.rsqrt(var + 1e-12)
                      * g_ref[...] + beta_ref[...]).astype(o_ref.dtype)


def pallas_linear_res_ln(x, w, b, res, g, beta):
    """x bf16 [M,K], w bf16 [K,N], res bf16 [M,N], b/g/beta f32 [1,N] -> bf16 [M,N]."""
    m, k = x.shape
    n = w.shape[1]
    tm = _row_block(m, _ROW_TILE)
    est = (2 * tm * k * 2 + 2 * k * n * 2 + 2 * tm * n * 2 * 2
           + 6 * n * 4 + tm * n * 4)
    if est <= _RESIDENT_VMEM_BUDGET:
        return pl.pallas_call(
            _resident_linear_res_ln_kernel,
            out_shape=jax.ShapeDtypeStruct((m, n), jnp.bfloat16),
            grid_spec=pltpu.PrefetchScalarGridSpec(
                num_scalar_prefetch=0, grid=(m // tm,),
                in_specs=[pl.BlockSpec((tm, k), lambda i: (i, 0)),
                          pl.BlockSpec((k, n), lambda i: (0, 0)),   # weight resident
                          pl.BlockSpec((1, n), lambda i: (0, 0)),
                          pl.BlockSpec((tm, n), lambda i: (i, 0)),
                          pl.BlockSpec((1, n), lambda i: (0, 0)),
                          pl.BlockSpec((1, n), lambda i: (0, 0))],
                out_specs=pl.BlockSpec((tm, n), lambda i: (i, 0))),
            compiler_params=_compiler_params(("parallel",), est),
        )(x, w, b, res, g, beta)

    tk = _lane_block(k, 512)
    est = 2 * (tm * tk * 2 + tk * n * 2 + 2 * tm * n * 2 + 3 * n * 4) + tm * n * 4
    return pl.pallas_call(
        _tiled_linear_res_ln_kernel,
        out_shape=jax.ShapeDtypeStruct((m, n), jnp.bfloat16),
        grid_spec=pltpu.PrefetchScalarGridSpec(
            num_scalar_prefetch=0, grid=(m // tm, k // tk),
            in_specs=[pl.BlockSpec((tm, tk), lambda i, kk: (i, kk)),
                      pl.BlockSpec((tk, n), lambda i, kk: (kk, 0)),
                      pl.BlockSpec((1, n), lambda i, kk: (0, 0)),
                      pl.BlockSpec((tm, n), lambda i, kk: (i, 0)),
                      pl.BlockSpec((1, n), lambda i, kk: (0, 0)),
                      pl.BlockSpec((1, n), lambda i, kk: (0, 0))],
            out_specs=pl.BlockSpec((tm, n), lambda i, kk: (i, 0)),
            scratch_shapes=[pltpu.VMEM((tm, n), jnp.float32)]),
        compiler_params=_compiler_params(("parallel", "arbitrary"), est),
    )(x, w, b, res, g, beta)


# ----------------------------------------------------------------------------
# Pallas kernel 3: MLM head transform fused with folded entity emission
#   emission = LN(gelu(h @ Wt + bt)) @ (Wdec @ Went) + (bdec @ Went)
# ----------------------------------------------------------------------------
def _head_emission_kernel(h_ref, wt_ref, bt_ref, g_ref, beta_ref, wc_ref, bc_ref, o_ref):
    t = jnp.dot(h_ref[...], wt_ref[...], preferred_element_type=jnp.float32) + bt_ref[...]
    # TODO(synk): HF BERT head uses exact erf-gelu; tanh approximation kept.
    t = jax.nn.gelu(t)
    mu = jnp.mean(t, axis=-1, keepdims=True)
    var = jnp.mean(jnp.square(t - mu), axis=-1, keepdims=True)
    t = (t - mu) * jax.lax.rsqrt(var + 1e-12) * g_ref[...] + beta_ref[...]
    # w_comb kept in f32 (it aggregates the full vocabulary; bf16 would round).
    o_ref[...] = jnp.dot(t, wc_ref[...], preferred_element_type=jnp.float32) + bc_ref[...]


def head_and_emission(hidden2d, head_k):
    """Returns lane-padded emissions [M, TP]; padded tag columns are exactly 0."""
    m, hdim = hidden2d.shape
    tp = head_k["w_comb"].shape[1]
    tm = _row_block(m, _HEAD_ROW_TILE)
    est = (2 * tm * hdim * 2 + 2 * hdim * hdim * 2 + 2 * hdim * tp * 4
           + 2 * tm * tp * 4 + 8 * hdim * 4 + 2 * tp * 4 + 2 * tm * hdim * 4)
    return pl.pallas_call(
        _head_emission_kernel,
        out_shape=jax.ShapeDtypeStruct((m, tp), jnp.float32),
        grid_spec=pltpu.PrefetchScalarGridSpec(
            num_scalar_prefetch=0, grid=(m // tm,),
            in_specs=[pl.BlockSpec((tm, hdim), lambda i: (i, 0)),
                      pl.BlockSpec((hdim, hdim), lambda i: (0, 0)),
                      pl.BlockSpec((1, hdim), lambda i: (0, 0)),
                      pl.BlockSpec((1, hdim), lambda i: (0, 0)),
                      pl.BlockSpec((1, hdim), lambda i: (0, 0)),
                      pl.BlockSpec((hdim, tp), lambda i: (0, 0)),
                      pl.BlockSpec((1, tp), lambda i: (0, 0))],
            out_specs=pl.BlockSpec((tm, tp), lambda i: (i, 0))),
        compiler_params=_compiler_params(("parallel",), est),
    )(hidden2d, head_k["wt"], head_k["bt"], head_k["ln_g"], head_k["ln_b"],
      head_k["w_comb"], head_k["b_comb"])


# ----------------------------------------------------------------------------
# Pallas kernel 4: CRF negative log-likelihood (torchcrf, batch_first, sum)
#   Works on lane-padded (TP) emissions; padded tags carry -1e30 start/end/trans
#   and 0 emissions, so they never contribute to path scores or the partition.
# NOTE: assumes (like torchcrf) that the mask is a contiguous prefix of 1s and
#       mask[:, 0] == 1.
# ----------------------------------------------------------------------------
def _crf_nll_kernel(emis_ref, tags_ref, mask_ref, start_ref, end_ref, trans_ref, loss_ref):
    emis = emis_ref[...]                                   # [B, S, TP] f32
    tags = tags_ref[...]                                   # [B, S]     i32
    mask2 = mask_ref[...][:, :, 0].astype(jnp.float32)     # [B, S]
    start = start_ref[...]                                 # [1, TP]
    end = end_ref[...]                                     # [1, TP]
    trans = trans_ref[...]                                 # [TP, TP]  trans[prev, cur]
    b, s, t = emis.shape

    tag_iota = jax.lax.broadcasted_iota(jnp.int32, (b, s, t), 2)
    onehot = (tags[:, :, None] == tag_iota).astype(jnp.float32)          # [B,S,TP]

    # ---- gold-path score (numerator) ----
    emis_at = jnp.sum(emis * onehot, axis=-1)                            # [B,S]
    # trans[tags[:, :-1], tags[:, 1:]] with only [B, S-1, TP] intermediates:
    #   rows[b,i,c] = trans[tags[b,i], c]   via a batched [S-1,TP] @ [TP,TP] matmul
    trans_b = jnp.broadcast_to(trans[None, :, :], (b, t, t))
    rows = jnp.einsum("bpt,btu->bpu", onehot[:, :-1, :], trans_b,
                      preferred_element_type=jnp.float32)                # [B,S-1,TP]
    trans_at = jnp.sum(rows * onehot[:, 1:, :], axis=-1)                 # [B,S-1]

    num = jnp.sum(start * onehot[:, 0, :], axis=-1, keepdims=True) + emis_at[:, 0:1]
    num = num + jnp.sum(mask2[:, 1:] * (trans_at + emis_at[:, 1:]),
                        axis=-1, keepdims=True)
    end_at = jnp.sum(onehot * end[None, :, :], axis=-1)                  # [B,S]
    seq_len = jnp.sum(mask2, axis=-1, keepdims=True)                     # [B,1]
    pos = jax.lax.broadcasted_iota(jnp.int32, (b, s), 1).astype(jnp.float32)
    last_sel = (pos == (seq_len - 1.0)).astype(jnp.float32)              # [B,S]
    num = num + jnp.sum(end_at * last_sel, axis=-1, keepdims=True)       # [B,1]

    # ---- log-partition (denominator): forward algorithm ----
    alpha0 = start + emis[:, 0, :]                                       # [B,TP]

    def body(i, alpha):
        emis_i = emis_ref[:, pl.ds(i, 1), :].reshape(b, t)               # [B,TP]
        m_i = mask_ref[:, pl.ds(i, 1), :].reshape(b, 1)                  # [B,1]
        scores = alpha[:, :, None] + trans[None, :, :]                   # [B,TP,TP]
        smax = jnp.max(scores, axis=1)                                   # [B,TP(cur)]
        lse = smax + jnp.log(jnp.sum(jnp.exp(scores - smax[:, None, :]), axis=1))
        nxt = lse + emis_i
        return jnp.where(m_i > 0, nxt, alpha)

    alpha = jax.lax.fori_loop(1, s, body, alpha0, unroll=(s <= 32))
    final = alpha + end
    fmax = jnp.max(final, axis=-1, keepdims=True)
    logz = fmax + jnp.log(jnp.sum(jnp.exp(final - fmax), axis=-1, keepdims=True))

    loss_ref[0, 0] = -jnp.sum(num - logz)


def crf_nll(emissions_padded, tags, mask, crf_k):
    out = pl.pallas_call(
        _crf_nll_kernel,
        out_shape=jax.ShapeDtypeStruct((1, 1), jnp.float32),
        out_specs=pl.BlockSpec(memory_space=pltpu.SMEM),
    )(emissions_padded.astype(jnp.float32),
      tags.astype(jnp.int32),
      mask.astype(jnp.int32)[:, :, None],
      crf_k["start"], crf_k["end"], crf_k["trans"])
    return out[0, 0]


# ----------------------------------------------------------------------------
# One-time param preparation (HOISTED out of the forward pass)
# ----------------------------------------------------------------------------
def prepare_kernel_params(params, entity_weight):
    bert = params["bert"]
    layers_k = []
    for L in bert["layers"]:
        layers_k.append(dict(
            wqkv=jnp.concatenate([L["wq"], L["wk"], L["wv"]], axis=1).astype(jnp.bfloat16),
            bqkv=jnp.concatenate([L["bq"], L["bk"], L["bv"]])[None, :].astype(jnp.float32),
            wo=L["wo"].astype(jnp.bfloat16), bo=L["bo"][None, :].astype(jnp.float32),
            ln1_g=L["ln1_g"][None, :].astype(jnp.float32),
            ln1_b=L["ln1_b"][None, :].astype(jnp.float32),
            w_in=L["w_in"].astype(jnp.bfloat16), b_in=L["b_in"][None, :].astype(jnp.float32),
            w_out=L["w_out"].astype(jnp.bfloat16), b_out=L["b_out"][None, :].astype(jnp.float32),
            ln2_g=L["ln2_g"][None, :].astype(jnp.float32),
            ln2_b=L["ln2_b"][None, :].astype(jnp.float32),
        ))
    head = params["head"]
    h = head["head_wt"].shape[0]
    t = entity_weight.shape[1]
    tp = ((t + 127) // 128) * 128
    # Algebraic fold: emission = t @ (Wdec @ Went) + (bdec @ Went); kept in f32.
    w_comb = jnp.dot(head["dec_w"].astype(jnp.float32), entity_weight,
                     preferred_element_type=jnp.float32)                 # [H, T]
    b_comb = jnp.dot(head["dec_b"].astype(jnp.float32)[None, :], entity_weight,
                     preferred_element_type=jnp.float32)                 # [1, T]
    head_k = dict(
        wt=head["head_wt"].astype(jnp.bfloat16),
        bt=head["head_bt"][None, :].astype(jnp.float32),
        ln_g=head["head_ln_g"][None, :].astype(jnp.float32),
        ln_b=head["head_ln_b"][None, :].astype(jnp.float32),
        w_comb=jnp.zeros((h, tp), jnp.float32).at[:, :t].set(w_comb),
        b_comb=jnp.zeros((1, tp), jnp.float32).at[:, :t].set(b_comb),
    )
    crf = params["crf"]
    crf_k = dict(
        start=jnp.full((1, tp), _NEG, jnp.float32).at[0, :t].set(crf["start"].astype(jnp.float32)),
        end=jnp.full((1, tp), _NEG, jnp.float32).at[0, :t].set(crf["end"].astype(jnp.float32)),
        trans=jnp.full((tp, tp), _NEG, jnp.float32).at[:t, :t].set(
            crf["transitions"].astype(jnp.float32)),
    )
    emb_k = dict(
        word_emb=bert["word_emb"].astype(jnp.float32),
        pos_emb=bert["pos_emb"].astype(jnp.float32),
        type_emb=bert["type_emb"].astype(jnp.float32),
        emb_ln_g=bert["emb_ln_g"].astype(jnp.float32),
        emb_ln_b=bert["emb_ln_b"].astype(jnp.float32),
    )
    return emb_k, layers_k, head_k, crf_k


# ----------------------------------------------------------------------------
# BERT backbone (attention glue in XLA, projections in Pallas)
# ----------------------------------------------------------------------------
def layer_norm(x, g, b, eps=1e-12):
    mu = jnp.mean(x, axis=-1, keepdims=True)
    var = jnp.mean(jnp.square(x - mu), axis=-1, keepdims=True)
    return (x - mu) * jax.lax.rsqrt(var + eps) * g + b


def bert_encoder(emb_k, layers_k, num_heads, input_ids, attention_mask):
    bsz, s = input_ids.shape
    h = emb_k["word_emb"].shape[1]
    dh = h // num_heads
    x = (emb_k["word_emb"][input_ids]
         + emb_k["pos_emb"][:s][None, :, :]
         + emb_k["type_emb"][0][None, None, :])
    x = layer_norm(x, emb_k["emb_ln_g"], emb_k["emb_ln_b"])
    x2 = x.reshape(bsz * s, h).astype(jnp.bfloat16)
    bias = (1.0 - attention_mask.astype(jnp.float32))[:, None, None, :] * -1e9
    scale = 1.0 / jnp.sqrt(jnp.float32(dh))
    for lk in layers_k:
        # fused QKV projection (weight-resident streaming pass over activations)
        qkv = pallas_linear(x2, lk["wqkv"], lk["bqkv"])                  # bf16 [M, 3H]
        q = qkv[:, :h].reshape(bsz, s, num_heads, dh).transpose(0, 2, 1, 3)
        k = qkv[:, h:2 * h].reshape(bsz, s, num_heads, dh).transpose(0, 2, 1, 3)
        v = qkv[:, 2 * h:].reshape(bsz, s, num_heads, dh).transpose(0, 2, 1, 3)
        # TODO(synk): replace with a flash-attention Pallas kernel (online softmax
        #             over KV tiles); the S^2 score tensor dominates at long S.
        scores = jnp.einsum("bhqd,bhkd->bhqk", q, k,
                            preferred_element_type=jnp.float32) * scale + bias
        attn = jax.nn.softmax(scores, axis=-1).astype(jnp.bfloat16)
        ctx = jnp.einsum("bhqk,bhkd->bhqd", attn, v,
                         preferred_element_type=jnp.float32)
        ctx = ctx.transpose(0, 2, 1, 3).reshape(bsz * s, h).astype(jnp.bfloat16)
        # attention output projection fused with residual + LayerNorm
        x2 = pallas_linear_res_ln(ctx, lk["wo"], lk["bo"], x2,
                                  lk["ln1_g"], lk["ln1_b"])
        # FFN: bias+gelu fused into the first matmul, residual+LN into the second
        ff = pallas_linear(x2, lk["w_in"], lk["b_in"], activation="gelu")
        x2 = pallas_linear_res_ln(ff, lk["w_out"], lk["b_out"], x2,
                                  lk["ln2_g"], lk["ln2_b"])
    return x2                                                            # bf16 [B*S, H]


# ----------------------------------------------------------------------------
# Vpn forward
# ----------------------------------------------------------------------------
def make_vpn_forward(num_heads):
    def fwd(emb_k, layers_k, head_k, crf_k, input_ids, labels, attention_mask):
        bsz, s = input_ids.shape
        hidden2d = bert_encoder(emb_k, layers_k, num_heads, input_ids, attention_mask)
        emission2d = head_and_emission(hidden2d, head_k)     # [B*S, TP] lane-padded
        emissions = emission2d.reshape(bsz, s, -1)           # stays padded end-to-end
        if labels is None:
            # TODO(synk): CRF Viterbi decode branch (labels=None) not implemented.
            raise NotImplementedError("decode branch not implemented")
        return crf_nll(emissions, labels, attention_mask, crf_k)
    return jax.jit(fwd)


# ----------------------------------------------------------------------------
# Deterministic tiny-config init + entity-weight construction
# ----------------------------------------------------------------------------
def build_entity_weight(entity_id_to_word_id, vocab_size, num_tags, sum_op):
    w = jnp.zeros((vocab_size, num_tags), jnp.float32)
    for e, (ids, freqs) in entity_id_to_word_id.items():
        ids = jnp.asarray(ids, jnp.int32)
        if sum_op == "weighted":
            vals = jnp.asarray(freqs, jnp.float32)
        elif sum_op == "average":
            vals = jnp.ones((len(ids),), jnp.float32)
        else:
            raise ValueError("incorrect sum_op!")
        w = w.at[ids, int(e)].add(vals)
    return w


def init_params(key, vocab, hidden, num_heads, num_layers, ffn, max_pos, num_tags):
    keys = iter(jax.random.split(key, 128))

    def nrm(shape, scale=0.02):
        return scale * jax.random.normal(next(keys), shape, jnp.float32)

    bert = dict(
        word_emb=nrm((vocab, hidden)),
        pos_emb=nrm((max_pos, hidden)),
        type_emb=nrm((2, hidden)),
        emb_ln_g=jnp.ones((hidden,), jnp.float32),
        emb_ln_b=jnp.zeros((hidden,), jnp.float32),
        num_heads=num_heads,
        layers=[],
    )
    for _ in range(num_layers):
        bert["layers"].append(dict(
            wq=nrm((hidden, hidden)), bq=jnp.zeros((hidden,), jnp.float32),
            wk=nrm((hidden, hidden)), bk=jnp.zeros((hidden,), jnp.float32),
            wv=nrm((hidden, hidden)), bv=jnp.zeros((hidden,), jnp.float32),
            wo=nrm((hidden, hidden)), bo=jnp.zeros((hidden,), jnp.float32),
            ln1_g=jnp.ones((hidden,), jnp.float32), ln1_b=jnp.zeros((hidden,), jnp.float32),
            w_in=nrm((hidden, ffn)), b_in=jnp.zeros((ffn,), jnp.float32),
            w_out=nrm((ffn, hidden)), b_out=jnp.zeros((hidden,), jnp.float32),
            ln2_g=jnp.ones((hidden,), jnp.float32), ln2_b=jnp.zeros((hidden,), jnp.float32),
        ))
    head = dict(
        head_wt=nrm((hidden, hidden)), head_bt=jnp.zeros((hidden,), jnp.float32),
        head_ln_g=jnp.ones((hidden,), jnp.float32),
        head_ln_b=jnp.zeros((hidden,), jnp.float32),
        dec_w=bert["word_emb"].T,            # decoder weight tied to word embeddings
        dec_b=jnp.zeros((vocab,), jnp.float32),
    )
    crf = dict(
        start=nrm((num_tags,), 0.1),
        end=nrm((num_tags,), 0.1),
        transitions=nrm((num_tags, num_tags), 0.1),
    )
    return dict(bert=bert, head=head, crf=crf)


if __name__ == "__main__":
    B, S, V, H, NH, L, FFN, MAXP, T = 2, 8, 64, 32, 2, 2, 64, 16, 6

    key = jax.random.PRNGKey(0)
    kp, ki, kl = jax.random.split(key, 3)
    params = init_params(kp, V, H, NH, L, FFN, MAXP, T)

    # entity_ids_to_word_ids: entity -> ([word ids], [word frequencies])
    entity_id_to_word_id = {
        e: ([int((3 * e + 7 * j + 1) % V) for j in range(3)], [0.5, 0.3, 0.2])
        for e in range(T)
    }
    w_ent = build_entity_weight(entity_id_to_word_id, V, T, sum_op="weighted")

    # Hoisted one-time weight prep (fold, casts, padding) -- not re-run per step.
    emb_k, layers_k, head_k, crf_k = prepare_kernel_params(params, w_ent)
    vpn_forward = make_vpn_forward(NH)

    input_ids = jax.random.randint(ki, (B, S), 0, V, dtype=jnp.int32)
    labels = jax.random.randint(kl, (B, S), 0, T, dtype=jnp.int32)
    attention_mask = jnp.array([[1] * S, [1] * (S - 2) + [0] * 2], jnp.int32)

    loss = vpn_forward(emb_k, layers_k, head_k, crf_k, input_ids, labels, attention_mask)
    loss = jax.block_until_ready(loss)
    assert bool(jnp.isfinite(loss))
    print("KERNEL_OK")
</pallas_src>

<mosaic_0001>
module attributes {stable_mosaic.version = 11 : i64} {
  func.func @_resident_linear_kernel(%arg0: i32, %arg1: memref<16x32xbf16, #tpu.memory_space<vmem>>, %arg2: memref<32x96xbf16, #tpu.memory_space<vmem>>, %arg3: memref<1x96xf32, #tpu.memory_space<vmem>>, %arg4: memref<16x96xbf16, #tpu.memory_space<vmem>>) attributes {dimension_semantics = [#tpu.dimension_semantics<parallel>], iteration_bounds = array<i64: 1>, scalar_prefetch = 0 : i64, scratch_operands = 0 : i64, tpu.core_type = #tpu.core_type<tc>, window_params = [{transform_indices = @transform_0, window_bounds = array<i64: 16, 32>}, {pipeline_mode = #tpu.pipeline_mode<synchronous>, transform_indices = @transform_1, window_bounds = array<i64: 32, 96>}, {pipeline_mode = #tpu.pipeline_mode<synchronous>, transform_indices = @transform_2, window_bounds = array<i64: 1, 96>}, {transform_indices = @transform_3, window_bounds = array<i64: 16, 96>}]} {
    %c0 = arith.constant 0 : index
    %c0_0 = arith.constant 0 : index
    %0 = vector.load %arg1[%c0, %c0_0] : memref<16x32xbf16, #tpu.memory_space<vmem>>, vector<16x32xbf16>
    %c0_1 = arith.constant 0 : index
    %c0_2 = arith.constant 0 : index
    %1 = vector.load %arg2[%c0_1, %c0_2] : memref<32x96xbf16, #tpu.memory_space<vmem>>, vector<32x96xbf16>
    %cst = arith.constant dense<0.000000e+00> : vector<16x96xf32>
    %2 = tpu.matmul %0, %1, %cst {dimension_numbers = #tpu.dot_dimension_numbers<[1], [0], [0], [1], [0, 0, 1, 1], [], []>} : vector<16x32xbf16>, vector<32x96xbf16>, vector<16x96xf32> -> vector<16x96xf32>
    %c0_3 = arith.constant 0 : index
    %c0_4 = arith.constant 0 : index
    %3 = vector.load %arg3[%c0_3, %c0_4] : memref<1x96xf32, #tpu.memory_space<vmem>>, vector<1x96xf32>
    %4 = vector.broadcast %3 : vector<1x96xf32> to vector<16x96xf32>
    %5 = arith.addf %2, %4 : vector<16x96xf32>
    %6 = arith.truncf %5 : vector<16x96xf32> to vector<16x96xbf16>
    %c0_5 = arith.constant 0 : index
    %c0_6 = arith.constant 0 : index
    %7 = vector.load %arg4[%c0_5, %c0_6] : memref<16x96xbf16, #tpu.memory_space<vmem>>, vector<16x96xbf16>
    tpu.vector_store %arg4[%c0_5, %c0_6], %6 {strides = array<i32>} : memref<16x96xbf16, #tpu.memory_space<vmem>>, vector<16x96xbf16>,
    return
  }
  func.func @transform_0(%arg0: i32) -> (i32, i32) {
    %c0_i32 = arith.constant 0 : i32
    %c0_i32_0 = arith.constant 0 : i32
    return %arg0, %c0_i32 : i32, i32
  }
  func.func @transform_1(%arg0: i32) -> (i32, i32) {
    %c0_i32 = arith.constant 0 : i32
    %c0_i32_0 = arith.constant 0 : i32
    %c0_i32_1 = arith.constant 0 : i32
    return %c0_i32, %c0_i32_0 : i32, i32
  }
  func.func @transform_2(%arg0: i32) -> (i32, i32) {
    %c0_i32 = arith.constant 0 : i32
    %c0_i32_0 = arith.constant 0 : i32
    %c0_i32_1 = arith.constant 0 : i32
    return %c0_i32, %c0_i32_0 : i32, i32
  }
  func.func @transform_3(%arg0: i32) -> (i32, i32) {
    %c0_i32 = arith.constant 0 : i32
    %c0_i32_0 = arith.constant 0 : i32
    return %arg0, %c0_i32 : i32, i32
  }
}

module attributes {stable_mosaic.version = 11 : i64} {
  func.func @_resident_linear_res_ln_kernel(%arg0: i32, %arg1: memref<16x32xbf16, #tpu.memory_space<vmem>>, %arg2: memref<32x32xbf16, #tpu.memory_space<vmem>>, %arg3: memref<1x32xf32, #tpu.memory_space<vmem>>, %arg4: memref<16x32xbf16, #tpu.memory_space<vmem>>, %arg5: memref<1x32xf32, #tpu.memory_space<vmem>>, %arg6: memref<1x32xf32, #tpu.memory_space<vmem>>, %arg7: memref<16x32xbf16, #tpu.memory_space<vmem>>) attributes {dimension_semantics = [#tpu.dimension_semantics<parallel>], iteration_bounds = array<i64: 1>, scalar_prefetch = 0 : i64, scratch_operands = 0 : i64, tpu.core_type = #tpu.core_type<tc>, window_params = [{transform_indices = @transform_0, window_bounds = array<i64: 16, 32>}, {pipeline_mode = #tpu.pipeline_mode<synchronous>, transform_indices = @transform_1, window_bounds = array<i64: 32, 32>}, {pipeline_mode = #tpu.pipeline_mode<synchronous>, transform_indices = @transform_2, window_bounds = array<i64: 1, 32>}, {transform_indices = @transform_3, window_bounds = array<i64: 16, 32>}, {pipeline_mode = #tpu.pipeline_mode<synchronous>, transform_indices = @transform_4, window_bounds = array<i64: 1, 32>}, {pipeline_mode = #tpu.pipeline_mode<synchronous>, transform_indices = @transform_5, window_bounds = array<i64: 1, 32>}, {transform_indices = @transform_6, window_bounds = array<i64: 16, 32>}]} {
    %c0 = arith.constant 0 : index
    %c0_0 = arith.constant 0 : index
    %0 = vector.load %arg1[%c0, %c0_0] : memref<16x32xbf16, #tpu.memory_space<vmem>>, vector<16x32xbf16>
    %c0_1 = arith.constant 0 : index
    %c0_2 = arith.constant 0 : index
    %1 = vector.load %arg2[%c0_1, %c0_2] : memref<32x32xbf16, #tpu.memory_space<vmem>>, vector<32x32xbf16>
    %cst = arith.constant dense<0.000000e+00> : vector<16x32xf32>
    %2 = tpu.matmul %0, %1, %cst {dimension_numbers = #tpu.dot_dimension_numbers<[1], [0], [0], [1], [0, 0, 1, 1], [], []>} : vector<16x32xbf16>, vector<32x32xbf16>, vector<16x32xf32> -> vector<16x32xf32>
    %c0_3 = arith.constant 0 : index
    %c0_4 = arith.constant 0 : index
    %3 = vector.load %arg3[%c0_3, %c0_4] : memref<1x32xf32, #tpu.memory_space<vmem>>, vector<1x32xf32>
    %4 = vector.broadcast %3 : vector<1x32xf32> to vector<16x32xf32>
    %5 = arith.addf %2, %4 : vector<16x32xf32>
    %c0_5 = arith.constant 0 : index
    %c0_6 = arith.constant 0 : index
    %6 = vector.load %arg4[%c0_5, %c0_6] : memref<16x32xbf16, #tpu.memory_space<vmem>>, vector<16x32xbf16>
    %7 = arith.extf %6 : vector<16x32xbf16> to vector<16x32xf32>
    %8 = arith.addf %5, %7 : vector<16x32xf32>
    %cst_7 = arith.constant dense<0.000000e+00> : vector<16xf32>
    %9 = vector.multi_reduction <add>, %8, %cst_7 [1] : vector<16x32xf32> to vector<16xf32>
    %10 = vector.shape_cast %9 : vector<16xf32> to vector<16x1xf32>
    %cst_8 = arith.constant 3.200000e+01 : f32
    %11 = vector.broadcast %cst_8 : f32 to vector<16x1xf32>
    %12 = arith.divf %10, %11 : vector<16x1xf32>
    %13 = vector.broadcast %12 : vector<16x1xf32> to vector<16x32xf32>
    %14 = arith.subf %8, %13 : vector<16x32xf32>
    %15 = arith.mulf %14, %14 : vector<16x32xf32>
    %cst_9 = arith.constant dense<0.000000e+00> : vector<16xf32>
    %16 = vector.multi_reduction <add>, %15, %cst_9 [1] : vector<16x32xf32> to vector<16xf32>
    %17 = vector.shape_cast %16 : vector<16xf32> to vector<16x1xf32>
    %cst_10 = arith.constant 3.200000e+01 : f32
    %18 = vector.broadcast %cst_10 : f32 to vector<16x1xf32>
    %19 = arith.divf %17, %18 : vector<16x1xf32>
    %20 = vector.broadcast %12 : vector<16x1xf32> to vector<16x32xf32>
    %21 = arith.subf %8, %20 : vector<16x32xf32>
    %cst_11 = arith.constant 9.99999996E-13 : f32
    %22 = vector.broadcast %cst_11 : f32 to vector<16x1xf32>
    %23 = arith.addf %19, %22 : vector<16x1xf32>
    %24 = math.rsqrt %23 : vector<16x1xf32>
    %25 = vector.broadcast %24 : vector<16x1xf32> to vector<16x32xf32>
    %26 = arith.mulf %21, %25 : vector<16x32xf32>
    %c0_12 = arith.constant 0 : index
    %c0_13 = arith.constant 0 : index
    %27 = vector.load %arg5[%c0_12, %c0_13] : memref<1x32xf32, #tpu.memory_space<vmem>>, vector<1x32xf32>
    %28 = vector.broadcast %27 : vector<1x32xf32> to vector<16x32xf32>
    %29 = arith.mulf %26, %28 : vector<16x32xf32>
    %c0_14 = arith.constant 0 : index
    %c0_15 = arith.constant 0 : index
    %30 = vector.load %arg6[%c0_14, %c0_15] : memref<1x32xf32, #tpu.memory_space<vmem>>, vector<1x32xf32>
    %31 = vector.broadcast %30 : vector<1x32xf32> to vector<16x32xf32>
    %32 = arith.addf %29, %31 : vector<16x32xf32>
    %33 = arith.truncf %32 : vector<16x32xf32> to vector<16x32xbf16>
    %c0_16 = arith.constant 0 : index
    %c0_17 = arith.constant 0 : index
    %34 = vector.load %arg7[%c0_16, %c0_17] : memref<16x32xbf16, #tpu.memory_space<vmem>>, vector<16x32xbf16>
    tpu.vector_store %arg7[%c0_16, %c0_17], %33 {strides = array<i32>} : memref<16x32xbf16, #tpu.memory_space<vmem>>, vector<16x32xbf16>,
    return
  }
  func.func @transform_0(%arg0: i32) -> (i32, i32) {
    %c0_i32 = arith.constant 0 : i32
    %c0_i32_0 = arith.constant 0 : i32
    return %arg0, %c0_i32 : i32, i32
  }
  func.func @transform_1(%arg0: i32) -> (i32, i32) {
    %c0_i32 = arith.constant 0 : i32
    %c0_i32_0 = arith.constant 0 : i32
    %c0_i32_1 = arith.constant 0 : i32
    return %c0_i32, %c0_i32_0 : i32, i32
  }
  func.func @transform_2(%arg0: i32) -> (i32, i32) {
    %c0_i32 = arith.constant 0 : i32
    %c0_i32_0 = arith.constant 0 : i32
    %c0_i32_1 = arith.constant 0 : i32
    return %c0_i32, %c0_i32_0 : i32, i32
  }
  func.func @transform_3(%arg0: i32) -> (i32, i32) {
    %c0_i32 = arith.constant 0 : i32
    %c0_i32_0 = arith.constant 0 : i32
    return %arg0, %c0_i32 : i32, i32
  }
  func.func @transform_4(%arg0: i32) -> (i32, i32) {
    %c0_i32 = arith.constant 0 : i32
    %c0_i32_0 = arith.constant 0 : i32
    %c0_i32_1 = arith.constant 0 : i32
    return %c0_i32, %c0_i32_0 : i32, i32
  }
  func.func @transform_5(%arg0: i32) -> (i32, i32) {
    %c0_i32 = arith.constant 0 : i32
    %c0_i32_0 = arith.constant 0 : i32
    %c0_i32_1 = arith.constant 0 : i32
    return %c0_i32, %c0_i32_0 : i32, i32
  }
  func.func @transform_6(%arg0: i32) -> (i32, i32) {
    %c0_i32 = arith.constant 0 : i32
    %c0_i32_0 = arith.constant 0 : i32
    return %arg0, %c0_i32 : i32, i32
  }
}

module attributes {stable_mosaic.version = 11 : i64} {
  func.func @_resident_linear_kernel(%arg0: i32, %arg1: memref<16x32xbf16, #tpu.memory_space<vmem>>, %arg2: memref<32x64xbf16, #tpu.memory_space<vmem>>, %arg3: memref<1x64xf32, #tpu.memory_space<vmem>>, %arg4: memref<16x64xbf16, #tpu.memory_space<vmem>>) attributes {dimension_semantics = [#tpu.dimension_semantics<parallel>], iteration_bounds = array<i64: 1>, scalar_prefetch = 0 : i64, scratch_operands = 0 : i64, tpu.core_type = #tpu.core_type<tc>, window_params = [{transform_indices = @transform_0, window_bounds = array<i64: 16, 32>}, {pipeline_mode = #tpu.pipeline_mode<synchronous>, transform_indices = @transform_1, window_bounds = array<i64: 32, 64>}, {pipeline_mode = #tpu.pipeline_mode<synchronous>, transform_indices = @transform_2, window_bounds = array<i64: 1, 64>}, {transform_indices = @transform_3, window_bounds = array<i64: 16, 64>}]} {
    %c0 = arith.constant 0 : index
    %c0_0 = arith.constant 0 : index
    %0 = vector.load %arg1[%c0, %c0_0] : memref<16x32xbf16, #tpu.memory_space<vmem>>, vector<16x32xbf16>
    %c0_1 = arith.constant 0 : index
    %c0_2 = arith.constant 0 : index
    %1 = vector.load %arg2[%c0_1, %c0_2] : memref<32x64xbf16, #tpu.memory_space<vmem>>, vector<32x64xbf16>
    %cst = arith.constant dense<0.000000e+00> : vector<16x64xf32>
    %2 = tpu.matmul %0, %1, %cst {dimension_numbers = #tpu.dot_dimension_numbers<[1], [0], [0], [1], [0, 0, 1, 1], [], []>} : vector<16x32xbf16>, vector<32x64xbf16>, vector<16x64xf32> -> vector<16x64xf32>
    %c0_3 = arith.constant 0 : index
    %c0_4 = arith.constant 0 : index
    %3 = vector.load %arg3[%c0_3, %c0_4] : memref<1x64xf32, #tpu.memory_space<vmem>>, vector<1x64xf32>
    %4 = vector.broadcast %3 : vector<1x64xf32> to vector<16x64xf32>
    %5 = arith.addf %2, %4 : vector<16x64xf32>
    %6 = arith.mulf %5, %5 : vector<16x64xf32>
    %7 = arith.mulf %5, %6 : vector<16x64xf32>
    %cst_5 = arith.constant 4.471500e-02 : f32
    %8 = vector.broadcast %cst_5 : f32 to vector<16x64xf32>
    %9 = arith.mulf %8, %7 : vector<16x64xf32>
    %10 = arith.addf %5, %9 : vector<16x64xf32>
    %cst_6 = arith.constant 0.797884583 : f32
    %11 = vector.broadcast %cst_6 : f32 to vector<16x64xf32>
    %12 = arith.mulf %11, %10 : vector<16x64xf32>
    %13 = math.tanh %12 : vector<16x64xf32>
    %cst_7 = arith.constant 1.000000e+00 : f32
    %14 = vector.broadcast %cst_7 : f32 to vector<16x64xf32>
    %15 = arith.addf %14, %13 : vector<16x64xf32>
    %cst_8 = arith.constant 5.000000e-01 : f32
    %16 = vector.broadcast %cst_8 : f32 to vector<16x64xf32>
    %17 = arith.mulf %16, %15 : vector<16x64xf32>
    %18 = arith.mulf %5, %17 : vector<16x64xf32>
    %19 = arith.truncf %18 : vector<16x64xf32> to vector<16x64xbf16>
    %c0_9 = arith.constant 0 : index
    %c0_10 = arith.constant 0 : index
    %20 = vector.load %arg4[%c0_9, %c0_10] : memref<16x64xbf16, #tpu.memory_space<vmem>>, vector<16x64xbf16>
    tpu.vector_store %arg4[%c0_9, %c0_10], %19 {strides = array<i32>} : memref<16x64xbf16, #tpu.memory_space<vmem>>, vector<16x64xbf16>,
    return
  }
  func.func @transform_0(%arg0: i32) -> (i32, i32) {
    %c0_i32 = arith.constant 0 : i32
    %c0_i32_0 = arith.constant 0 : i32
    return %arg0, %c0_i32 : i32, i32
  }
  func.func @transform_1(%arg0: i32) -> (i32, i32) {
    %c0_i32 = arith.constant 0 : i32
    %c0_i32_0 = arith.constant 0 : i32
    %c0_i32_1 = arith.constant 0 : i32
    return %c0_i32, %c0_i32_0 : i32, i32
  }
  func.func @transform_2(%arg0: i32) -> (i32, i32) {
    %c0_i32 = arith.constant 0 : i32
    %c0_i32_0 = arith.constant 0 : i32
    %c0_i32_1 = arith.constant 0 : i32
    return %c0_i32, %c0_i32_0 : i32, i32
  }
  func.func @transform_3(%arg0: i32) -> (i32, i32) {
    %c0_i32 = arith.constant 0 : i32
    %c0_i32_0 = arith.constant 0 : i32
    return %arg0, %c0_i32 : i32, i32
  }
}

module attributes {stable_mosaic.version = 11 : i64} {
  func.func @_resident_linear_res_ln_kernel(%arg0: i32, %arg1: memref<16x64xbf16, #tpu.memory_space<vmem>>, %arg2: memref<64x32xbf16, #tpu.memory_space<vmem>>, %arg3: memref<1x32xf32, #tpu.memory_space<vmem>>, %arg4: memref<16x32xbf16, #tpu.memory_space<vmem>>, %arg5: memref<1x32xf32, #tpu.memory_space<vmem>>, %arg6: memref<1x32xf32, #tpu.memory_space<vmem>>, %arg7: memref<16x32xbf16, #tpu.memory_space<vmem>>) attributes {dimension_semantics = [#tpu.dimension_semantics<parallel>], iteration_bounds = array<i64: 1>, scalar_prefetch = 0 : i64, scratch_operands = 0 : i64, tpu.core_type = #tpu.core_type<tc>, window_params = [{transform_indices = @transform_0, window_bounds = array<i64: 16, 64>}, {pipeline_mode = #tpu.pipeline_mode<synchronous>, transform_indices = @transform_1, window_bounds = array<i64: 64, 32>}, {pipeline_mode = #tpu.pipeline_mode<synchronous>, transform_indices = @transform_2, window_bounds = array<i64: 1, 32>}, {transform_indices = @transform_3, window_bounds = array<i64: 16, 32>}, {pipeline_mode = #tpu.pipeline_mode<synchronous>, transform_indices = @transform_4, window_bounds = array<i64: 1, 32>}, {pipeline_mode = #tpu.pipeline_mode<synchronous>, transform_indices = @transform_5, window_bounds = array<i64: 1, 32>}, {transform_indices = @transform_6, window_bounds = array<i64: 16, 32>}]} {
    %c0 = arith.constant 0 : index
    %c0_0 = arith.constant 0 : index
    %0 = vector.load %arg1[%c0, %c0_0] : memref<16x64xbf16, #tpu.memory_space<vmem>>, vector<16x64xbf16>
    %c0_1 = arith.constant 0 : index
    %c0_2 = arith.constant 0 : index
    %1 = vector.load %arg2[%c0_1, %c0_2] : memref<64x32xbf16, #tpu.memory_space<vmem>>, vector<64x32xbf16>
    %cst = arith.constant dense<0.000000e+00> : vector<16x32xf32>
    %2 = tpu.matmul %0, %1, %cst {dimension_numbers = #tpu.dot_dimension_numbers<[1], [0], [0], [1], [0, 0, 1, 1], [], []>} : vector<16x64xbf16>, vector<64x32xbf16>, vector<16x32xf32> -> vector<16x32xf32>
    %c0_3 = arith.constant 0 : index
    %c0_4 = arith.constant 0 : index
    %3 = vector.load %arg3[%c0_3, %c0_4] : memref<1x32xf32, #tpu.memory_space<vmem>>, vector<1x32xf32>
    %4 = vector.broadcast %3 : vector<1x32xf32> to vector<16x32xf32>
    %5 = arith.addf %2, %4 : vector<16x32xf32>
    %c0_5 = arith.constant 0 : index
    %c0_6 = arith.constant 0 : index
    %6 = vector.load %arg4[%c0_5, %c0_6] : memref<16x32xbf16, #tpu.memory_space<vmem>>, vector<16x32xbf16>
    %7 = arith.extf %6 : vector<16x32xbf16> to vector<16x32xf32>
    %8 = arith.addf %5, %7 : vector<16x32xf32>
    %cst_7 = arith.constant dense<0.000000e+00> : vector<16xf32>
    %9 = vector.multi_reduction <add>, %8, %cst_7 [1] : vector<16x32xf32> to vector<16xf32>
    %10 = vector.shape_cast %9 : vector<16xf32> to vector<16x1xf32>
    %cst_8 = arith.constant 3.200000e+01 : f32
    %11 = vector.broadcast %cst_8 : f32 to vector<16x1xf32>
    %12 = arith.divf %10, %11 : vector<16x1xf32>
    %13 = vector.broadcast %12 : vector<16x1xf32> to vector<16x32xf32>
    %14 = arith.subf %8, %13 : vector<16x32xf32>
    %15 = arith.mulf %14, %14 : vector<16x32xf32>
    %cst_9 = arith.constant dense<0.000000e+00> : vector<16xf32>
    %16 = vector.multi_reduction <add>, %15, %cst_9 [1] : vector<16x32xf32> to vector<16xf32>
    %17 = vector.shape_cast %16 : vector<16xf32> to vector<16x1xf32>
    %cst_10 = arith.constant 3.200000e+01 : f32
    %18 = vector.broadcast %cst_10 : f32 to vector<16x1xf32>
    %19 = arith.divf %17, %18 : vector<16x1xf32>
    %20 = vector.broadcast %12 : vector<16x1xf32> to vector<16x32xf32>
    %21 = arith.subf %8, %20 : vector<16x32xf32>
    %cst_11 = arith.constant 9.99999996E-13 : f32
    %22 = vector.broadcast %cst_11 : f32 to vector<16x1xf32>
    %23 = arith.addf %19, %22 : vector<16x1xf32>
    %24 = math.rsqrt %23 : vector<16x1xf32>
    %25 = vector.broadcast %24 : vector<16x1xf32> to vector<16x32xf32>
    %26 = arith.mulf %21, %25 : vector<16x32xf32>
    %c0_12 = arith.constant 0 : index
    %c0_13 = arith.constant 0 : index
    %27 = vector.load %arg5[%c0_12, %c0_13] : memref<1x32xf32, #tpu.memory_space<vmem>>, vector<1x32xf32>
    %28 = vector.broadcast %27 : vector<1x32xf32> to vector<16x32xf32>
    %29 = arith.mulf %26, %28 : vector<16x32xf32>
    %c0_14 = arith.constant 0 : index
    %c0_15 = arith.constant 0 : index
    %30 = vector.load %arg6[%c0_14, %c0_15] : memref<1x32xf32, #tpu.memory_space<vmem>>, vector<1x32xf32>
    %31 = vector.broadcast %30 : vector<1x32xf32> to vector<16x32xf32>
    %32 = arith.addf %29, %31 : vector<16x32xf32>
    %33 = arith.truncf %32 : vector<16x32xf32> to vector<16x32xbf16>
    %c0_16 = arith.constant 0 : index
    %c0_17 = arith.constant 0 : index
    %34 = vector.load %arg7[%c0_16, %c0_17] : memref<16x32xbf16, #tpu.memory_space<vmem>>, vector<16x32xbf16>
    tpu.vector_store %arg7[%c0_16, %c0_17], %33 {strides = array<i32>} : memref<16x32xbf16, #tpu.memory_space<vmem>>, vector<16x32xbf16>,
    return
  }
  func.func @transform_0(%arg0: i32) -> (i32, i32) {
    %c0_i32 = arith.constant 0 : i32
    %c0_i32_0 = arith.constant 0 : i32
    return %arg0, %c0_i32 : i32, i32
  }
  func.func @transform_1(%arg0: i32) -> (i32, i32) {
    %c0_i32 = arith.constant 0 : i32
    %c0_i32_0 = arith.constant 0 : i32
    %c0_i32_1 = arith.constant 0 : i32
    return %c0_i32, %c0_i32_0 : i32, i32
  }
  func.func @transform_2(%arg0: i32) -> (i32, i32) {
    %c0_i32 = arith.constant 0 : i32
    %c0_i32_0 = arith.constant 0 : i32
    %c0_i32_1 = arith.constant 0 : i32
    return %c0_i32, %c0_i32_0 : i32, i32
  }
  func.func @transform_3(%arg0: i32) -> (i32, i32) {
    %c0_i32 = arith.constant 0 : i32
    %c0_i32_0 = arith.constant 0 : i32
    return %arg0, %c0_i32 : i32, i32
  }
  func.func @transform_4(%arg0: i32) -> (i32, i32) {
    %c0_i32 = arith.constant 0 : i32
    %c0_i32_0 = arith.constant 0 : i32
    %c0_i32_1 = arith.constant 0 : i32
    return %c0_i32, %c0_i32_0 : i32, i32
  }
  func.func @transform_5(%arg0: i32) -> (i32, i32) {
    %c0_i32 = arith.constant 0 : i32
    %c0_i32_0 = arith.constant 0 : i32
    %c0_i32_1 = arith.constant 0 : i32
    return %c0_i32, %c0_i32_0 : i32, i32
  }
  func.func @transform_6(%arg0: i32) -> (i32, i32) {
    %c0_i32 = arith.constant 0 : i32
    %c0_i32_0 = arith.constant 0 : i32
    return %arg0, %c0_i32 : i32, i32
  }
}

module attributes {stable_mosaic.version = 11 : i64} {
  func.func @_head_emission_kernel(%arg0: i32, %arg1: memref<16x32xbf16, #tpu.memory_space<vmem>>, %arg2: memref<32x32xbf16, #tpu.memory_space<vmem>>, %arg3: memref<1x32xf32, #tpu.memory_space<vmem>>, %arg4: memref<1x32xf32, #tpu.memory_space<vmem>>, %arg5: memref<1x32xf32, #tpu.memory_space<vmem>>, %arg6: memref<32x128xf32, #tpu.memory_space<vmem>>, %arg7: memref<1x128xf32, #tpu.memory_space<vmem>>, %arg8: memref<16x128xf32, #tpu.memory_space<vmem>>) attributes {dimension_semantics = [#tpu.dimension_semantics<parallel>], iteration_bounds = array<i64: 1>, scalar_prefetch = 0 : i64, scratch_operands = 0 : i64, tpu.core_type = #tpu.core_type<tc>, window_params = [{transform_indices = @transform_0, window_bounds = array<i64: 16, 32>}, {pipeline_mode = #tpu.pipeline_mode<synchronous>, transform_indices = @transform_1, window_bounds = array<i64: 32, 32>}, {pipeline_mode = #tpu.pipeline_mode<synchronous>, transform_indices = @transform_2, window_bounds = array<i64: 1, 32>}, {pipeline_mode = #tpu.pipeline_mode<synchronous>, transform_indices = @transform_3, window_bounds = array<i64: 1, 32>}, {pipeline_mode = #tpu.pipeline_mode<synchronous>, transform_indices = @transform_4, window_bounds = array<i64: 1, 32>}, {pipeline_mode = #tpu.pipeline_mode<synchronous>, transform_indices = @transform_5, window_bounds = array<i64: 32, 128>}, {pipeline_mode = #tpu.pipeline_mode<synchronous>, transform_indices = @transform_6, window_bounds = array<i64: 1, 128>}, {transform_indices = @transform_7, window_bounds = array<i64: 16, 128>}]} {
    %c0 = arith.constant 0 : index
    %c0_0 = arith.constant 0 : index
    %0 = vector.load %arg1[%c0, %c0_0] : memref<16x32xbf16, #tpu.memory_space<vmem>>, vector<16x32xbf16>
    %c0_1 = arith.constant 0 : index
    %c0_2 = arith.constant 0 : index
    %1 = vector.load %arg2[%c0_1, %c0_2] : memref<32x32xbf16, #tpu.memory_space<vmem>>, vector<32x32xbf16>
    %cst = arith.constant dense<0.000000e+00> : vector<16x32xf32>
    %2 = tpu.matmul %0, %1, %cst {dimension_numbers = #tpu.dot_dimension_numbers<[1], [0], [0], [1], [0, 0, 1, 1], [], []>} : vector<16x32xbf16>, vector<32x32xbf16>, vector<16x32xf32> -> vector<16x32xf32>
    %c0_3 = arith.constant 0 : index
    %c0_4 = arith.constant 0 : index
    %3 = vector.load %arg3[%c0_3, %c0_4] : memref<1x32xf32, #tpu.memory_space<vmem>>, vector<1x32xf32>
    %4 = vector.broadcast %3 : vector<1x32xf32> to vector<16x32xf32>
    %5 = arith.addf %2, %4 : vector<16x32xf32>
    %6 = arith.mulf %5, %5 : vector<16x32xf32>
    %7 = arith.mulf %5, %6 : vector<16x32xf32>
    %cst_5 = arith.constant 4.471500e-02 : f32
    %8 = vector.broadcast %cst_5 : f32 to vector<16x32xf32>
    %9 = arith.mulf %8, %7 : vector<16x32xf32>
    %10 = arith.addf %5, %9 : vector<16x32xf32>
    %cst_6 = arith.constant 0.797884583 : f32
    %11 = vector.broadcast %cst_6 : f32 to vector<16x32xf32>
    %12 = arith.mulf %11, %10 : vector<16x32xf32>
    %13 = math.tanh %12 : vector<16x32xf32>
    %cst_7 = arith.constant 1.000000e+00 : f32
    %14 = vector.broadcast %cst_7 : f32 to vector<16x32xf32>
    %15 = arith.addf %14, %13 : vector<16x32xf32>
    %cst_8 = arith.constant 5.000000e-01 : f32
    %16 = vector.broadcast %cst_8 : f32 to vector<16x32xf32>
    %17 = arith.mulf %16, %15 : vector<16x32xf32>
    %18 = arith.mulf %5, %17 : vector<16x32xf32>
    %cst_9 = arith.constant dense<0.000000e+00> : vector<16xf32>
    %19 = vector.multi_reduction <add>, %18, %cst_9 [1] : vector<16x32xf32> to vector<16xf32>
    %20 = vector.shape_cast %19 : vector<16xf32> to vector<16x1xf32>
    %cst_10 = arith.constant 3.200000e+01 : f32
    %21 = vector.broadcast %cst_10 : f32 to vector<16x1xf32>
    %22 = arith.divf %20, %21 : vector<16x1xf32>
    %23 = vector.broadcast %22 : vector<16x1xf32> to vector<16x32xf32>
    %24 = arith.subf %18, %23 : vector<16x32xf32>
    %25 = arith.mulf %24, %24 : vector<16x32xf32>
    %cst_11 = arith.constant dense<0.000000e+00> : vector<16xf32>
    %26 = vector.multi_reduction <add>, %25, %cst_11 [1] : vector<16x32xf32> to vector<16xf32>
    %27 = vector.shape_cast %26 : vector<16xf32> to vector<16x1xf32>
    %cst_12 = arith.constant 3.200000e+01 : f32
    %28 = vector.broadcast %cst_12 : f32 to vector<16x1xf32>
    %29 = arith.divf %27, %28 : vector<16x1xf32>
    %30 = vector.broadcast %22 : vector<16x1xf32> to vector<16x32xf32>
    %31 = arith.subf %18, %30 : vector<16x32xf32>
    %cst_13 = arith.constant 9.99999996E-13 : f32
    %32 = vector.broadcast %cst_13 : f32 to vector<16x1xf32>
    %33 = arith.addf %29, %32 : vector<16x1xf32>
    %34 = math.rsqrt %33 : vector<16x1xf32>
    %35 = vector.broadcast %34 : vector<16x1xf32> to vector<16x32xf32>
    %36 = arith.mulf %31, %35 : vector<16x32xf32>
    %c0_14 = arith.constant 0 : index
    %c0_15 = arith.constant 0 : index
    %37 = vector.load %arg4[%c0_14, %c0_15] : memref<1x32xf32, #tpu.memory_space<vmem>>, vector<1x32xf32>
    %38 = vector.broadcast %37 : vector<1x32xf32> to vector<16x32xf32>
    %39 = arith.mulf %36, %38 : vector<16x32xf32>
    %c0_16 = arith.constant 0 : index
    %c0_17 = arith.constant 0 : index
    %40 = vector.load %arg5[%c0_16, %c0_17] : memref<1x32xf32, #tpu.memory_space<vmem>>, vector<1x32xf32>
    %41 = vector.broadcast %40 : vector<1x32xf32> to vector<16x32xf32>
    %42 = arith.addf %39, %41 : vector<16x32xf32>
    %c0_18 = arith.constant 0 : index
    %c0_19 = arith.constant 0 : index
    %43 = vector.load %arg6[%c0_18, %c0_19] : memref<32x128xf32, #tpu.memory_space<vmem>>, vector<32x128xf32>
    %cst_20 = arith.constant dense<0.000000e+00> : vector<16x128xf32>
    %44 = tpu.matmul %42, %43, %cst_20 {dimension_numbers = #tpu.dot_dimension_numbers<[1], [0], [0], [1], [0, 0, 1, 1], [], []>} : vector<16x32xf32>, vector<32x128xf32>, vector<16x128xf32> -> vector<16x128xf32>
    %c0_21 = arith.constant 0 : index
    %c0_22 = arith.constant 0 : index
    %45 = vector.load %arg7[%c0_21, %c0_22] : memref<1x128xf32, #tpu.memory_space<vmem>>, vector<1x128xf32>
    %46 = vector.broadcast %45 : vector<1x128xf32> to vector<16x128xf32>
    %47 = arith.addf %44, %46 : vector<16x128xf32>
    %c0_23 = arith.constant 0 : index
    %c0_24 = arith.constant 0 : index
    %48 = vector.load %arg8[%c0_23, %c0_24] : memref<16x128xf32, #tpu.memory_space<vmem>>, vector<16x128xf32>
    tpu.vector_store %arg8[%c0_23, %c0_24], %47 {strides = array<i32>} : memref<16x128xf32, #tpu.memory_space<vmem>>, vector<16x128xf32>,
    return
  }
  func.func @transform_0(%arg0: i32) -> (i32, i32) {
    %c0_i32 = arith.constant 0 : i32
    %c0_i32_0 = arith.constant 0 : i32
    return %arg0, %c0_i32 : i32, i32
  }
  func.func @transform_1(%arg0: i32) -> (i32, i32) {
    %c0_i32 = arith.constant 0 : i32
    %c0_i32_0 = arith.constant 0 : i32
    %c0_i32_1 = arith.constant 0 : i32
    return %c0_i32, %c0_i32_0 : i32, i32
  }
  func.func @transform_2(%arg0: i32) -> (i32, i32) {
    %c0_i32 = arith.constant 0 : i32
    %c0_i32_0 = arith.constant 0 : i32
    %c0_i32_1 = arith.constant 0 : i32
    return %c0_i32, %c0_i32_0 : i32, i32
  }
  func.func @transform_3(%arg0: i32) -> (i32, i32) {
    %c0_i32 = arith.constant 0 : i32
    %c0_i32_0 = arith.constant 0 : i32
    %c0_i32_1 = arith.constant 0 : i32
    return %c0_i32, %c0_i32_0 : i32, i32
  }
  func.func @transform_4(%arg0: i32) -> (i32, i32) {
    %c0_i32 = arith.constant 0 : i32
    %c0_i32_0 = arith.constant 0 : i32
    %c0_i32_1 = arith.constant 0 : i32
    return %c0_i32, %c0_i32_0 : i32, i32
  }
  func.func @transform_5(%arg0: i32) -> (i32, i32) {
    %c0_i32 = arith.constant 0 : i32
    %c0_i32_0 = arith.constant 0 : i32
    %c0_i32_1 = arith.constant 0 : i32
    return %c0_i32, %c0_i32_0 : i32, i32
  }
  func.func @transform_6(%arg0: i32) -> (i32, i32) {
    %c0_i32 = arith.constant 0 : i32
    %c0_i32_0 = arith.constant 0 : i32
    %c0_i32_1 = arith.constant 0 : i32
    return %c0_i32, %c0_i32_0 : i32, i32
  }
  func.func @transform_7(%arg0: i32) -> (i32, i32) {
    %c0_i32 = arith.constant 0 : i32
    %c0_i32_0 = arith.constant 0 : i32
    return %arg0, %c0_i32 : i32, i32
  }
}

module attributes {stable_mosaic.version = 11 : i64} {
  func.func @_crf_nll_kernel(%arg0: memref<2x8x128xf32, #tpu.memory_space<vmem>>, %arg1: memref<2x8xi32, #tpu.memory_space<vmem>>, %arg2: memref<2x8x1xi32, #tpu.memory_space<vmem>>, %arg3: memref<1x128xf32, #tpu.memory_space<vmem>>, %arg4: memref<1x128xf32, #tpu.memory_space<vmem>>, %arg5: memref<128x128xf32, #tpu.memory_space<vmem>>, %arg6: memref<1x1xf32, #tpu.memory_space<smem>>) attributes {dimension_semantics = [], scalar_prefetch = 0 : i64, scratch_operands = 0 : i64, tpu.core_type = #tpu.core_type<tc>} {
    %c0 = arith.constant 0 : index
    %c0_0 = arith.constant 0 : index
    %c0_1 = arith.constant 0 : index
    %0 = vector.load %arg0[%c0, %c0_0, %c0_1] : memref<2x8x128xf32, #tpu.memory_space<vmem>>, vector<2x8x128xf32>
    %c0_2 = arith.constant 0 : index
    %c0_3 = arith.constant 0 : index
    %1 = vector.load %arg1[%c0_2, %c0_3] : memref<2x8xi32, #tpu.memory_space<vmem>>, vector<2x8xi32>
    %c0_4 = arith.constant 0 : index
    %c0_5 = arith.constant 0 : index
    %c0_6 = arith.constant 0 : index
    %2 = vector.load %arg2[%c0_4, %c0_5, %c0_6] : memref<2x8x1xi32, #tpu.memory_space<vmem>>, vector<2x8x1xi32>
    %3 = vector.shape_cast %2 : vector<2x8x1xi32> to vector<2x8xi32>
    %4 = arith.sitofp %3 : vector<2x8xi32> to vector<2x8xf32>
    %c0_7 = arith.constant 0 : index
    %c0_8 = arith.constant 0 : index
    %5 = vector.load %arg3[%c0_7, %c0_8] : memref<1x128xf32, #tpu.memory_space<vmem>>, vector<1x128xf32>
    %c0_9 = arith.constant 0 : index
    %c0_10 = arith.constant 0 : index
    %6 = vector.load %arg4[%c0_9, %c0_10] : memref<1x128xf32, #tpu.memory_space<vmem>>, vector<1x128xf32>
    %c0_11 = arith.constant 0 : index
    %c0_12 = arith.constant 0 : index
    %7 = vector.load %arg5[%c0_11, %c0_12] : memref<128x128xf32, #tpu.memory_space<vmem>>, vector<128x128xf32>
    %8 = tpu.iota {dimensions = array<i32: 2>} : vector<2x8x128xi32>
    %9 = vector.shape_cast %1 : vector<2x8xi32> to vector<2x8x1xi32>
    %10 = vector.broadcast %9 : vector<2x8x1xi32> to vector<2x8x128xi32>
    %11 = arith.cmpi eq, %10, %8 : vector<2x8x128xi32>
    %12 = arith.extui %11 : vector<2x8x128xi1> to vector<2x8x128xi32>
    %13 = arith.sitofp %12 : vector<2x8x128xi32> to vector<2x8x128xf32>
    %14 = arith.mulf %0, %13 : vector<2x8x128xf32>
    %cst = arith.constant dense<0.000000e+00> : vector<2x8xf32>
    %15 = vector.multi_reduction <add>, %14, %cst [2] : vector<2x8x128xf32> to vector<2x8xf32>
    %16 = vector.shape_cast %7 : vector<128x128xf32> to vector<1x128x128xf32>
    %17 = vector.shape_cast %16 : vector<1x128x128xf32> to vector<1x128x128xf32>
    %18 = vector.broadcast %17 : vector<1x128x128xf32> to vector<2x128x128xf32>
    %19 = vector.extract_strided_slice %13 {offsets = [0, 0, 0], sizes = [2, 7, 128], strides = [1, 1, 1]} : vector<2x8x128xf32> to vector<2x7x128xf32>
    "tpu.trace_start"() <{level = 10 : i32, message = "bpt,btu->bpu"}> : () -> ()
    %cst_13 = arith.constant dense<0.000000e+00> : vector<2x7x128xf32>
    %20 = tpu.matmul %19, %18, %cst_13 {dimension_numbers = #tpu.dot_dimension_numbers<[2], [1], [1], [2], [0, 0, 0, 1, 1, 2], [0], [0]>} : vector<2x7x128xf32>, vector<2x128x128xf32>, vector<2x7x128xf32> -> vector<2x7x128xf32>
    "tpu.trace_stop"() : () -> ()
    %21 = vector.extract_strided_slice %13 {offsets = [0, 1, 0], sizes = [2, 7, 128], strides = [1, 1, 1]} : vector<2x8x128xf32> to vector<2x7x128xf32>
    %22 = arith.mulf %20, %21 : vector<2x7x128xf32>
    %cst_14 = arith.constant dense<0.000000e+00> : vector<2x7xf32>
    %23 = vector.multi_reduction <add>, %22, %cst_14 [2] : vector<2x7x128xf32> to vector<2x7xf32>
    %24 = vector.extract_strided_slice %13 {offsets = [0, 0, 0], sizes = [2, 1, 128], strides = [1, 1, 1]} : vector<2x8x128xf32> to vector<2x1x128xf32>
    %25 = vector.shape_cast %24 : vector<2x1x128xf32> to vector<2x128xf32>
    %26 = vector.broadcast %5 : vector<1x128xf32> to vector<2x128xf32>
    %27 = arith.mulf %26, %25 : vector<2x128xf32>
    %cst_15 = arith.constant dense<0.000000e+00> : vector<2xf32>
    %28 = vector.multi_reduction <add>, %27, %cst_15 [1] : vector<2x128xf32> to vector<2xf32>
    %29 = vector.shape_cast %28 : vector<2xf32> to vector<2x1xf32>
    %30 = vector.extract_strided_slice %15 {offsets = [0, 0], sizes = [2, 1], strides = [1, 1]} : vector<2x8xf32> to vector<2x1xf32>
    %31 = arith.addf %29, %30 : vector<2x1xf32>
    %32 = vector.extract_strided_slice %4 {offsets = [0, 1], sizes = [2, 7], strides = [1, 1]} : vector<2x8xf32> to vector<2x7xf32>
    %33 = vector.extract_strided_slice %15 {offsets = [0, 1], sizes = [2, 7], strides = [1, 1]} : vector<2x8xf32> to vector<2x7xf32>
    %34 = arith.addf %23, %33 : vector<2x7xf32>
    %35 = arith.mulf %32, %34 : vector<2x7xf32>
    %cst_16 = arith.constant dense<0.000000e+00> : vector<2xf32>
    %36 = vector.multi_reduction <add>, %35, %cst_16 [1] : vector<2x7xf32> to vector<2xf32>
    %37 = vector.shape_cast %36 : vector<2xf32> to vector<2x1xf32>
    %38 = arith.addf %31, %37 : vector<2x1xf32>
    %39 = vector.shape_cast %6 : vector<1x128xf32> to vector<1x1x128xf32>
    %40 = vector.broadcast %39 : vector<1x1x128xf32> to vector<2x8x128xf32>
    %41 = arith.mulf %13, %40 : vector<2x8x128xf32>
    %cst_17 = arith.constant dense<0.000000e+00> : vector<2x8xf32>
    %42 = vector.multi_reduction <add>, %41, %cst_17 [2] : vector<2x8x128xf32> to vector<2x8xf32>
    %cst_18 = arith.constant dense<0.000000e+00> : vector<2xf32>
    %43 = vector.multi_reduction <add>, %4, %cst_18 [1] : vector<2x8xf32> to vector<2xf32>
    %44 = vector.shape_cast %43 : vector<2xf32> to vector<2x1xf32>
    %45 = tpu.iota {dimensions = array<i32: 1>} : vector<2x8xi32>
    %46 = arith.sitofp %45 : vector<2x8xi32> to vector<2x8xf32>
    %cst_19 = arith.constant 1.000000e+00 : f32
    %47 = vector.broadcast %cst_19 : f32 to vector<2x1xf32>
    %48 = arith.subf %44, %47 : vector<2x1xf32>
    %49 = vector.broadcast %48 : vector<2x1xf32> to vector<2x8xf32>
    %50 = arith.cmpf oeq, %46, %49 : vector<2x8xf32>
    %51 = arith.extui %50 : vector<2x8xi1> to vector<2x8xi32>
    %52 = arith.sitofp %51 : vector<2x8xi32> to vector<2x8xf32>
    %53 = arith.mulf %42, %52 : vector<2x8xf32>
    %cst_20 = arith.constant dense<0.000000e+00> : vector<2xf32>
    %54 = vector.multi_reduction <add>, %53, %cst_20 [1] : vector<2x8xf32> to vector<2xf32>
    %55 = vector.shape_cast %54 : vector<2xf32> to vector<2x1xf32>
    %56 = arith.addf %38, %55 : vector<2x1xf32>
    %57 = vector.extract_strided_slice %0 {offsets = [0, 0, 0], sizes = [2, 1, 128], strides = [1, 1, 1]} : vector<2x8x128xf32> to vector<2x1x128xf32>
    %58 = vector.shape_cast %57 : vector<2x1x128xf32> to vector<2x128xf32>
    %59 = vector.broadcast %5 : vector<1x128xf32> to vector<2x128xf32>
    %60 = arith.addf %59, %58 : vector<2x128xf32>
    %c1_i32 = arith.constant 1 : i32
    %c0_21 = arith.constant 0 : index
    %61 = arith.index_cast %c1_i32 : i32 to index
    %c0_22 = arith.constant 0 : index
    %62 = vector.load %arg0[%c0_21, %61, %c0_22] : memref<2x8x128xf32, #tpu.memory_space<vmem>>, vector<2x1x128xf32>
    %63 = vector.shape_cast %62 : vector<2x1x128xf32> to vector<2x128xf32>
    %c0_23 = arith.constant 0 : index
    %64 = arith.index_cast %c1_i32 : i32 to index
    %c0_24 = arith.constant 0 : index
    %65 = vector.load %arg2[%c0_23, %64, %c0_24] : memref<2x8x1xi32, #tpu.memory_space<vmem>>, vector<2x1x1xi32>
    %66 = vector.shape_cast %65 : vector<2x1x1xi32> to vector<2x1xi32>
    %67 = vector.shape_cast %60 : vector<2x128xf32> to vector<2x128x1xf32>
    %68 = vector.shape_cast %7 : vector<128x128xf32> to vector<1x128x128xf32>
    %69 = vector.broadcast %67 : vector<2x128x1xf32> to vector<2x128x128xf32>
    %70 = vector.broadcast %68 : vector<1x128x128xf32> to vector<2x128x128xf32>
    %71 = arith.addf %69, %70 : vector<2x128x128xf32>
    %cst_25 = arith.constant dense<0xFF800000> : vector<2x128xf32>
    %72 = vector.multi_reduction <maximumf>, %71, %cst_25 [1] : vector<2x128x128xf32> to vector<2x128xf32>
    %73 = vector.shape_cast %72 : vector<2x128xf32> to vector<2x1x128xf32>
    %74 = vector.broadcast %73 : vector<2x1x128xf32> to vector<2x128x128xf32>
    %75 = arith.subf %71, %74 : vector<2x128x128xf32>
    %76 = math.exp %75 : vector<2x128x128xf32>
    %cst_26 = arith.constant dense<0.000000e+00> : vector<2x128xf32>
    %77 = vector.multi_reduction <add>, %76, %cst_26 [1] : vector<2x128x128xf32> to vector<2x128xf32>
    %78 = math.log %77 : vector<2x128xf32>
    %79 = arith.addf %72, %78 : vector<2x128xf32>
    %80 = arith.addf %79, %63 : vector<2x128xf32>
    %c0_i32 = arith.constant 0 : i32
    %81 = vector.broadcast %c0_i32 : i32 to vector<2x1xi32>
    %82 = arith.cmpi sgt, %66, %81 : vector<2x1xi32>
    %83 = vector.shape_cast %82 : vector<2x1xi1> to vector<2x1xi1>
    %84 = vector.broadcast %83 : vector<2x1xi1> to vector<2x128xi1>
    %85 = arith.select %84, %80, %60 : vector<2x128xi1>, vector<2x128xf32>
    %c2_i32 = arith.constant 2 : i32
    %c0_27 = arith.constant 0 : index
    %86 = arith.index_cast %c2_i32 : i32 to index
    %c0_28 = arith.constant 0 : index
    %87 = vector.load %arg0[%c0_27, %86, %c0_28] : memref<2x8x128xf32, #tpu.memory_space<vmem>>, vector<2x1x128xf32>
    %88 = vector.shape_cast %87 : vector<2x1x128xf32> to vector<2x128xf32>
    %c0_29 = arith.constant 0 : index
    %89 = arith.index_cast %c2_i32 : i32 to index
    %c0_30 = arith.constant 0 : index
    %90 = vector.load %arg2[%c0_29, %89, %c0_30] : memref<2x8x1xi32, #tpu.memory_space<vmem>>, vector<2x1x1xi32>
    %91 = vector.shape_cast %90 : vector<2x1x1xi32> to vector<2x1xi32>
    %92 = vector.shape_cast %85 : vector<2x128xf32> to vector<2x128x1xf32>
    %93 = vector.shape_cast %7 : vector<128x128xf32> to vector<1x128x128xf32>
    %94 = vector.broadcast %92 : vector<2x128x1xf32> to vector<2x128x128xf32>
    %95 = vector.broadcast %93 : vector<1x128x128xf32> to vector<2x128x128xf32>
    %96 = arith.addf %94, %95 : vector<2x128x128xf32>
    %cst_31 = arith.constant dense<0xFF800000> : vector<2x128xf32>
    %97 = vector.multi_reduction <maximumf>, %96, %cst_31 [1] : vector<2x128x128xf32> to vector<2x128xf32>
    %98 = vector.shape_cast %97 : vector<2x128xf32> to vector<2x1x128xf32>
    %99 = vector.broadcast %98 : vector<2x1x128xf32> to vector<2x128x128xf32>
    %100 = arith.subf %96, %99 : vector<2x128x128xf32>
    %101 = math.exp %100 : vector<2x128x128xf32>
    %cst_32 = arith.constant dense<0.000000e+00> : vector<2x128xf32>
    %102 = vector.multi_reduction <add>, %101, %cst_32 [1] : vector<2x128x128xf32> to vector<2x128xf32>
    %103 = math.log %102 : vector<2x128xf32>
    %104 = arith.addf %97, %103 : vector<2x128xf32>
    %105 = arith.addf %104, %88 : vector<2x128xf32>
    %c0_i32_33 = arith.constant 0 : i32
    %106 = vector.broadcast %c0_i32_33 : i32 to vector<2x1xi32>
    %107 = arith.cmpi sgt, %91, %106 : vector<2x1xi32>
    %108 = vector.shape_cast %107 : vector<2x1xi1> to vector<2x1xi1>
    %109 = vector.broadcast %108 : vector<2x1xi1> to vector<2x128xi1>
    %110 = arith.select %109, %105, %85 : vector<2x128xi1>, vector<2x128xf32>
    %c3_i32 = arith.constant 3 : i32
    %c0_34 = arith.constant 0 : index
    %111 = arith.index_cast %c3_i32 : i32 to index
    %c0_35 = arith.constant 0 : index
    %112 = vector.load %arg0[%c0_34, %111, %c0_35] : memref<2x8x128xf32, #tpu.memory_space<vmem>>, vector<2x1x128xf32>
    %113 = vector.shape_cast %112 : vector<2x1x128xf32> to vector<2x128xf32>
    %c0_36 = arith.constant 0 : index
    %114 = arith.index_cast %c3_i32 : i32 to index
    %c0_37 = arith.constant 0 : index
    %115 = vector.load %arg2[%c0_36, %114, %c0_37] : memref<2x8x1xi32, #tpu.memory_space<vmem>>, vector<2x1x1xi32>
    %116 = vector.shape_cast %115 : vector<2x1x1xi32> to vector<2x1xi32>
    %117 = vector.shape_cast %110 : vector<2x128xf32> to vector<2x128x1xf32>
    %118 = vector.shape_cast %7 : vector<128x128xf32> to vector<1x128x128xf32>
    %119 = vector.broadcast %117 : vector<2x128x1xf32> to vector<2x128x128xf32>
    %120 = vector.broadcast %118 : vector<1x128x128xf32> to vector<2x128x128xf32>
    %121 = arith.addf %119, %120 : vector<2x128x128xf32>
    %cst_38 = arith.constant dense<0xFF800000> : vector<2x128xf32>
    %122 = vector.multi_reduction <maximumf>, %121, %cst_38 [1] : vector<2x128x128xf32> to vector<2x128xf32>
    %123 = vector.shape_cast %122 : vector<2x128xf32> to vector<2x1x128xf32>
    %124 = vector.broadcast %123 : vector<2x1x128xf32> to vector<2x128x128xf32>
    %125 = arith.subf %121, %124 : vector<2x128x128xf32>
    %126 = math.exp %125 : vector<2x128x128xf32>
    %cst_39 = arith.constant dense<0.000000e+00> : vector<2x128xf32>
    %127 = vector.multi_reduction <add>, %126, %cst_39 [1] : vector<2x128x128xf32> to vector<2x128xf32>
    %128 = math.log %127 : vector<2x128xf32>
    %129 = arith.addf %122, %128 : vector<2x128xf32>
    %130 = arith.addf %129, %113 : vector<2x128xf32>
    %c0_i32_40 = arith.constant 0 : i32
    %131 = vector.broadcast %c0_i32_40 : i32 to vector<2x1xi32>
    %132 = arith.cmpi sgt, %116, %131 : vector<2x1xi32>
    %133 = vector.shape_cast %132 : vector<2x1xi1> to vector<2x1xi1>
    %134 = vector.broadcast %133 : vector<2x1xi1> to vector<2x128xi1>
    %135 = arith.select %134, %130, %110 : vector<2x128xi1>, vector<2x128xf32>
    %c4_i32 = arith.constant 4 : i32
    %c0_41 = arith.constant 0 : index
    %136 = arith.index_cast %c4_i32 : i32 to index
    %c0_42 = arith.constant 0 : index
    %137 = vector.load %arg0[%c0_41, %136, %c0_42] : memref<2x8x128xf32, #tpu.memory_space<vmem>>, vector<2x1x128xf32>
    %138 = vector.shape_cast %137 : vector<2x1x128xf32> to vector<2x128xf32>
    %c0_43 = arith.constant 0 : index
    %139 = arith.index_cast %c4_i32 : i32 to index
    %c0_44 = arith.constant 0 : index
    %140 = vector.load %arg2[%c0_43, %139, %c0_44] : memref<2x8x1xi32, #tpu.memory_space<vmem>>, vector<2x1x1xi32>
    %141 = vector.shape_cast %140 : vector<2x1x1xi32> to vector<2x1xi32>
    %142 = vector.shape_cast %135 : vector<2x128xf32> to vector<2x128x1xf32>
    %143 = vector.shape_cast %7 : vector<128x128xf32> to vector<1x128x128xf32>
    %144 = vector.broadcast %142 : vector<2x128x1xf32> to vector<2x128x128xf32>
    %145 = vector.broadcast %143 : vector<1x128x128xf32> to vector<2x128x128xf32>
    %146 = arith.addf %144, %145 : vector<2x128x128xf32>
    %cst_45 = arith.constant dense<0xFF800000> : vector<2x128xf32>
    %147 = vector.multi_reduction <maximumf>, %146, %cst_45 [1] : vector<2x128x128xf32> to vector<2x128xf32>
    %148 = vector.shape_cast %147 : vector<2x128xf32> to vector<2x1x128xf32>
    %149 = vector.broadcast %148 : vector<2x1x128xf32> to vector<2x128x128xf32>
    %150 = arith.subf %146, %149 : vector<2x128x128xf32>
    %151 = math.exp %150 : vector<2x128x128xf32>
    %cst_46 = arith.constant dense<0.000000e+00> : vector<2x128xf32>
    %152 = vector.multi_reduction <add>, %151, %cst_46 [1] : vector<2x128x128xf32> to vector<2x128xf32>
    %153 = math.log %152 : vector<2x128xf32>
    %154 = arith.addf %147, %153 : vector<2x128xf32>
    %155 = arith.addf %154, %138 : vector<2x128xf32>
    %c0_i32_47 = arith.constant 0 : i32
    %156 = vector.broadcast %c0_i32_47 : i32 to vector<2x1xi32>
    %157 = arith.cmpi sgt, %141, %156 : vector<2x1xi32>
    %158 = vector.shape_cast %157 : vector<2x1xi1> to vector<2x1xi1>
    %159 = vector.broadcast %158 : vector<2x1xi1> to vector<2x128xi1>
    %160 = arith.select %159, %155, %135 : vector<2x128xi1>, vector<2x128xf32>
    %c5_i32 = arith.constant 5 : i32
    %c0_48 = arith.constant 0 : index
    %161 = arith.index_cast %c5_i32 : i32 to index
    %c0_49 = arith.constant 0 : index
    %162 = vector.load %arg0[%c0_48, %161, %c0_49] : memref<2x8x128xf32, #tpu.memory_space<vmem>>, vector<2x1x128xf32>
    %163 = vector.shape_cast %162 : vector<2x1x128xf32> to vector<2x128xf32>
    %c0_50 = arith.constant 0 : index
    %164 = arith.index_cast %c5_i32 : i32 to index
    %c0_51 = arith.constant 0 : index
    %165 = vector.load %arg2[%c0_50, %164, %c0_51] : memref<2x8x1xi32, #tpu.memory_space<vmem>>, vector<2x1x1xi32>
    %166 = vector.shape_cast %165 : vector<2x1x1xi32> to vector<2x1xi32>
    %167 = vector.shape_cast %160 : vector<2x128xf32> to vector<2x128x1xf32>
    %168 = vector.shape_cast %7 : vector<128x128xf32> to vector<1x128x128xf32>
    %169 = vector.broadcast %167 : vector<2x128x1xf32> to vector<2x128x128xf32>
    %170 = vector.broadcast %168 : vector<1x128x128xf32> to vector<2x128x128xf32>
    %171 = arith.addf %169, %170 : vector<2x128x128xf32>
    %cst_52 = arith.constant dense<0xFF800000> : vector<2x128xf32>
    %172 = vector.multi_reduction <maximumf>, %171, %cst_52 [1] : vector<2x128x128xf32> to vector<2x128xf32>
    %173 = vector.shape_cast %172 : vector<2x128xf32> to vector<2x1x128xf32>
    %174 = vector.broadcast %173 : vector<2x1x128xf32> to vector<2x128x128xf32>
    %175 = arith.subf %171, %174 : vector<2x128x128xf32>
    %176 = math.exp %175 : vector<2x128x128xf32>
    %cst_53 = arith.constant dense<0.000000e+00> : vector<2x128xf32>
    %177 = vector.multi_reduction <add>, %176, %cst_53 [1] : vector<2x128x128xf32> to vector<2x128xf32>
    %178 = math.log %177 : vector<2x128xf32>
    %179 = arith.addf %172, %178 : vector<2x128xf32>
    %180 = arith.addf %179, %163 : vector<2x128xf32>
    %c0_i32_54 = arith.constant 0 : i32
    %181 = vector.broadcast %c0_i32_54 : i32 to vector<2x1xi32>
    %182 = arith.cmpi sgt, %166, %181 : vector<2x1xi32>
    %183 = vector.shape_cast %182 : vector<2x1xi1> to vector<2x1xi1>
    %184 = vector.broadcast %183 : vector<2x1xi1> to vector<2x128xi1>
    %185 = arith.select %184, %180, %160 : vector<2x128xi1>, vector<2x128xf32>
    %c6_i32 = arith.constant 6 : i32
    %c0_55 = arith.constant 0 : index
    %186 = arith.index_cast %c6_i32 : i32 to index
    %c0_56 = arith.constant 0 : index
    %187 = vector.load %arg0[%c0_55, %186, %c0_56] : memref<2x8x128xf32, #tpu.memory_space<vmem>>, vector<2x1x128xf32>
    %188 = vector.shape_cast %187 : vector<2x1x128xf32> to vector<2x128xf32>
    %c0_57 = arith.constant 0 : index
    %189 = arith.index_cast %c6_i32 : i32 to index
    %c0_58 = arith.constant 0 : index
    %190 = vector.load %arg2[%c0_57, %189, %c0_58] : memref<2x8x1xi32, #tpu.memory_space<vmem>>, vector<2x1x1xi32>
    %191 = vector.shape_cast %190 : vector<2x1x1xi32> to vector<2x1xi32>
    %192 = vector.shape_cast %185 : vector<2x128xf32> to vector<2x128x1xf32>
    %193 = vector.shape_cast %7 : vector<128x128xf32> to vector<1x128x128xf32>
    %194 = vector.broadcast %192 : vector<2x128x1xf32> to vector<2x128x128xf32>
    %195 = vector.broadcast %193 : vector<1x128x128xf32> to vector<2x128x128xf32>
    %196 = arith.addf %194, %195 : vector<2x128x128xf32>
    %cst_59 = arith.constant dense<0xFF800000> : vector<2x128xf32>
    %197 = vector.multi_reduction <maximumf>, %196, %cst_59 [1] : vector<2x128x128xf32> to vector<2x128xf32>
    %198 = vector.shape_cast %197 : vector<2x128xf32> to vector<2x1x128xf32>
    %199 = vector.broadcast %198 : vector<2x1x128xf32> to vector<2x128x128xf32>
    %200 = arith.subf %196, %199 : vector<2x128x128xf32>
    %201 = math.exp %200 : vector<2x128x128xf32>
    %cst_60 = arith.constant dense<0.000000e+00> : vector<2x128xf32>
    %202 = vector.multi_reduction <add>, %201, %cst_60 [1] : vector<2x128x128xf32> to vector<2x128xf32>
    %203 = math.log %202 : vector<2x128xf32>
    %204 = arith.addf %197, %203 : vector<2x128xf32>
    %205 = arith.addf %204, %188 : vector<2x128xf32>
    %c0_i32_61 = arith.constant 0 : i32
    %206 = vector.broadcast %c0_i32_61 : i32 to vector<2x1xi32>
    %207 = arith.cmpi sgt, %191, %206 : vector<2x1xi32>
    %208 = vector.shape_cast %207 : vector<2x1xi1> to vector<2x1xi1>
    %209 = vector.broadcast %208 : vector<2x1xi1> to vector<2x128xi1>
    %210 = arith.select %209, %205, %185 : vector<2x128xi1>, vector<2x128xf32>
    %c7_i32 = arith.constant 7 : i32
    %c0_62 = arith.constant 0 : index
    %211 = arith.index_cast %c7_i32 : i32 to index
    %c0_63 = arith.constant 0 : index
    %212 = vector.load %arg0[%c0_62, %211, %c0_63] : memref<2x8x128xf32, #tpu.memory_space<vmem>>, vector<2x1x128xf32>
    %213 = vector.shape_cast %212 : vector<2x1x128xf32> to vector<2x128xf32>
    %c0_64 = arith.constant 0 : index
    %214 = arith.index_cast %c7_i32 : i32 to index
    %c0_65 = arith.constant 0 : index
    %215 = vector.load %arg2[%c0_64, %214, %c0_65] : memref<2x8x1xi32, #tpu.memory_space<vmem>>, vector<2x1x1xi32>
    %216 = vector.shape_cast %215 : vector<2x1x1xi32> to vector<2x1xi32>
    %217 = vector.shape_cast %210 : vector<2x128xf32> to vector<2x128x1xf32>
    %218 = vector.shape_cast %7 : vector<128x128xf32> to vector<1x128x128xf32>
    %219 = vector.broadcast %217 : vector<2x128x1xf32> to vector<2x128x128xf32>
    %220 = vector.broadcast %218 : vector<1x128x128xf32> to vector<2x128x128xf32>
    %221 = arith.addf %219, %220 : vector<2x128x128xf32>
    %cst_66 = arith.constant dense<0xFF800000> : vector<2x128xf32>
    %222 = vector.multi_reduction <maximumf>, %221, %cst_66 [1] : vector<2x128x128xf32> to vector<2x128xf32>
    %223 = vector.shape_cast %222 : vector<2x128xf32> to vector<2x1x128xf32>
    %224 = vector.broadcast %223 : vector<2x1x128xf32> to vector<2x128x128xf32>
    %225 = arith.subf %221, %224 : vector<2x128x128xf32>
    %226 = math.exp %225 : vector<2x128x128xf32>
    %cst_67 = arith.constant dense<0.000000e+00> : vector<2x128xf32>
    %227 = vector.multi_reduction <add>, %226, %cst_67 [1] : vector<2x128x128xf32> to vector<2x128xf32>
    %228 = math.log %227 : vector<2x128xf32>
    %229 = arith.addf %222, %228 : vector<2x128xf32>
    %230 = arith.addf %229, %213 : vector<2x128xf32>
    %c0_i32_68 = arith.constant 0 : i32
    %231 = vector.broadcast %c0_i32_68 : i32 to vector<2x1xi32>
    %232 = arith.cmpi sgt, %216, %231 : vector<2x1xi32>
    %233 = vector.shape_cast %232 : vector<2x1xi1> to vector<2x1xi1>
    %234 = vector.broadcast %233 : vector<2x1xi1> to vector<2x128xi1>
    %235 = arith.select %234, %230, %210 : vector<2x128xi1>, vector<2x128xf32>
    %c7_i32_69 = arith.constant 7 : i32
    %236 = vector.broadcast %6 : vector<1x128xf32> to vector<2x128xf32>
    %237 = arith.addf %235, %236 : vector<2x128xf32>
    %cst_70 = arith.constant dense<0xFF800000> : vector<2xf32>
    %238 = vector.multi_reduction <maximumf>, %237, %cst_70 [1] : vector<2x128xf32> to vector<2xf32>
    %239 = vector.shape_cast %238 : vector<2xf32> to vector<2x1xf32>
    %240 = vector.broadcast %239 : vector<2x1xf32> to vector<2x128xf32>
    %241 = arith.subf %237, %240 : vector<2x128xf32>
    %242 = math.exp %241 : vector<2x128xf32>
    %cst_71 = arith.constant dense<0.000000e+00> : vector<2xf32>
    %243 = vector.multi_reduction <add>, %242, %cst_71 [1] : vector<2x128xf32> to vector<2xf32>
    %244 = vector.shape_cast %243 : vector<2xf32> to vector<2x1xf32>
    %245 = math.log %244 : vector<2x1xf32>
    %246 = arith.addf %239, %245 : vector<2x1xf32>
    %247 = arith.subf %56, %246 : vector<2x1xf32>
    %248 = vector.shape_cast %247 : vector<2x1xf32> to vector<1x2x1xf32>
    %cst_72 = arith.constant dense<0.000000e+00> : vector<1xf32>
    %249 = vector.multi_reduction <add>, %248, %cst_72 [1, 2] : vector<1x2x1xf32> to vector<1xf32>
    %250 = vector.shape_cast %249 : vector<1xf32> to vector<1x1x1xf32>
    %251 = vector.extract %250[0, 0, 0] : f32 from vector<1x1x1xf32>
    %cst_73 = arith.constant 0.000000e+00 : f32
    %252 = arith.subf %cst_73, %251 : f32
    %c0_74 = arith.constant 0 : index
    %c0_75 = arith.constant 0 : index
    %253 = memref.load %arg6[%c0_74, %c0_75] : memref<1x1xf32, #tpu.memory_space<smem>>
    memref.store %252, %arg6[%c0_74, %c0_75] : memref<1x1xf32, #tpu.memory_space<smem>>
    return
  }
}

</mosaic_0001>

<bundles_post_ra>
// kernel: fwd.10
= control target key start
LH: loop header
LB: loop body
LE: loop exit
PB: predicated region body
PF: predicated region fallthrough
CT: control target
= control target key end

     0   :  { %v130_v0 = vmov 0.0   ;;  %vm131_vm0 = vmmov 0   ;;  %vm45_vm1 = vcmask 261120   ;;  %vm98_vm2 = vcmask 781312   ;;  %s170_s1 = inlined_call_operand.vmem [shape: bf16[32,96], index: 1, kind: input, shape index: {}]   ;;  %s171_s0 = inlined_call_operand.vmem [shape: bf16[16,32], index: 0, kind: input, shape index: {}]   ;;  %s172_s2 = inlined_call_operand.vmem [shape: f32[1,96], index: 2, kind: input, shape index: {}]   ;;  %s173_s3 = inlined_call_operand.vmem [shape: bf16[16,96], index: 3, kind: output, shape index: {}]  }
   0x1   :  { %117 = vmatprep.subr.bf16.mxu0 %v130_v0  ;;  %v127_v1 = vld [vmem:[%s170_s1 + $0x8] sm:$0xff]   ;;  %121 = vmatprep.mubr.msk.bf16.mxu0 %vm131_vm0, %v130_v0  ;;  %v128_v2 = vld [vmem:[%s170_s1] sm:$0xff]  }
   0x2   :  { %118 = vmatpush3.bf16.msra.mxu0 %v127_v1  ;;  %v129_v3 = vld [vmem:[%s171_s0] sm:$0xff]  }
   0x3   :  { %119 = vmatprep.subr.bf16.mxu0 %v130_v0  ;;  %v105_v4 = vld [vmem:[%s172_s2] ss:$0 sm:$0xff] }
   0x6   :  { %120 = vmatpush3.bf16.msra.mxu0 %v128_v2 }
   0x9   :  { %122 = vmatmul.mubr.msk.bf16.vlgmr.msra.gmra.mxu0 %vm45_vm1, %v129_v3 }
  0xc9   :  { %v83_v5 = vpop.f32.mrf.mxu0 }
  0xca   :  { %v84_v6 = vadd.f32 %v105_v4, %v83_v5 }
  0xcb   :  { %v123_v7 = vpop.f32.mrf.mxu0 }
  0xcc   :  { %v112_v8 = vpack.c.bf16 %v84_v6, %v84_v6 }
  0xcd   :  { %v86_v9 = vpop.f32.mrf.mxu0 }
  0xce   :  { %99 = vst.msk [vmem:[%s173_s3] sm:$0xf] %vm98_vm2, %v112_v8  ;;  %v87_v10 = vadd.f32 %v105_v4, %v86_v9 }
  0xcf   :  { %v124_v11 = vpop.f32.mrf.mxu0 }
  0xd0   :  { %v113_v12 = vpack.c.bf16 %v87_v10, %v87_v10 }
  0xd2   :  { %100 = vst.msk [vmem:[%s173_s3 + $0x4] sm:$0xf] %vm98_vm2, %v113_v12 }

// kernel: fwd.12
= control target key start
LH: loop header
LB: loop body
LE: loop exit
PB: predicated region body
PF: predicated region fallthrough
CT: control target
= control target key end

     0   :  { %v152_v0 = vmov 0.0   ;;  %vm153_vm0 = vmmov 0   ;;  %vm45_vm1 = vcmask 261120   ;;  %vm116_vm2 = vcmask 519168   ;;  %s192_s1 = inlined_call_operand.vmem [shape: bf16[32,64], index: 1, kind: input, shape index: {}]   ;;  %s193_s0 = inlined_call_operand.vmem [shape: bf16[16,32], index: 0, kind: input, shape index: {}]   ;;  %s194_s2 = inlined_call_operand.vmem [shape: f32[1,64], index: 2, kind: input, shape index: {}]   ;;  %s195_s3 = inlined_call_operand.vmem [shape: bf16[16,64], index: 3, kind: output, shape index: {}]  }
   0x1   :  { %135 = vmatprep.subr.bf16.mxu0 %v152_v0  ;;  %v145_v1 = vld [vmem:[%s192_s1 + $0x8] sm:$0xff]   ;;  %139 = vmatprep.mubr.msk.bf16.mxu0 %vm153_vm0, %v152_v0  ;;  %v146_v2 = vld [vmem:[%s192_s1] sm:$0xff]  }
   0x2   :  { %136 = vmatpush3.bf16.msra.mxu0 %v145_v1  ;;  %v147_v3 = vld [vmem:[%s193_s0] sm:$0xff]  }
   0x3   :  { %137 = vmatprep.subr.bf16.mxu0 %v152_v0  ;;  %v123_v4 = vld [vmem:[%s194_s2] ss:$0 sm:$0xff] }
   0x6   :  { %138 = vmatpush3.bf16.msra.mxu0 %v146_v2 }
   0x9   :  { %140 = vmatmul.mubr.msk.bf16.vlgmr.msra.gmra.mxu0 %vm45_vm1, %v147_v3 }
  0xc9   :  { %v83_v5 = vpop.f32.mrf.mxu0 }
  0xca   :  { %v84_v6 = vadd.f32 %v123_v4, %v83_v5 }
  0xcb   :  { %v141_v7 = vpop.f32.mrf.mxu0 }
  0xcc   :  { %v90_v8 = vmul.f32 %v84_v6, %v84_v6 }
  0xcd   :  { %v86_v9 = vpop.f32.mrf.mxu0 }
  0xce   :  { %v92_v10 = vmul.f32 %v90_v8, %v84_v6  ;;  %v87_v11 = vadd.f32 %v123_v4, %v86_v9 }
  0xcf   :  { %v142_v12 = vpop.f32.mrf.mxu0 }
  0xd0   :  { %v94_v13 = vmul.f32 0.044715, %v92_v10  ;;  %v91_v14 = vmul.f32 %v87_v11, %v87_v11 }
  0xd2   :  { %v96_v15 = vadd.f32 %v94_v13, %v84_v6  ;;  %v93_v16 = vmul.f32 %v91_v14, %v87_v11 }
  0xd4   :  { %v98_v17 = vmul.f32 0.7978846, %v96_v15  ;;  %v95_v18 = vmul.f32 0.044715, %v93_v16 }
  0xd6   :  { %148 = vtanh.f32 %v98_v17  ;;  %v97_v19 = vadd.f32 %v95_v18, %v87_v11 }
  0xd8   :  { %v99_v20 = vmul.f32 0.7978846, %v97_v19 }
  0xda   :  { %150 = vtanh.f32 %v99_v20 }
  0xe3   :  { %v149_v21 = vpop.eup %148 }
  0xe4   :  { %v102_v22 = vadd.f32 1.0, %v149_v21 }
  0xe6   :  { %v104_v23 = vmul.f32 0.5, %v102_v22 }
  0xe7   :  { %v151_v24 = vpop.eup %150 }
  0xe8   :  { %v106_v25 = vmul.f32 %v104_v23, %v84_v6  ;;  %v103_v26 = vadd.f32 1.0, %v151_v24 }
  0xea   :  { %v130_v27 = vpack.c.bf16 %v106_v25, %v106_v25  ;;  %v105_v28 = vmul.f32 0.5, %v103_v26 }
  0xec   :  { %117 = vst.msk [vmem:[%s195_s3] sm:$0xf] %vm116_vm2, %v130_v27  ;;  %v107_v29 = vmul.f32 %v105_v28, %v87_v11 }
  0xee   :  { %v131_v30 = vpack.c.bf16 %v107_v29, %v107_v29 }
  0xf0   :  { %118 = vst.msk [vmem:[%s195_s3 + $0x4] sm:$0xf] %vm116_vm2, %v131_v30 }

// kernel: fwd.13
= control target key start
LH: loop header
LB: loop body
LE: loop exit
PB: predicated region body
PF: predicated region fallthrough
CT: control target
= control target key end

     0   :  { %v227_v0 = vmov 0.0   ;;  %vm228_vm0 = vmmov 0   ;;  %vm70_vm1 = vcmask 523264   ;;  %vm121_vm2 = vcmask 261120   ;;  %s301_s1 = inlined_call_operand.vmem [shape: bf16[64,32], index: 1, kind: input, shape index: {}]   ;;  %s302_s0 = inlined_call_operand.vmem [shape: bf16[16,64], index: 0, kind: input, shape index: {}]   ;;  %s303_s3 = inlined_call_operand.vmem [shape: bf16[16,32], index: 3, kind: input, shape index: {}]   ;;  %s304_s2 = inlined_call_operand.vmem [shape: f32[1,32], index: 2, kind: input, shape index: {}]   ;;  %s305_s4 = inlined_call_operand.vmem [shape: f32[1,32], index: 4, kind: input, shape index: {}]   ;;  %s306_s5 = inlined_call_operand.vmem [shape: f32[1,32], index: 5, kind: input, shape index: {}]   ;;  %s307_s6 = inlined_call_operand.vmem [shape: bf16[16,32], index: 6, kind: output, shape index: {}]  }
   0x1   :  { %204 = vmatprep.subr.bf16.mxu0 %v227_v0  ;;  %v218_v1 = vld [vmem:[%s301_s1 + $0x18] sm:$0xff]   ;;  %212 = vmatprep.mubr.msk.bf16.mxu0 %vm228_vm0, %v227_v0  ;;  %v219_v2 = vld [vmem:[%s301_s1 + $0x10] sm:$0xff]   ;;  %v220_v3 = vld [vmem:[%s301_s1 + $0x8] sm:$0xff]   ;;  %vm175_vm3 = vcmask 257024  }
   0x2   :  { %205 = vmatpush3.bf16.msra.mxu0 %v218_v1  ;;  %v221_v4 = vld [vmem:[%s301_s1] sm:$0xff]  }
   0x3   :  { %206 = vmatprep.subr.bf16.mxu0 %v227_v0  ;;  %v222_v5 = vld [vmem:[%s302_s0] sm:$0xff]  }
   0x4   :  { %v196_v6 = vld [vmem:[%s303_s3] sm:$0xff]  }
   0x5   :  { %v182_v7 = vld [vmem:[%s304_s2] ss:$0 sm:$0xff]  ;;  %v197_v8 = vunpack.c.l.bf16 %v196_v6  ;;  %v198_v13 = vunpack.c.h.bf16 %v196_v6 }
   0x6   :  { %207 = vmatpush3.bf16.msra.mxu0 %v219_v2  ;;  %v189_v37 = vld [vmem:[%s305_s4] ss:$0 sm:$0xff] }
   0x7   :  { %208 = vmatprep.subr.bf16.mxu0 %v227_v0  ;;  %v190_v39 = vld [vmem:[%s306_s5] ss:$0 sm:$0xff] }
   0xa   :  { %209 = vmatpush3.bf16.msra.mxu0 %v220_v3 }
   0xb   :  { %210 = vmatprep.subr.bf16.mxu0 %v227_v0 }
   0xe   :  { %211 = vmatpush3.bf16.msra.mxu0 %v221_v4 }
  0x11   :  { %213 = vmatmul.mubr.msk.bf16.vlgmr.msra.gmra.mxu0 %vm70_vm1, %v222_v5 }
  0xd1   :  { %v108_v9 = vpop.f32.mrf.mxu0 }
  0xd2   :  { %v109_v10 = vadd.f32 %v182_v7, %v108_v9 }
  0xd3   :  { %v214_v11 = vpop.f32.mrf.mxu0 }
  0xd4   :  { %v119_v12 = vadd.f32 %v197_v8, %v109_v10 }
  0xd5   :  { %v111_v14 = vpop.f32.mrf.mxu0 }
  0xd6   :  { %v112_v15 = vadd.f32 %v182_v7, %v111_v14  ;;  %v122_v16 = vsel %vm121_vm2, %v119_v12, 0.0 }
  0xd7   :  { %123 = vadd.xlane.f32.xlu0 %v122_v16  ;;  %v215_v17 = vpop.f32.mrf.mxu0 }
  0xd8   :  { %v120_v18 = vadd.f32 %v198_v13, %v112_v15 }
  0xda   :  { %v125_v19 = vsel %vm121_vm2, %v120_v18, 0.0 }
  0xdb   :  { %126 = vadd.xlane.f32.xlu0 %v125_v19 }
 0x160   :  { %v124_v20 = vpop.xlane.xlu0 %123 }
 0x161   :  { %v129_v21 = vmul.f32 0.03125, %v124_v20 }
 0x163   :  { %v131_v22 = vsub.f32 %v119_v12, %v129_v21 }
 0x164   :  { %v127_v23 = vpop.xlane.xlu0 %126 }
 0x165   :  { %v130_v24 = vmul.f32 0.03125, %v127_v23  ;;  %v133_v25 = vmul.f32 %v131_v22, %v131_v22 }
 0x167   :  { %v132_v26 = vsub.f32 %v120_v18, %v130_v24  ;;  %v135_v27 = vsel %vm121_vm2, %v133_v25, 0.0 }
 0x168   :  { %136 = vadd.xlane.f32.xlu1 %v135_v27 }
 0x169   :  { %v134_v28 = vmul.f32 %v132_v26, %v132_v26 }
 0x16b   :  { %v138_v29 = vsel %vm121_vm2, %v134_v28, 0.0 }
 0x16c   :  { %139 = vadd.xlane.f32.xlu1 %v138_v29 }
 0x1f1   :  { %v137_v30 = vpop.xlane.xlu1 %136 }
 0x1f2   :  { %v141_v31 = vmul.f32 0.03125, %v137_v30 }
 0x1f4   :  { %v143_v32 = vadd.f32 1e-12, %v141_v31 }
 0x1f5   :  { %v140_v33 = vpop.xlane.xlu1 %139 }
 0x1f6   :  { %223 = vrsqrt.f32 %v143_v32  ;;  %v142_v34 = vmul.f32 0.03125, %v140_v33 }
 0x1f8   :  { %v144_v35 = vadd.f32 1e-12, %v142_v34 }
 0x1fa   :  { %225 = vrsqrt.f32 %v144_v35 }
 0x203   :  { %v224_v36 = vpop.eup %223 }
 0x204   :  { %v147_v38 = vmul.f32 %v224_v36, %v131_v22 }
 0x206   :  { %v156_v40 = vmul.f32 %v189_v37, %v147_v38 }
 0x207   :  { %v226_v41 = vpop.eup %225 }
 0x208   :  { %v165_v42 = vadd.f32 %v190_v39, %v156_v40  ;;  %v148_v43 = vmul.f32 %v226_v41, %v132_v26 }
 0x20a   :  { %v193_v44 = vpack.c.bf16 %v165_v42, %v165_v42  ;;  %v157_v45 = vmul.f32 %v189_v37, %v148_v43 }
 0x20c   :  { %176 = vst.msk [vmem:[%s307_s6] sm:$0xf] %vm175_vm3, %v193_v44  ;;  %v166_v46 = vadd.f32 %v190_v39, %v157_v45 }
 0x20e   :  { %v194_v47 = vpack.c.bf16 %v166_v46, %v166_v46 }
 0x210   :  { %177 = vst.msk [vmem:[%s307_s6 + $0x4] sm:$0xf] %vm175_vm3, %v194_v47 }

// kernel: fwd.11
= control target key start
LH: loop header
LB: loop body
LE: loop exit
PB: predicated region body
PF: predicated region fallthrough
CT: control target
= control target key end

     0   :  { %v200_v0 = vmov 0.0   ;;  %vm201_vm0 = vmmov 0   ;;  %vm54_vm1 = vcmask 261120   ;;  %vm158_vm2 = vcmask 257024   ;;  %s269_s1 = inlined_call_operand.vmem [shape: bf16[32,32], index: 1, kind: input, shape index: {}]   ;;  %s270_s0 = inlined_call_operand.vmem [shape: bf16[16,32], index: 0, kind: input, shape index: {}]   ;;  %s271_s3 = inlined_call_operand.vmem [shape: bf16[16,32], index: 3, kind: input, shape index: {}]   ;;  %s272_s2 = inlined_call_operand.vmem [shape: f32[1,32], index: 2, kind: input, shape index: {}]   ;;  %s273_s4 = inlined_call_operand.vmem [shape: f32[1,32], index: 4, kind: input, shape index: {}]   ;;  %s274_s5 = inlined_call_operand.vmem [shape: f32[1,32], index: 5, kind: input, shape index: {}]   ;;  %s275_s6 = inlined_call_operand.vmem [shape: bf16[16,32], index: 6, kind: output, shape index: {}]  }
   0x1   :  { %183 = vmatprep.subr.bf16.mxu0 %v200_v0  ;;  %v193_v1 = vld [vmem:[%s269_s1 + $0x8] sm:$0xff]   ;;  %187 = vmatprep.mubr.msk.bf16.mxu0 %vm201_vm0, %v200_v0  ;;  %v194_v2 = vld [vmem:[%s269_s1] sm:$0xff]  }
   0x2   :  { %184 = vmatpush3.bf16.msra.mxu0 %v193_v1  ;;  %v195_v3 = vld [vmem:[%s270_s0] sm:$0xff]  }
   0x3   :  { %185 = vmatprep.subr.bf16.mxu0 %v200_v0  ;;  %v177_v4 = vld [vmem:[%s271_s3] sm:$0xff]  }
   0x4   :  { %v165_v5 = vld [vmem:[%s272_s2] ss:$0 sm:$0xff]  ;;  %v178_v6 = vunpack.c.l.bf16 %v177_v4  ;;  %v179_v11 = vunpack.c.h.bf16 %v177_v4 }
   0x5   :  { %v170_v35 = vld [vmem:[%s273_s4] ss:$0 sm:$0xff] }
   0x6   :  { %186 = vmatpush3.bf16.msra.mxu0 %v194_v2  ;;  %v171_v37 = vld [vmem:[%s274_s5] ss:$0 sm:$0xff] }
   0x9   :  { %188 = vmatmul.mubr.msk.bf16.vlgmr.msra.gmra.mxu0 %vm54_vm1, %v195_v3 }
  0xc9   :  { %v92_v7 = vpop.f32.mrf.mxu0 }
  0xca   :  { %v93_v8 = vadd.f32 %v165_v5, %v92_v7 }
  0xcb   :  { %v189_v9 = vpop.f32.mrf.mxu0 }
  0xcc   :  { %v103_v10 = vadd.f32 %v178_v6, %v93_v8 }
  0xcd   :  { %v95_v12 = vpop.f32.mrf.mxu0 }
  0xce   :  { %v96_v13 = vadd.f32 %v165_v5, %v95_v12  ;;  %v105_v14 = vsel %vm54_vm1, %v103_v10, 0.0 }
  0xcf   :  { %106 = vadd.xlane.f32.xlu0 %v105_v14  ;;  %v190_v15 = vpop.f32.mrf.mxu0 }
  0xd0   :  { %v104_v16 = vadd.f32 %v179_v11, %v96_v13 }
  0xd2   :  { %v108_v17 = vsel %vm54_vm1, %v104_v16, 0.0 }
  0xd3   :  { %109 = vadd.xlane.f32.xlu0 %v108_v17 }
 0x158   :  { %v107_v18 = vpop.xlane.xlu0 %106 }
 0x159   :  { %v112_v19 = vmul.f32 0.03125, %v107_v18 }
 0x15b   :  { %v114_v20 = vsub.f32 %v103_v10, %v112_v19 }
 0x15c   :  { %v110_v21 = vpop.xlane.xlu0 %109 }
 0x15d   :  { %v113_v22 = vmul.f32 0.03125, %v110_v21  ;;  %v116_v23 = vmul.f32 %v114_v20, %v114_v20 }
 0x15f   :  { %v115_v24 = vsub.f32 %v104_v16, %v113_v22  ;;  %v118_v25 = vsel %vm54_vm1, %v116_v23, 0.0 }
 0x160   :  { %119 = vadd.xlane.f32.xlu1 %v118_v25 }
 0x161   :  { %v117_v26 = vmul.f32 %v115_v24, %v115_v24 }
 0x163   :  { %v121_v27 = vsel %vm54_vm1, %v117_v26, 0.0 }
 0x164   :  { %122 = vadd.xlane.f32.xlu1 %v121_v27 }
 0x1e9   :  { %v120_v28 = vpop.xlane.xlu1 %119 }
 0x1ea   :  { %v124_v29 = vmul.f32 0.03125, %v120_v28 }
 0x1ec   :  { %v126_v30 = vadd.f32 1e-12, %v124_v29 }
 0x1ed   :  { %v123_v31 = vpop.xlane.xlu1 %122 }
 0x1ee   :  { %196 = vrsqrt.f32 %v126_v30  ;;  %v125_v32 = vmul.f32 0.03125, %v123_v31 }
 0x1f0   :  { %v127_v33 = vadd.f32 1e-12, %v125_v32 }
 0x1f2   :  { %198 = vrsqrt.f32 %v127_v33 }
 0x1fb   :  { %v197_v34 = vpop.eup %196 }
 0x1fc   :  { %v130_v36 = vmul.f32 %v197_v34, %v114_v20 }
 0x1fe   :  { %v139_v38 = vmul.f32 %v170_v35, %v130_v36 }
 0x1ff   :  { %v199_v39 = vpop.eup %198 }
 0x200   :  { %v148_v40 = vadd.f32 %v171_v37, %v139_v38  ;;  %v131_v41 = vmul.f32 %v199_v39, %v115_v24 }
 0x202   :  { %v174_v42 = vpack.c.bf16 %v148_v40, %v148_v40  ;;  %v140_v43 = vmul.f32 %v170_v35, %v131_v41 }
 0x204   :  { %159 = vst.msk [vmem:[%s275_s6] sm:$0xf] %vm158_vm2, %v174_v42  ;;  %v149_v44 = vadd.f32 %v171_v37, %v140_v43 }
 0x206   :  { %v175_v45 = vpack.c.bf16 %v149_v44, %v149_v44 }
 0x208   :  { %160 = vst.msk [vmem:[%s275_s6 + $0x4] sm:$0xf] %vm158_vm2, %v175_v45 }

// kernel: fwd.18
= control target key start
LH: loop header
LB: loop body
LE: loop exit
PB: predicated region body
PF: predicated region fallthrough
CT: control target
= control target key end

     0   :  { %v314_v0 = vmov 0.0   ;;  %vm315_vm0 = vmmov 0   ;;  %vm57_vm1 = vcmask 261120   ;;  %s402_s1 = inlined_call_operand.vmem [shape: bf16[32,32], index: 1, kind: input, shape index: {}]   ;;  %s403_s0 = inlined_call_operand.vmem [shape: bf16[16,32], index: 0, kind: input, shape index: {}]   ;;  %s404_s2 = inlined_call_operand.vmem [shape: f32[1,32], index: 2, kind: input, shape index: {}]   ;;  %s405_s5 = inlined_call_operand.vmem [shape: f32[32,128], index: 5, kind: input, shape index: {}]   ;;  %s406_s3 = inlined_call_operand.vmem [shape: f32[1,32], index: 3, kind: input, shape index: {}]   ;;  %s407_s4 = inlined_call_operand.vmem [shape: f32[1,32], index: 4, kind: input, shape index: {}]   ;;  %s408_s6 = inlined_call_operand.vmem [shape: f32[1,128], index: 6, kind: input, shape index: {}]   ;;  %s409_s7 = inlined_call_operand.vmem [shape: f32[16,128], index: 7, kind: output, shape index: {}]  }
   0x1   :  { %282 = vmatprep.subr.bf16.mxu0 %v314_v0  ;;  %v303_v1 = vld [vmem:[%s402_s1 + $0x8] sm:$0xff]   ;;  %286 = vmatprep.mubr.msk.bf16.mxu0 %vm315_vm0, %v314_v0  ;;  %v304_v2 = vld [vmem:[%s402_s1] sm:$0xff]   ;;  %v168_v41 = vld [vmem:[%s405_s5 + $0x18] sm:$0xff] }
   0x2   :  { %283 = vmatpush3.bf16.msra.mxu0 %v303_v1  ;;  %v305_v3 = vld [vmem:[%s403_s0] sm:$0xff]   ;;  %v167_v42 = vld [vmem:[%s405_s5 + $0x10] sm:$0xff]  ;;  %290 = vmatprep.subr.mxu1 %v168_v41  ;;  %v166_v43 = vld [vmem:[%s405_s5 + $0x8] sm:$0xff] }
   0x3   :  { %284 = vmatprep.subr.bf16.mxu0 %v314_v0  ;;  %v263_v4 = vld [vmem:[%s404_s2] ss:$0 sm:$0xff]  ;;  %291 = vmatpush3.msra.mxu1 %v168_v41 }
   0x4   :  { %292 = vmatprep.subr.mxu1 %v167_v42  ;;  %v165_v44 = vld [vmem:[%s405_s5] sm:$0xff] }
   0x5   :  { %293 = vmatpush3.msra.mxu1 %v167_v42  ;;  %v268_v52 = vld [vmem:[%s406_s3] ss:$0 sm:$0xff] }
   0x6   :  { %285 = vmatpush3.bf16.msra.mxu0 %v304_v2  ;;  %294 = vmatprep.subr.mxu1 %v166_v43  ;;  %v269_v54 = vld [vmem:[%s407_s4] ss:$0 sm:$0xff] }
   0x7   :  { %295 = vmatpush3.msra.mxu1 %v166_v43  ;;  %v270_v61 = vld [vmem:[%s408_s6] ss:$0 sm:$0xff] }
   0x8   :  { %296 = vmatprep.subr.mxu1 %v165_v44 }
   0x9   :  { %287 = vmatmul.mubr.msk.bf16.vlgmr.msra.gmra.mxu0 %vm57_vm1, %v305_v3  ;;  %297 = vmatpush3.msra.mxu1 %v165_v44 }
  0xc9   :  { %v95_v5 = vpop.f32.mrf.mxu0 }
  0xca   :  { %v96_v6 = vadd.f32 %v263_v4, %v95_v5 }
  0xcb   :  { %v288_v7 = vpop.f32.mrf.mxu0 }
  0xcc   :  { %v102_v8 = vmul.f32 %v96_v6, %v96_v6 }
  0xcd   :  { %v98_v9 = vpop.f32.mrf.mxu0 }
  0xce   :  { %v104_v10 = vmul.f32 %v102_v8, %v96_v6  ;;  %v99_v11 = vadd.f32 %v263_v4, %v98_v9 }
  0xcf   :  { %v289_v12 = vpop.f32.mrf.mxu0 }
  0xd0   :  { %v106_v13 = vmul.f32 0.044715, %v104_v10  ;;  %v103_v14 = vmul.f32 %v99_v11, %v99_v11 }
  0xd2   :  { %v108_v15 = vadd.f32 %v106_v13, %v96_v6  ;;  %v105_v16 = vmul.f32 %v103_v14, %v99_v11 }
  0xd4   :  { %v107_v17 = vmul.f32 0.044715, %v105_v16  ;;  %v110_v18 = vmul.f32 0.7978846, %v108_v15 }
  0xd6   :  { %v109_v19 = vadd.f32 %v107_v17, %v99_v11  ;;  %306 = vtanh.f32 %v110_v18 }
  0xd8   :  { %v111_v20 = vmul.f32 0.7978846, %v109_v19 }
  0xda   :  { %308 = vtanh.f32 %v111_v20 }
  0xe3   :  { %v307_v21 = vpop.eup %306 }
  0xe4   :  { %v114_v22 = vadd.f32 1.0, %v307_v21 }
  0xe6   :  { %v116_v23 = vmul.f32 0.5, %v114_v22 }
  0xe7   :  { %v309_v24 = vpop.eup %308 }
  0xe8   :  { %v118_v25 = vmul.f32 %v116_v23, %v96_v6  ;;  %v115_v26 = vadd.f32 1.0, %v309_v24 }
  0xea   :  { %v120_v27 = vsel %vm57_vm1, %v118_v25, 0.0  ;;  %v117_v28 = vmul.f32 0.5, %v115_v26 }
  0xeb   :  { %121 = vadd.xlane.f32.xlu0 %v120_v27 }
  0xec   :  { %v119_v29 = vmul.f32 %v117_v28, %v99_v11 }
  0xee   :  { %v123_v30 = vsel %vm57_vm1, %v119_v29, 0.0 }
  0xef   :  { %124 = vadd.xlane.f32.xlu0 %v123_v30 }
 0x174   :  { %v122_v31 = vpop.xlane.xlu0 %121 }
 0x175   :  { %v127_v32 = vmul.f32 0.03125, %v122_v31 }
 0x177   :  { %v129_v33 = vsub.f32 %v118_v25, %v127_v32 }
 0x178   :  { %v125_v34 = vpop.xlane.xlu0 %124 }
 0x179   :  { %v128_v35 = vmul.f32 0.03125, %v125_v34  ;;  %v131_v36 = vmul.f32 %v129_v33, %v129_v33 }
 0x17b   :  { %v130_v37 = vsub.f32 %v119_v29, %v128_v35  ;;  %v133_v38 = vsel %vm57_vm1, %v131_v36, 0.0 }
 0x17c   :  { %134 = vadd.xlane.f32.xlu1 %v133_v38 }
 0x17d   :  { %v132_v39 = vmul.f32 %v130_v37, %v130_v37 }
 0x17f   :  { %v136_v40 = vsel %vm57_vm1, %v132_v39, 0.0 }
 0x180   :  { %137 = vadd.xlane.f32.xlu1 %v136_v40 }
 0x205   :  { %v135_v45 = vpop.xlane.xlu1 %134 }
 0x206   :  { %v139_v46 = vmul.f32 0.03125, %v135_v45 }
 0x208   :  { %v141_v47 = vadd.f32 1e-12, %v139_v46 }
 0x209   :  { %v138_v48 = vpop.xlane.xlu1 %137 }
 0x20a   :  { %310 = vrsqrt.f32 %v141_v47  ;;  %v140_v49 = vmul.f32 0.03125, %v138_v48 }
 0x20c   :  { %v142_v50 = vadd.f32 1e-12, %v140_v49 }
 0x20e   :  { %312 = vrsqrt.f32 %v142_v50 }
 0x217   :  { %v311_v51 = vpop.eup %310 }
 0x218   :  { %v145_v53 = vmul.f32 %v311_v51, %v129_v33 }
 0x21a   :  { %v154_v55 = vmul.f32 %v268_v52, %v145_v53 }
 0x21b   :  { %v313_v56 = vpop.eup %312 }
 0x21c   :  { %v146_v57 = vmul.f32 %v313_v56, %v130_v37  ;;  %v163_v58 = vadd.f32 %v269_v54, %v154_v55 }
 0x21e   :  { %v155_v59 = vmul.f32 %v268_v52, %v146_v57  ;;  %298 = vmatprep.mubr.msk.f32.mxu1 %vm57_vm1, %v163_v58 }
 0x220   :  { %v164_v60 = vadd.f32 %v269_v54, %v155_v59 }
 0x222   :  { %299 = vmatmul.mubr.msk.f32.vlgmr.msra.gmra.mxu1 %vm57_vm1, %v164_v60 }
 0x2e2   :  { %v300_v62 = vpop.f32.mrf.mxu1 }
 0x2e3   :  { %v254_v63 = vadd.f32 %v300_v62, %v270_v61 }
 0x2e4   :  { %v248_v0 = vpop.f32.mrf.mxu1 }
 0x2e5   :  { %258 = vst [vmem:[%s409_s7 + $0x8] sm:$0xff] %v254_v63  ;;  %v249_v1 = vadd.f32 %v270_v61, %v248_v0 }
 0x2e7   :  { %257 = vst [vmem:[%s409_s7] sm:$0xff] %v249_v1 }

// kernel: fwd.19
= control target key start
LH: loop header
LB: loop body
LE: loop exit
PB: predicated region body
PF: predicated region fallthrough
CT: control target
= control target key end

     0   :  { %v5791_v2 = vlaneseq  ;;  %vm239_vm0 = vcmask 1041409   ;;  %s5784_s0 = inlined_call_operand.vmem [shape: f32[2,8,128], index: 0, kind: input, shape index: {}]   ;;  %s5785_s1 = inlined_call_operand.vmem [shape: s32[2,8], index: 1, kind: input, shape index: {}]   ;;  %s5786_s2 = inlined_call_operand.vmem [shape: s32[2,8,1], index: 2, kind: input, shape index: {}]   ;;  %s5787_s3 = inlined_call_operand.vmem [shape: f32[1,128], index: 3, kind: input, shape index: {}]   ;;  %s5788_s4 = inlined_call_operand.vmem [shape: f32[1,128], index: 4, kind: input, shape index: {}]   ;;  %s5789_s5 = inlined_call_operand.vmem [shape: f32[128,128], index: 5, kind: input, shape index: {}]   ;;  %s5790_s6 = inlined_call_operand.hbm [shape: f32[1,1], index: 6, kind: output, shape index: {}]  }
   0x1   :  { %v24_v0 = vld [vmem:[%s5784_s0] sm:$0xff]  ;;  %v25_v1 = vld [vmem:[%s5784_s0 + $0x8] sm:$0xff] }
   0x2   :  { %v3048_v3 = vld [vmem:[%s5787_s3] ss:$0 sm:$0xff]  ;;  %v373_v4 = vrot.slane %v25_v1, 7  ;;  %v3758_v5 = vshrl.u32 %v5791_v2, 7 }
   0x4   :  { %5832 = vst [vmem:[#allocation5_spill] sm:$0xff] %v3758_v5 }
   0x5   :  { %11 = vsyncpa [#allocation3], 0  ;;  %v374_v6 = vsel %vm239_vm0, %v373_v4, %v24_v0  ;;  %v3762_v7 = vsub.s32 1, %v3758_v5  ;;  %v3769_v10 = vsub.s32 0, %v3758_v5  ;;  %v5792_v12 = vmov 0   ;;  %v3786_v37 = vld [vmem:[%s5789_s5 + $0x10] sm:$0xff] }
   0x6   :  { %v3764_v8 = vadd.f32 %v3048_v3, %v374_v6  ;;  %3163 = vset.pattern.permute.xlu0 %v5792_v12  ;;  %3164 = vset.pattern.permute.xlu1 %v5792_v12  ;;  %v380_v13 = vld [vmem:[%s5786_s2 + $0x9] sm:$0x1]  ;;  %v379_v14 = vld [vmem:[%s5786_s2 + $0x1] sm:$0x1]  ;;  %v3796_v39 = vld [vmem:[%s5789_s5 + $0x18] sm:$0xff]  ;;  %s3712_s25 = smov [#allocation2]  }
   0x7   :  { %5833 = vst [vmem:[#allocation6_spill] sm:$0xff] %v3762_v7  ;;  %vm736_vm1 = vcmp.gt.s32.totalorder %v380_v13, 0  ;;  %vm735_vm2 = vcmp.gt.s32.totalorder %v379_v14, 0  ;;  %v3791_v38 = vld [vmem:[%s5789_s5] sm:$0xff]  ;;  %v3801_v40 = vld [vmem:[%s5789_s5 + $0x8] sm:$0xff]  ;;  %v3828_v49 = vld [vmem:[%s5789_s5 + $0x38] sm:$0xff] }
   0x8   :  { %v451_v9 = vrot.slane %v3764_v8, %v3762_v7  ;;  %v384_v11 = vrot.slane %v3764_v8, %v3769_v10  ;;  %v738_v15 = vsel %vm736_vm1, 1, %v5792_v12  ;;  %v737_v16 = vsel %vm735_vm2, 1, %v5792_v12  ;;  %v3806_v43 = vld [vmem:[%s5789_s5 + $0x28] sm:$0xff]  ;;  %v3823_v48 = vld [vmem:[%s5789_s5 + $0x20] sm:$0xff]  ;;  %v3836_v51 = vld [vmem:[%s5789_s5 + $0x30] sm:$0xff] }
   0x9   :  { %v3850_v57 = vld [vmem:[%s5789_s5 + $0x48] sm:$0xff]  ;;  %v3865_v62 = vld [vmem:[%s5789_s5 + $0x40] sm:$0xff]  ;;  %v3882_v4 = vld [vmem:[%s5789_s5 + $0x58] sm:$0xff] }
   0xa   :  { %461 = vbcast.lane.b32.xlu1 %v451_v9, 272  ;;  %453 = vbcast.lane.b32.xlu0 %v451_v9, 256  ;;  %5834 = vst [vmem:[#allocation7_spill] sm:$0xff] %v3882_v4 }
   0xe   :  { %465 = vbcast.lane.b32.xlu1 %v451_v9, 280  ;;  %457 = vbcast.lane.b32.xlu0 %v451_v9, 264 }
  0x12   :  { %390 = vbcast.lane.b32.xlu1 %v384_v11, 264  ;;  %386 = vbcast.lane.b32.xlu0 %v384_v11, 256 }
  0x16   :  { %398 = vbcast.lane.b32.xlu1 %v384_v11, 280  ;;  %394 = vbcast.lane.b32.xlu0 %v384_v11, 272 }
  0x1a   :  { %473 = vbcast.lane.b32.xlu1 %v451_v9, 296  ;;  %469 = vbcast.lane.b32.xlu0 %v451_v9, 288 }
  0x1e   :  { %406 = vbcast.lane.b32.xlu1 %v384_v11, 296  ;;  %402 = vbcast.lane.b32.xlu0 %v384_v11, 288 }
  0x22   :  { %481 = vbcast.lane.b32.xlu1 %v451_v9, 312  ;;  %477 = vbcast.lane.b32.xlu0 %v451_v9, 304 }
  0x26   :  { %414 = vbcast.lane.b32.xlu1 %v384_v11, 312  ;;  %410 = vbcast.lane.b32.xlu0 %v384_v11, 304 }
  0x2a   :  { %489 = vbcast.lane.b32.xlu1 %v451_v9, 328  ;;  %485 = vbcast.lane.b32.xlu0 %v451_v9, 320 }
  0x2e   :  { %422 = vbcast.lane.b32.xlu1 %v384_v11, 328  ;;  %418 = vbcast.lane.b32.xlu0 %v384_v11, 320 }
  0x32   :  { %497 = vbcast.lane.b32.xlu1 %v451_v9, 344  ;;  %493 = vbcast.lane.b32.xlu0 %v451_v9, 336 }
  0x36   :  { %430 = vbcast.lane.b32.xlu1 %v384_v11, 344  ;;  %426 = vbcast.lane.b32.xlu0 %v384_v11, 336 }
  0x3a   :  { %505 = vbcast.lane.b32.xlu1 %v451_v9, 360  ;;  %501 = vbcast.lane.b32.xlu0 %v451_v9, 352 }
  0x3e   :  { %438 = vbcast.lane.b32.xlu1 %v384_v11, 360  ;;  %434 = vbcast.lane.b32.xlu0 %v384_v11, 352 }
  0x42   :  { %513 = vbcast.lane.b32.xlu1 %v451_v9, 376  ;;  %509 = vbcast.lane.b32.xlu0 %v451_v9, 368 }
  0x46   :  { %446 = vbcast.lane.b32.xlu1 %v384_v11, 376  ;;  %442 = vbcast.lane.b32.xlu0 %v384_v11, 368  ;;  %v3891_v11 = vld [vmem:[%s5789_s5 + $0x50] sm:$0xff] }
  0x47   :  { %5835 = vst [vmem:[#allocation8_spill] sm:$0xff] %v3891_v11 }
  0x4a   :  { %743 = vperm.xlu0 %3163, %v738_v15   ;;  %740 = vperm.xlu1 %3164, %v737_v16  }
  0x7c   :  { %v462_v17 = vpop.permute.xlu1 %461  ;;  %v454_v18 = vpop.permute.xlu0 %453 }
  0x7d   :  { %v3809_v44 = vadd.f32 %v462_v17, %v3786_v37  ;;  %v3812_v45 = vadd.f32 %v454_v18, %v3791_v38 }
  0x7f   :  { %v568_v58 = vmax.f32 %v3812_v45, %v3809_v44 }
  0x80   :  { %v466_v19 = vpop.permute.xlu1 %465  ;;  %v458_v20 = vpop.permute.xlu0 %457 }
  0x81   :  { %v3815_v46 = vadd.f32 %v466_v19, %v3796_v39  ;;  %v3818_v47 = vadd.f32 %v458_v20, %v3801_v40  ;;  %v3904_v19 = vld [vmem:[%s5789_s5 + $0x68] sm:$0xff] }
  0x82   :  { %5836 = vst [vmem:[#allocation9_spill] sm:$0xff] %v3904_v19 }
  0x83   :  { %v569_v59 = vmax.f32 %v3818_v47, %v3815_v46 }
  0x84   :  { %v391_v21 = vpop.permute.xlu1 %390  ;;  %v387_v22 = vpop.permute.xlu0 %386 }
  0x85   :  { %v3857_v60 = vadd.f32 %v391_v21, %v3801_v40  ;;  %v3868_v63 = vadd.f32 %v387_v22, %v3791_v38 }
  0x88   :  { %v399_v23 = vpop.permute.xlu1 %398  ;;  %v395_v24 = vpop.permute.xlu0 %394 }
  0x89   :  { %v3839_v54 = vadd.f32 %v399_v23, %v3796_v39  ;;  %v3842_v55 = vadd.f32 %v395_v24, %v3786_v37  ;;  %v3919_v24 = vld [vmem:[%s5789_s5 + $0x60] sm:$0xff] }
  0x8a   :  { %5837 = vst [vmem:[#allocation10_spill] sm:$0xff] %v3919_v24 }
  0x8b   :  { %v548_v15 = vmax.f32 %v3857_v60, %v3839_v54  ;;  %v547_v16 = vmax.f32 %v3868_v63, %v3842_v55 }
  0x8c   :  { %v474_v25 = vpop.permute.xlu1 %473  ;;  %v470_v26 = vpop.permute.xlu0 %469 }
  0x8d   :  { %v3831_v50 = vadd.f32 %v474_v25, %v3806_v43  ;;  %v3845_v56 = vadd.f32 %v470_v26, %v3823_v48 }
  0x8f   :  { %v571_v6 = vmax.f32 %v569_v59, %v3831_v50  ;;  %v570_v17 = vmax.f32 %v568_v58, %v3845_v56 }
  0x90   :  { %v407_v27 = vpop.permute.xlu1 %406  ;;  %v403_v28 = vpop.permute.xlu0 %402 }
  0x91   :  { %v3871_v0 = vadd.f32 %v407_v27, %v3806_v43  ;;  %v3874_v1 = vadd.f32 %v403_v28, %v3823_v48 }
  0x93   :  { %v550_v25 = vmax.f32 %v548_v15, %v3871_v0  ;;  %v549_v26 = vmax.f32 %v547_v16, %v3874_v1 }
  0x94   :  { %v482_v29 = vpop.permute.xlu1 %481  ;;  %v478_v30 = vpop.permute.xlu0 %477 }
  0x95   :  { %v3860_v61 = vadd.f32 %v482_v29, %v3828_v49  ;;  %v3877_v3 = vadd.f32 %v478_v30, %v3836_v51 }
  0x97   :  { %v573_v20 = vmax.f32 %v571_v6, %v3860_v61  ;;  %v572_v27 = vmax.f32 %v570_v17, %v3877_v3 }
  0x98   :  { %v415_v31 = vpop.permute.xlu1 %414  ;;  %v411_v32 = vpop.permute.xlu0 %410 }
  0x99   :  { %v3908_v21 = vadd.f32 %v415_v31, %v3828_v49  ;;  %v3911_v22 = vadd.f32 %v411_v32, %v3836_v51 }
  0x9b   :  { %v551_v59 = vmax.f32 %v549_v26, %v3911_v22 }
  0x9c   :  { %v490_v33 = vpop.permute.xlu1 %489  ;;  %v486_v34 = vpop.permute.xlu0 %485 }
  0x9d   :  { %v3886_v9 = vadd.f32 %v490_v33, %v3850_v57  ;;  %v3899_v18 = vadd.f32 %v486_v34, %v3865_v62 }
  0x9f   :  { %v575_v29 = vmax.f32 %v573_v20, %v3886_v9 }
  0xa0   :  { %v423_v35 = vpop.permute.xlu1 %422  ;;  %v419_v36 = vpop.permute.xlu0 %418 }
  0xa1   :  { %v3929_v30 = vadd.f32 %v423_v35, %v3850_v57  ;;  %v3932_v31 = vadd.f32 %v419_v36, %v3865_v62  ;;  %v3950_v36 = vld [vmem:[%s5789_s5 + $0x78] sm:$0xff] }
  0xa4   :  { %v498_v41 = vpop.permute.xlu1 %497  ;;  %v494_v42 = vpop.permute.xlu0 %493 }
  0xa5   :  { %v3914_v23 = vadd.f32 %v498_v41, %v3882_v4  ;;  %v3925_v28 = vadd.f32 %v494_v42, %v3891_v11  ;;  %v574_v41 = vmax.f32 %v572_v27, %v3899_v18  ;;  %v552_v42 = vmax.f32 %v550_v25, %v3908_v21 }
  0xa7   :  { %v577_v35 = vmax.f32 %v575_v29, %v3914_v23  ;;  %v554_v16 = vmax.f32 %v552_v42, %v3929_v30 }
  0xa8   :  { %v431_v52 = vpop.permute.xlu1 %430  ;;  %v427_v53 = vpop.permute.xlu0 %426 }
  0xa9   :  { %v3945_v6 = vadd.f32 %v431_v52, %v3882_v4  ;;  %v3959_v15 = vadd.f32 %v427_v53, %v3891_v11  ;;  %v553_v52 = vmax.f32 %v551_v59, %v3932_v31 }
  0xab   :  { %v556_v42 = vmax.f32 %v554_v16, %v3945_v6  ;;  %v555_v59 = vmax.f32 %v553_v52, %v3959_v15 }
  0xac   :  { %v506_v13 = vpop.permute.xlu1 %505  ;;  %v502_v14 = vpop.permute.xlu0 %501 }
  0xad   :  { %v3935_v32 = vadd.f32 %v506_v13, %v3904_v19  ;;  %v3939_v58 = vadd.f32 %v502_v14, %v3919_v24  ;;  %v3955_v13 = vld [vmem:[%s5789_s5 + $0x70] sm:$0xff]  ;;  %v576_v14 = vmax.f32 %v574_v41, %v3925_v28 }
  0xaf   :  { %v579_v17 = vmax.f32 %v577_v35, %v3935_v32  ;;  %v578_v27 = vmax.f32 %v576_v14, %v3939_v58 }
  0xb0   :  { %v439_v33 = vpop.permute.xlu1 %438  ;;  %v435_v34 = vpop.permute.xlu0 %434 }
  0xb1   :  { %v3965_v20 = vadd.f32 %v439_v33, %v3904_v19  ;;  %v3969_v29 = vadd.f32 %v435_v34, %v3919_v24 }
  0xb3   :  { %v558_v2 = vmax.f32 %v556_v42, %v3965_v20  ;;  %v557_v34 = vmax.f32 %v555_v59, %v3969_v29 }
  0xb4   :  { %v514_v25 = vpop.permute.xlu1 %513  ;;  %v510_v26 = vpop.permute.xlu0 %509 }
  0xb5   :  { %v3972_v41 = vadd.f32 %v514_v25, %v3950_v36  ;;  %v3975_v53 = vadd.f32 %v510_v26, %v3955_v13 }
  0xb7   :  { %v581_v33 = vmax.f32 %v579_v17, %v3972_v41  ;;  %v580_v35 = vmax.f32 %v578_v27, %v3975_v53 }
  0xb8   :  { %v447_v14 = vpop.permute.xlu1 %446  ;;  %v443_v12 = vpop.permute.xlu0 %442 }
  0xb9   :  { %v582_v5 = vmax.f32 %v580_v35, %v581_v33  ;;  %v3984_v25 = vadd.f32 %v447_v14, %v3950_v36  ;;  %v3987_v26 = vadd.f32 %v443_v12, %v3955_v13 }
  0xbb   :  { %v583_v16 = vrot.slane %v582_v5, 4  ;;  %v560_v52 = vmax.f32 %v558_v2, %v3984_v25  ;;  %v559_v17 = vmax.f32 %v557_v34, %v3987_v26 }
  0xbd   :  { %v584_v7 = vmax.f32 %v582_v5, %v583_v16  ;;  %v561_v27 = vmax.f32 %v559_v17, %v560_v52 }
  0xbf   :  { %v585_v24 = vrot.slane %v584_v7, 2  ;;  %v562_v42 = vrot.slane %v561_v27, 4 }
  0xc1   :  { %v586_v19 = vmax.f32 %v584_v7, %v585_v24  ;;  %v563_v4 = vmax.f32 %v561_v27, %v562_v42 }
  0xc3   :  { %v587_v11 = vrot.slane %v586_v19, 1  ;;  %v564_v35 = vrot.slane %v563_v4, 2 }
  0xc5   :  { %v3991_v59 = vmax.f32 %v586_v19, %v587_v11  ;;  %v565_v19 = vmax.f32 %v563_v4, %v564_v35 }
  0xc7   :  { %v605_v33 = vsub.f32 %v3812_v45, %v3991_v59  ;;  %v606_v12 = vsub.f32 %v3818_v47, %v3991_v59  ;;  %v607_v2 = vsub.f32 %v3809_v44, %v3991_v59  ;;  %v608_v5 = vsub.f32 %v3815_v46, %v3991_v59 }
  0xc8   :  { %v609_v7 = vsub.f32 %v3845_v56, %v3991_v59  ;;  %v610_v45 = vsub.f32 %v3831_v50, %v3991_v59  ;;  %v611_v44 = vsub.f32 %v3877_v3, %v3991_v59  ;;  %v566_v16 = vrot.slane %v565_v19, 1 }
  0xc9   :  { %v653_v14 = vmul.f32 1.442695, %v605_v33  ;;  %v655_v34 = vmul.f32 1.442695, %v606_v12  ;;  %v657_v11 = vmul.f32 1.442695, %v607_v2  ;;  %v612_v46 = vsub.f32 %v3860_v61, %v3991_v59 }
  0xca   :  { %v659_v47 = vmul.f32 1.442695, %v608_v5  ;;  %v661_v24 = vmul.f32 1.442695, %v609_v7  ;;  %v663_v52 = vmul.f32 1.442695, %v610_v45  ;;  %v4009_v56 = vmax.f32 %v565_v19, %v566_v16 }
  0xcb   :  { %3165 = vpow2.f32 %v653_v14  ;;  %v613_v4 = vsub.f32 %v3899_v18, %v3991_v59  ;;  %v614_v50 = vsub.f32 %v3886_v9, %v3991_v59  ;;  %v665_v17 = vmul.f32 1.442695, %v611_v44 }
  0xcc   :  { %3167 = vpow2.f32 %v655_v34  ;;  %v589_v3 = vsub.f32 %v3868_v63, %v4009_v56  ;;  %v667_v27 = vmul.f32 1.442695, %v612_v46  ;;  %v590_v61 = vsub.f32 %v3857_v60, %v4009_v56 }
  0xcd   :  { %3169 = vpow2.f32 %v657_v11  ;;  %v615_v42 = vsub.f32 %v3925_v28, %v3991_v59  ;;  %v669_v33 = vmul.f32 1.442695, %v613_v4  ;;  %v671_v12 = vmul.f32 1.442695, %v614_v50 }
  0xce   :  { %3171 = vpow2.f32 %v659_v47  ;;  %v591_v18 = vsub.f32 %v3842_v55, %v4009_v56  ;;  %v616_v9 = vsub.f32 %v3914_v23, %v3991_v59  ;;  %v621_v2 = vmul.f32 1.442695, %v589_v3 }
  0xcf   :  { %3173 = vpow2.f32 %v661_v24  ;;  %v592_v63 = vsub.f32 %v3839_v54, %v4009_v56  ;;  %v623_v5 = vmul.f32 1.442695, %v590_v61  ;;  %v617_v28 = vsub.f32 %v3939_v58, %v3991_v59 }
  0xd0   :  { %3175 = vpow2.f32 %v663_v52  ;;  %v673_v14 = vmul.f32 1.442695, %v615_v42  ;;  %v593_v55 = vsub.f32 %v3874_v1, %v4009_v56  ;;  %v625_v7 = vmul.f32 1.442695, %v591_v18 }
  0xd1   :  { %3177 = vpow2.f32 %v665_v17  ;;  %v618_v11 = vsub.f32 %v3935_v32, %v3991_v59  ;;  %v675_v19 = vmul.f32 1.442695, %v616_v9  ;;  %v594_v45 = vsub.f32 %v3871_v0, %v4009_v56 }
  0xd2   :  { %3179 = vpow2.f32 %v667_v27  ;;  %v627_v58 = vmul.f32 1.442695, %v592_v63  ;;  %v619_v44 = vsub.f32 %v3975_v53, %v3991_v59  ;;  %v677_v24 = vmul.f32 1.442695, %v617_v28 }
  0xd3   :  { %3181 = vpow2.f32 %v669_v33  ;;  %v595_v16 = vsub.f32 %v3911_v22, %v4009_v56  ;;  %v629_v32 = vmul.f32 1.442695, %v593_v55  ;;  %v620_v52 = vsub.f32 %v3972_v41, %v3991_v59 }
  0xd4   :  { %3183 = vpow2.f32 %v671_v12  ;;  %v679_v0 = vmul.f32 1.442695, %v618_v11  ;;  %v596_v50 = vsub.f32 %v3908_v21, %v4009_v56  ;;  %v631_v53 = vmul.f32 1.442695, %v594_v45 }
  0xd5   :  { %3185 = vpow2.f32 %v621_v2  ;;  %v681_v3 = vmul.f32 1.442695, %v619_v44  ;;  %v597_v22 = vsub.f32 %v3932_v31, %v4009_v56  ;;  %v633_v61 = vmul.f32 1.442695, %v595_v16 }
  0xd6   :  { %3187 = vpow2.f32 %v623_v5  ;;  %v683_v41 = vmul.f32 1.442695, %v620_v52  ;;  %v598_v12 = vsub.f32 %v3929_v30, %v4009_v56  ;;  %v635_v21 = vmul.f32 1.442695, %v596_v50 }
  0xd7   :  { %3189 = vpow2.f32 %v673_v14  ;;  %v637_v31 = vmul.f32 1.442695, %v597_v22  ;;  %v600_v28 = vsub.f32 %v3945_v6, %v4009_v56  ;;  %v603_v44 = vsub.f32 %v3987_v26, %v4009_v56 }
  0xd8   :  { %v3166_v35 = vpop.eup %3165  ;;  %3191 = vpow2.f32 %v625_v7  ;;  %v639_v30 = vmul.f32 1.442695, %v598_v12 }
  0xd9   :  { %v3168_v60 = vpop.eup %3167  ;;  %3193 = vpow2.f32 %v675_v19  ;;  %v602_v19 = vsub.f32 %v3965_v20, %v4009_v56 }
  0xda   :  { %v706_v34 = vadd.f32 %v3168_v60, %v3166_v35  ;;  %v3170_v23 = vpop.eup %3169  ;;  %3195 = vpow2.f32 %v627_v58  ;;  %v599_v35 = vsub.f32 %v3959_v15, %v4009_v56  ;;  %v643_v58 = vmul.f32 1.442695, %v600_v28 }
  0xdb   :  { %v3172_v47 = vpop.eup %3171  ;;  %3197 = vpow2.f32 %v677_v24 }
  0xdc   :  { %v707_v54 = vadd.f32 %v3170_v23, %v706_v34  ;;  %v3174_v46 = vpop.eup %3173  ;;  %3199 = vpow2.f32 %v629_v32  ;;  %v601_v34 = vsub.f32 %v3969_v29, %v4009_v56  ;;  %v641_v23 = vmul.f32 1.442695, %v599_v35 }
  0xdd   :  { %v3176_v17 = vpop.eup %3175  ;;  %3201 = vpow2.f32 %v679_v0  ;;  %v647_v0 = vmul.f32 1.442695, %v602_v19 }
  0xde   :  { %v708_v1 = vadd.f32 %v3172_v47, %v707_v54  ;;  %v3178_v42 = vpop.eup %3177  ;;  %3203 = vpow2.f32 %v631_v53 }
  0xdf   :  { %v3180_v18 = vpop.eup %3179  ;;  %3205 = vpow2.f32 %v681_v3  ;;  %v649_v3 = vmul.f32 1.442695, %v603_v44 }
  0xe0   :  { %v709_v4 = vadd.f32 %v3174_v46, %v708_v1  ;;  %v3182_v9 = vpop.eup %3181  ;;  %3207 = vpow2.f32 %v633_v61  ;;  %v645_v1 = vmul.f32 1.442695, %v601_v34  ;;  %v604_v46 = vsub.f32 %v3984_v25, %v4009_v56 }
  0xe1   :  { %v3184_v63 = vpop.eup %3183  ;;  %3209 = vpow2.f32 %v683_v41 }
  0xe2   :  { %v710_v27 = vadd.f32 %v3176_v17, %v709_v4  ;;  %v3186_v5 = vpop.eup %3185  ;;  %3211 = vpow2.f32 %v635_v21 }
  0xe3   :  { %v3188_v14 = vpop.eup %3187  ;;  %3213 = vpow2.f32 %v637_v31 }
  0xe4   :  { %v711_v33 = vadd.f32 %v3178_v42, %v710_v27  ;;  %v3190_v55 = vpop.eup %3189  ;;  %v685_v15 = vadd.f32 %v3188_v14, %v3186_v5  ;;  %3215 = vpow2.f32 %v639_v30  ;;  %v651_v42 = vmul.f32 1.442695, %v604_v46 }
  0xe5   :  { %v3192_v11 = vpop.eup %3191  ;;  %3217 = vpow2.f32 %v641_v23 }
  0xe6   :  { %v712_v2 = vadd.f32 %v3180_v18, %v711_v33  ;;  %v3194_v54 = vpop.eup %3193  ;;  %v686_v6 = vadd.f32 %v3192_v11, %v685_v15  ;;  %3219 = vpow2.f32 %v643_v58 }
  0xe7   :  { %v3196_v47 = vpop.eup %3195  ;;  %3221 = vpow2.f32 %v645_v1 }
  0xe8   :  { %v713_v60 = vadd.f32 %v3182_v9, %v712_v2  ;;  %v3198_v24 = vpop.eup %3197  ;;  %v687_v16 = vadd.f32 %v3196_v47, %v686_v6  ;;  %3223 = vpow2.f32 %v647_v0  ;;  %v748_v0 = vrot.slane %v3764_v8, 1 }
  0xe9   :  { %v3200_v32 = vpop.eup %3199  ;;  %3225 = vpow2.f32 %v649_v3  ;;  %v741_v3 = vpop.permute.xlu1 %740 }
  0xea   :  { %v714_v7 = vadd.f32 %v3184_v63, %v713_v60  ;;  %v3202_v52 = vpop.eup %3201  ;;  %v688_v4 = vadd.f32 %v3200_v32, %v687_v16  ;;  %3227 = vpow2.f32 %v651_v42  ;;  %v744_v32 = vpop.permute.xlu0 %743  ;;  %vm745_vm4 = vcmp.eq.s32.totalorder %v741_v3, 1 }
  0xeb   :  { %v3204_v50 = vpop.eup %3203  ;;  %vm746_vm3 = vcmp.eq.s32.totalorder %v744_v32, 1 }
  0xec   :  { %v715_v45 = vadd.f32 %v3190_v55, %v714_v7  ;;  %v3206_v53 = vpop.eup %3205  ;;  %v689_v26 = vadd.f32 %v3204_v50, %v688_v4 }
  0xed   :  { %v3208_v27 = vpop.eup %3207 }
  0xee   :  { %v716_v29 = vadd.f32 %v3194_v54, %v715_v45  ;;  %v3210_v22 = vpop.eup %3209  ;;  %v690_v41 = vadd.f32 %v3208_v27, %v689_v26 }
  0xef   :  { %v3212_v33 = vpop.eup %3211 }
  0xf0   :  { %v717_v20 = vadd.f32 %v3198_v24, %v716_v29  ;;  %v691_v25 = vadd.f32 %v3212_v33, %v690_v41  ;;  %v3214_v21 = vpop.eup %3213  ;;  %v5838_v41 = vmov 0  }
  0xf1   :  { %v3216_v2 = vpop.eup %3215 }
  0xf2   :  { %v718_v17 = vadd.f32 %v3202_v52, %v717_v20  ;;  %v692_v18 = vadd.f32 %v3214_v21, %v691_v25  ;;  %v3218_v63 = vpop.eup %3217  ;;  %v378_v52 = vld [vmem:[%s5784_s0 + $0x9] sm:$0x1] }
  0xf3   :  { %v3220_v28 = vpop.eup %3219 }
  0xf4   :  { %v719_v61 = vadd.f32 %v3206_v53, %v718_v17  ;;  %v693_v35 = vadd.f32 %v3216_v2, %v692_v18  ;;  %v3222_v34 = vpop.eup %3221 }
  0xf5   :  { %v3224_v23 = vpop.eup %3223 }
  0xf6   :  { %v720_v12 = vadd.f32 %v3210_v22, %v719_v61  ;;  %v694_v5 = vadd.f32 %v3218_v63, %v693_v35  ;;  %v3226_v19 = vpop.eup %3225 }
  0xf7   :  { %v3228_v45 = vpop.eup %3227 }
  0xf8   :  { %v721_v9 = vrot.slane %v720_v12, 4  ;;  %v695_v30 = vadd.f32 %v3220_v28, %v694_v5 }
  0xfa   :  { %v722_v31 = vadd.f32 %v721_v9, %v720_v12  ;;  %v696_v55 = vadd.f32 %v3222_v34, %v695_v30 }
  0xfc   :  { %v723_v60 = vrot.slane %v722_v31, 2  ;;  %v697_v15 = vadd.f32 %v3224_v23, %v696_v55 }
  0xfe   :  { %v724_v14 = vadd.f32 %v723_v60, %v722_v31  ;;  %v698_v54 = vadd.f32 %v3226_v19, %v697_v15 }
 0x100   :  { %v725_v7 = vrot.slane %v724_v14, 1  ;;  %v699_v58 = vadd.f32 %v3228_v45, %v698_v54 }
 0x102   :  { %v726_v11 = vadd.f32 %v725_v7, %v724_v14  ;;  %v700_v6 = vrot.slane %v699_v58, 4 }
 0x104   :  { %3229 = vlog2.f32 %v726_v11  ;;  %v701_v47 = vadd.f32 %v700_v6, %v699_v58 }
 0x106   :  { %v702_v44 = vrot.slane %v701_v47, 2 }
 0x108   :  { %v703_v24 = vadd.f32 %v702_v44, %v701_v47 }
 0x10a   :  { %v704_v29 = vrot.slane %v703_v24, 1 }
 0x10c   :  { %v705_v46 = vadd.f32 %v704_v29, %v703_v24 }
 0x10e   :  { %3231 = vlog2.f32 %v705_v46 }
 0x111   :  { %v3230_v1 = vpop.eup %3229 }
 0x112   :  { %v730_v16 = vmul.f32 0.6931472, %v3230_v1 }
 0x114   :  { %v732_v20 = vadd.f32 %v730_v16, %v3991_v59  ;;  %v377_v59 = vld [vmem:[%s5784_s0 + $0x1] sm:$0x1] }
 0x116   :  { %v734_v4 = vadd.f32 %v732_v20, %v378_v52 }
 0x118   :  { %v4064_v50 = vsel %vm746_vm3, %v734_v4, %v748_v0 }
 0x119   :  { %v827_v53 = vrot.slane %v4064_v50, %v3769_v10 }
 0x11b   :  { %833 = vbcast.lane.b32.xlu0 %v827_v53, 264  ;;  %829 = vbcast.lane.b32.xlu1 %v827_v53, 256  ;;  %v3232_v17 = vpop.eup %3231 }
 0x11c   :  { %v728_v26 = vmul.f32 0.6931472, %v3232_v17 }
 0x11e   :  { %v731_v27 = vadd.f32 %v728_v26, %v4009_v56  ;;  %v756_v56 = vld [vmem:[%s5786_s2 + $0xa] sm:$0x1] }
 0x11f   :  { %841 = vbcast.lane.b32.xlu0 %v827_v53, 280  ;;  %837 = vbcast.lane.b32.xlu1 %v827_v53, 272  ;;  %vm1112_vm6 = vcmp.gt.s32.totalorder %v756_v56, 0  ;;  %v5839_v56 = vld [vmem:[#allocation7_spill] sm:$0xff] }
 0x120   :  { %v733_v22 = vadd.f32 %v731_v27, %v377_v59  ;;  %v1114_v12 = vsel %vm1112_vm6, 1, %v5838_v41 }
 0x122   :  { %v4073_v61 = vsel %vm745_vm4, %v733_v22, %v3764_v8  ;;  %v755_v8 = vld [vmem:[%s5786_s2 + $0x2] sm:$0x1] }
 0x123   :  { %v760_v42 = vrot.slane %v4073_v61, %v3769_v10  ;;  %vm1111_vm5 = vcmp.gt.s32.totalorder %v755_v8, 0 }
 0x124   :  { %v1113_v33 = vsel %vm1111_vm5, 1, %v5838_v41 }
 0x125   :  { %766 = vbcast.lane.b32.xlu0 %v760_v42, 264  ;;  %762 = vbcast.lane.b32.xlu1 %v760_v42, 256 }
 0x129   :  { %774 = vbcast.lane.b32.xlu0 %v760_v42, 280  ;;  %770 = vbcast.lane.b32.xlu1 %v760_v42, 272 }
 0x12d   :  { %849 = vbcast.lane.b32.xlu0 %v827_v53, 296  ;;  %845 = vbcast.lane.b32.xlu1 %v827_v53, 288 }
 0x131   :  { %782 = vbcast.lane.b32.xlu0 %v760_v42, 296  ;;  %778 = vbcast.lane.b32.xlu1 %v760_v42, 288 }
 0x135   :  { %857 = vbcast.lane.b32.xlu0 %v827_v53, 312  ;;  %853 = vbcast.lane.b32.xlu1 %v827_v53, 304 }
 0x139   :  { %790 = vbcast.lane.b32.xlu0 %v760_v42, 312  ;;  %786 = vbcast.lane.b32.xlu1 %v760_v42, 304 }
 0x13d   :  { %865 = vbcast.lane.b32.xlu0 %v827_v53, 328  ;;  %861 = vbcast.lane.b32.xlu1 %v827_v53, 320 }
 0x141   :  { %798 = vbcast.lane.b32.xlu0 %v760_v42, 328  ;;  %794 = vbcast.lane.b32.xlu1 %v760_v42, 320 }
 0x145   :  { %873 = vbcast.lane.b32.xlu0 %v827_v53, 344  ;;  %869 = vbcast.lane.b32.xlu1 %v827_v53, 336 }
 0x149   :  { %806 = vbcast.lane.b32.xlu0 %v760_v42, 344  ;;  %802 = vbcast.lane.b32.xlu1 %v760_v42, 336 }
 0x14d   :  { %881 = vbcast.lane.b32.xlu0 %v827_v53, 360  ;;  %877 = vbcast.lane.b32.xlu1 %v827_v53, 352 }
 0x151   :  { %814 = vbcast.lane.b32.xlu0 %v760_v42, 360  ;;  %810 = vbcast.lane.b32.xlu1 %v760_v42, 352 }
 0x155   :  { %889 = vbcast.lane.b32.xlu0 %v827_v53, 376  ;;  %885 = vbcast.lane.b32.xlu1 %v827_v53, 368 }
 0x159   :  { %822 = vbcast.lane.b32.xlu0 %v760_v42, 376  ;;  %818 = vbcast.lane.b32.xlu1 %v760_v42, 368 }
 0x15d   :  { %1116 = vperm.xlu0 %3163, %v1113_v33   ;;  %1119 = vperm.xlu1 %3164, %v1114_v12  }
 0x18d   :  { %v834_v25 = vpop.permute.xlu0 %833  ;;  %v830_v21 = vpop.permute.xlu1 %829 }
 0x18e   :  { %v4092_v47 = vadd.f32 %v834_v25, %v3801_v40  ;;  %v4095_v44 = vadd.f32 %v830_v21, %v3791_v38 }
 0x191   :  { %v842_v18 = vpop.permute.xlu0 %841  ;;  %v838_v9 = vpop.permute.xlu1 %837 }
 0x192   :  { %v4086_v58 = vadd.f32 %v842_v18, %v3796_v39  ;;  %v4089_v6 = vadd.f32 %v838_v9, %v3786_v37  ;;  %v5840_v18 = vld [vmem:[#allocation8_spill] sm:$0xff] }
 0x194   :  { %v945_v52 = vmax.f32 %v4092_v47, %v4086_v58  ;;  %v944_v20 = vmax.f32 %v4095_v44, %v4089_v6 }
 0x197   :  { %v767_v2 = vpop.permute.xlu0 %766  ;;  %v763_v35 = vpop.permute.xlu1 %762 }
 0x198   :  { %v4114_v0 = vadd.f32 %v767_v2, %v3801_v40 }
 0x19b   :  { %v775_v31 = vpop.permute.xlu0 %774  ;;  %v771_v63 = vpop.permute.xlu1 %770 }
 0x19c   :  { %v4101_v16 = vadd.f32 %v775_v31, %v3796_v39  ;;  %v4104_v32 = vadd.f32 %v771_v63, %v3786_v37  ;;  %v4120_v39 = vadd.f32 %v763_v35, %v3791_v38  ;;  %v5841_v35 = vld [vmem:[#allocation9_spill] sm:$0xff] }
 0x19e   :  { %v924_v38 = vmax.f32 %v4114_v0, %v4101_v16 }
 0x19f   :  { %v850_v5 = vpop.permute.xlu0 %849  ;;  %v846_v60 = vpop.permute.xlu1 %845 }
 0x1a0   :  { %v4098_v24 = vadd.f32 %v850_v5, %v3806_v43  ;;  %v4107_v46 = vadd.f32 %v846_v60, %v3823_v48 }
 0x1a2   :  { %v947_v3 = vmax.f32 %v945_v52, %v4098_v24  ;;  %v946_v27 = vmax.f32 %v944_v20, %v4107_v46 }
 0x1a3   :  { %v783_v28 = vpop.permute.xlu0 %782  ;;  %v779_v30 = vpop.permute.xlu1 %778 }
 0x1a4   :  { %v4123_v37 = vadd.f32 %v783_v28, %v3806_v43  ;;  %v4126_v53 = vadd.f32 %v779_v30, %v3823_v48  ;;  %v923_v43 = vmax.f32 %v4120_v39, %v4104_v32  ;;  %v5842_v28 = vld [vmem:[#allocation10_spill] sm:$0xff] }
 0x1a6   :  { %v926_v12 = vmax.f32 %v924_v38, %v4123_v37  ;;  %v925_v25 = vmax.f32 %v923_v43, %v4126_v53 }
 0x1a7   :  { %v858_v14 = vpop.permute.xlu0 %857  ;;  %v854_v34 = vpop.permute.xlu1 %853 }
 0x1a8   :  { %v4117_v4 = vadd.f32 %v858_v14, %v3828_v49  ;;  %v4129_v17 = vadd.f32 %v854_v34, %v3836_v51 }
 0x1aa   :  { %v949_v22 = vmax.f32 %v947_v3, %v4117_v4  ;;  %v948_v21 = vmax.f32 %v946_v27, %v4129_v17 }
 0x1ab   :  { %v791_v55 = vpop.permute.xlu0 %790  ;;  %v787_v7 = vpop.permute.xlu1 %786 }
 0x1ac   :  { %v4145_v42 = vadd.f32 %v791_v55, %v3828_v49  ;;  %v4148_v8 = vadd.f32 %v787_v7, %v3836_v51 }
 0x1ae   :  { %v928_v14 = vmax.f32 %v926_v12, %v4145_v42  ;;  %v927_v34 = vmax.f32 %v925_v25, %v4148_v8 }
 0x1af   :  { %v866_v23 = vpop.permute.xlu0 %865  ;;  %v862_v15 = vpop.permute.xlu1 %861 }
 0x1b0   :  { %v4133_v40 = vadd.f32 %v866_v23, %v3850_v57  ;;  %v4141_v48 = vadd.f32 %v862_v15, %v3865_v62 }
 0x1b2   :  { %v951_v2 = vmax.f32 %v949_v22, %v4133_v40  ;;  %v950_v60 = vmax.f32 %v948_v21, %v4141_v48 }
 0x1b3   :  { %v799_v11 = vpop.permute.xlu0 %798  ;;  %v795_v19 = vpop.permute.xlu1 %794 }
 0x1b4   :  { %v4161_v49 = vadd.f32 %v799_v11, %v3850_v57  ;;  %v4164_v51 = vadd.f32 %v795_v19, %v3865_v62 }
 0x1b6   :  { %v930_v23 = vmax.f32 %v928_v14, %v4161_v49  ;;  %v929_v15 = vmax.f32 %v927_v34, %v4164_v51 }
 0x1b7   :  { %v874_v54 = vpop.permute.xlu0 %873  ;;  %v870_v45 = vpop.permute.xlu1 %869 }
 0x1b8   :  { %v4151_v33 = vadd.f32 %v874_v54, %v5839_v56  ;;  %v4157_v9 = vadd.f32 %v870_v45, %v5840_v18 }
 0x1ba   :  { %v953_v57 = vmax.f32 %v951_v2, %v4151_v33  ;;  %v952_v62 = vmax.f32 %v950_v60, %v4157_v9 }
 0x1bb   :  { %v807_v29 = vpop.permute.xlu0 %806  ;;  %v803_v1 = vpop.permute.xlu1 %802 }
 0x1bc   :  { %v4177_v55 = vadd.f32 %v807_v29, %v5839_v56  ;;  %v4181_v7 = vadd.f32 %v803_v1, %v5840_v18 }
 0x1be   :  { %v932_v3 = vmax.f32 %v930_v23, %v4177_v55 }
 0x1bf   :  { %v882_v26 = vpop.permute.xlu0 %881  ;;  %v878_v59 = vpop.permute.xlu1 %877 }
 0x1c0   :  { %v4167_v31 = vadd.f32 %v882_v26, %v5841_v35  ;;  %v4171_v30 = vadd.f32 %v878_v59, %v5842_v28  ;;  %v931_v26 = vmax.f32 %v929_v15, %v4181_v7 }
 0x1c2   :  { %v955_v11 = vmax.f32 %v953_v57, %v4167_v31  ;;  %v954_v52 = vmax.f32 %v952_v62, %v4171_v30 }
 0x1c3   :  { %v815_v63 = vpop.permute.xlu0 %814  ;;  %v811_v5 = vpop.permute.xlu1 %810 }
 0x1c4   :  { %v4187_v19 = vadd.f32 %v815_v63, %v5841_v35  ;;  %v4191_v29 = vadd.f32 %v811_v5, %v5842_v28 }
 0x1c6   :  { %v934_v43 = vmax.f32 %v932_v3, %v4187_v19  ;;  %v933_v56 = vmax.f32 %v931_v26, %v4191_v29 }
 0x1c7   :  { %v890_v54 = vpop.permute.xlu0 %889  ;;  %v886_v45 = vpop.permute.xlu1 %885 }
 0x1c8   :  { %v4194_v20 = vadd.f32 %v890_v54, %v3950_v36  ;;  %v4197_v1 = vadd.f32 %v886_v45, %v3955_v13 }
 0x1ca   :  { %v957_v59 = vmax.f32 %v955_v11, %v4194_v20  ;;  %v956_v38 = vmax.f32 %v954_v52, %v4197_v1 }
 0x1cb   :  { %v823_v27 = vpop.permute.xlu0 %822  ;;  %v819_v22 = vpop.permute.xlu1 %818 }
 0x1cc   :  { %v958_v12 = vmax.f32 %v956_v38, %v957_v59  ;;  %v4206_v25 = vadd.f32 %v823_v27, %v3950_v36  ;;  %v4209_v21 = vadd.f32 %v819_v22, %v3955_v13 }
 0x1ce   :  { %v959_v18 = vrot.slane %v958_v12, 4  ;;  %v936_v2 = vmax.f32 %v934_v43, %v4206_v25  ;;  %v935_v35 = vmax.f32 %v933_v56, %v4209_v21 }
 0x1d0   :  { %v960_v63 = vmax.f32 %v958_v12, %v959_v18  ;;  %v937_v5 = vmax.f32 %v935_v35, %v936_v2 }
 0x1d2   :  { %v961_v60 = vrot.slane %v960_v63, 2  ;;  %v938_v28 = vrot.slane %v937_v5, 4 }
 0x1d4   :  { %v962_v14 = vmax.f32 %v960_v63, %v961_v60  ;;  %v939_v57 = vmax.f32 %v937_v5, %v938_v28 }
 0x1d6   :  { %v963_v34 = vrot.slane %v962_v14, 1  ;;  %v940_v15 = vrot.slane %v939_v57, 2 }
 0x1d8   :  { %v4213_v62 = vmax.f32 %v962_v14, %v963_v34  ;;  %v941_v26 = vmax.f32 %v939_v57, %v940_v15 }
 0x1da   :  { %v981_v36 = vsub.f32 %v4095_v44, %v4213_v62  ;;  %v982_v13 = vsub.f32 %v4092_v47, %v4213_v62  ;;  %v983_v23 = vsub.f32 %v4089_v6, %v4213_v62  ;;  %v984_v11 = vsub.f32 %v4086_v58, %v4213_v62 }
 0x1db   :  { %v985_v52 = vsub.f32 %v4107_v46, %v4213_v62  ;;  %v986_v44 = vsub.f32 %v4098_v24, %v4213_v62  ;;  %v987_v6 = vsub.f32 %v4129_v17, %v4213_v62  ;;  %v942_v38 = vrot.slane %v941_v26, 1 }
 0x1dc   :  { %v1029_v54 = vmul.f32 1.442695, %v981_v36  ;;  %v1031_v45 = vmul.f32 1.442695, %v982_v13  ;;  %v1033_v3 = vmul.f32 1.442695, %v983_v23  ;;  %v988_v58 = vsub.f32 %v4117_v4, %v4213_v62 }
 0x1dd   :  { %v1035_v47 = vmul.f32 1.442695, %v984_v11  ;;  %v1037_v59 = vmul.f32 1.442695, %v985_v52  ;;  %v1039_v43 = vmul.f32 1.442695, %v986_v44  ;;  %v4231_v46 = vmax.f32 %v941_v26, %v942_v38 }
 0x1de   :  { %3233 = vpow2.f32 %v1029_v54  ;;  %v989_v27 = vsub.f32 %v4141_v48, %v4213_v62  ;;  %v990_v24 = vsub.f32 %v4133_v40, %v4213_v62  ;;  %v1041_v22 = vmul.f32 1.442695, %v987_v6 }
 0x1df   :  { %3235 = vpow2.f32 %v1031_v45  ;;  %v965_v17 = vsub.f32 %v4120_v39, %v4231_v46  ;;  %v1043_v56 = vmul.f32 1.442695, %v988_v58  ;;  %v966_v4 = vsub.f32 %v4114_v0, %v4231_v46 }
 0x1e0   :  { %3237 = vpow2.f32 %v1033_v3  ;;  %v991_v12 = vsub.f32 %v4157_v9, %v4213_v62  ;;  %v1045_v18 = vmul.f32 1.442695, %v989_v27  ;;  %v1047_v2 = vmul.f32 1.442695, %v990_v24 }
 0x1e1   :  { %3239 = vpow2.f32 %v1035_v47  ;;  %v967_v48 = vsub.f32 %v4104_v32, %v4231_v46  ;;  %v992_v40 = vsub.f32 %v4151_v33, %v4213_v62  ;;  %v997_v35 = vmul.f32 1.442695, %v965_v17 }
 0x1e2   :  { %3241 = vpow2.f32 %v1037_v59  ;;  %v968_v39 = vsub.f32 %v4101_v16, %v4231_v46  ;;  %v999_v5 = vmul.f32 1.442695, %v966_v4  ;;  %v993_v9 = vsub.f32 %v4171_v30, %v4213_v62 }
 0x1e3   :  { %3243 = vpow2.f32 %v1039_v43  ;;  %v1049_v60 = vmul.f32 1.442695, %v991_v12  ;;  %v969_v32 = vsub.f32 %v4126_v53, %v4231_v46  ;;  %v1001_v14 = vmul.f32 1.442695, %v967_v48 }
 0x1e4   :  { %3245 = vpow2.f32 %v1041_v22  ;;  %v994_v34 = vsub.f32 %v4167_v31, %v4213_v62  ;;  %v1051_v57 = vmul.f32 1.442695, %v992_v40  ;;  %v970_v36 = vsub.f32 %v4123_v37, %v4231_v46 }
 0x1e5   :  { %3247 = vpow2.f32 %v1043_v56  ;;  %v1003_v30 = vmul.f32 1.442695, %v968_v39  ;;  %v995_v23 = vsub.f32 %v4197_v1, %v4213_v62  ;;  %v1053_v15 = vmul.f32 1.442695, %v993_v9 }
 0x1e6   :  { %3249 = vpow2.f32 %v1045_v18  ;;  %v971_v11 = vsub.f32 %v4148_v8, %v4231_v46  ;;  %v1005_v31 = vmul.f32 1.442695, %v969_v32  ;;  %v996_v45 = vsub.f32 %v4194_v20, %v4213_v62 }
 0x1e7   :  { %3251 = vpow2.f32 %v1047_v2  ;;  %v1055_v37 = vmul.f32 1.442695, %v994_v34  ;;  %v972_v3 = vsub.f32 %v4145_v42, %v4231_v46  ;;  %v1007_v1 = vmul.f32 1.442695, %v970_v36 }
 0x1e8   :  { %3253 = vpow2.f32 %v997_v35  ;;  %v1057_v44 = vmul.f32 1.442695, %v995_v23  ;;  %v973_v8 = vsub.f32 %v4164_v51, %v4231_v46  ;;  %v1009_v6 = vmul.f32 1.442695, %v971_v11 }
 0x1e9   :  { %3255 = vpow2.f32 %v999_v5  ;;  %v1059_v20 = vmul.f32 1.442695, %v996_v45  ;;  %v974_v58 = vsub.f32 %v4161_v49, %v4231_v46  ;;  %v1011_v42 = vmul.f32 1.442695, %v972_v3 }
 0x1ea   :  { %3257 = vpow2.f32 %v1049_v60  ;;  %v975_v22 = vsub.f32 %v4181_v7, %v4231_v46  ;;  %v1013_v51 = vmul.f32 1.442695, %v973_v8  ;;  %v976_v12 = vsub.f32 %v4177_v55, %v4231_v46 }
 0x1eb   :  { %v3234_v63 = vpop.eup %3233  ;;  %3259 = vpow2.f32 %v1001_v14  ;;  %v1015_v49 = vmul.f32 1.442695, %v974_v58  ;;  %v977_v2 = vsub.f32 %v4191_v29, %v4231_v46  ;;  %v978_v39 = vsub.f32 %v4187_v19, %v4231_v46 }
 0x1ec   :  { %v3236_v0 = vpop.eup %3235  ;;  %3261 = vpow2.f32 %v1051_v57  ;;  %v1017_v35 = vmul.f32 1.442695, %v975_v22  ;;  %v1019_v9 = vmul.f32 1.442695, %v976_v12  ;;  %v980_v57 = vsub.f32 %v4206_v25, %v4231_v46 }
 0x1ed   :  { %v1082_v28 = vadd.f32 %v3236_v0, %v3234_v63  ;;  %v3238_v33 = vpop.eup %3237  ;;  %3263 = vpow2.f32 %v1003_v30  ;;  %v1021_v14 = vmul.f32 1.442695, %v977_v2  ;;  %v1023_v36 = vmul.f32 1.442695, %v978_v39 }
 0x1ee   :  { %v3240_v13 = vpop.eup %3239  ;;  %3265 = vpow2.f32 %v1053_v15  ;;  %v1027_v45 = vmul.f32 1.442695, %v980_v57 }
 0x1ef   :  { %v1083_v16 = vadd.f32 %v3238_v33, %v1082_v28  ;;  %v3242_v54 = vpop.eup %3241  ;;  %3267 = vpow2.f32 %v1005_v31  ;;  %v979_v28 = vsub.f32 %v4209_v21, %v4231_v46 }
 0x1f0   :  { %v3244_v26 = vpop.eup %3243  ;;  %3269 = vpow2.f32 %v1055_v37 }
 0x1f1   :  { %v1084_v53 = vadd.f32 %v3240_v13, %v1083_v16  ;;  %v3246_v59 = vpop.eup %3245  ;;  %3271 = vpow2.f32 %v1007_v1 }
 0x1f2   :  { %v3248_v43 = vpop.eup %3247  ;;  %3273 = vpow2.f32 %v1057_v44 }
 0x1f3   :  { %v1085_v52 = vadd.f32 %v3242_v54, %v1084_v53  ;;  %v3250_v27 = vpop.eup %3249  ;;  %3275 = vpow2.f32 %v1009_v6  ;;  %v1025_v53 = vmul.f32 1.442695, %v979_v28 }
 0x1f4   :  { %v3252_v17 = vpop.eup %3251  ;;  %3277 = vpow2.f32 %v1059_v20 }
 0x1f5   :  { %v1086_v47 = vadd.f32 %v3244_v26, %v1085_v52  ;;  %v3254_v56 = vpop.eup %3253  ;;  %3279 = vpow2.f32 %v1011_v42 }
 0x1f6   :  { %v3256_v18 = vpop.eup %3255  ;;  %3281 = vpow2.f32 %v1013_v51 }
 0x1f7   :  { %v1087_v38 = vadd.f32 %v3246_v59, %v1086_v47  ;;  %v3258_v48 = vpop.eup %3257  ;;  %v1061_v7 = vadd.f32 %v3256_v18, %v3254_v56  ;;  %3283 = vpow2.f32 %v1015_v49 }
 0x1f8   :  { %v3260_v63 = vpop.eup %3259  ;;  %3285 = vpow2.f32 %v1017_v35 }
 0x1f9   :  { %v1088_v24 = vadd.f32 %v3248_v43, %v1087_v38  ;;  %v3262_v5 = vpop.eup %3261  ;;  %v1062_v55 = vadd.f32 %v3260_v63, %v1061_v7  ;;  %3287 = vpow2.f32 %v1019_v9 }
 0x1fa   :  { %v3264_v60 = vpop.eup %3263  ;;  %3289 = vpow2.f32 %v1021_v14 }
 0x1fb   :  { %v1089_v4 = vadd.f32 %v3250_v27, %v1088_v24  ;;  %v3266_v32 = vpop.eup %3265  ;;  %v1063_v33 = vadd.f32 %v3264_v60, %v1062_v55  ;;  %3291 = vpow2.f32 %v1023_v36  ;;  %v1120_v55 = vpop.permute.xlu1 %1119 }
 0x1fc   :  { %v3268_v34 = vpop.eup %3267  ;;  %3293 = vpow2.f32 %v1025_v53  ;;  %vm1122_vm7 = vcmp.eq.s32.totalorder %v1120_v55, 1  ;;  %v4388_v55 = vld [vmem:[%s5789_s5 + $0x30] sm:$0xff] }
 0x1fd   :  { %v1090_v40 = vadd.f32 %v3252_v17, %v1089_v4  ;;  %v3270_v16 = vpop.eup %3269  ;;  %v1064_v30 = vadd.f32 %v3268_v34, %v1063_v33  ;;  %3295 = vpow2.f32 %v1027_v45  ;;  %v753_v33 = vld [vmem:[%s5784_s0 + $0x2] sm:$0x1] }
 0x1fe   :  { %v3272_v13 = vpop.eup %3271 }
 0x1ff   :  { %v1091_v0 = vadd.f32 %v3258_v48, %v1090_v40  ;;  %v3274_v23 = vpop.eup %3273  ;;  %v1065_v21 = vadd.f32 %v3272_v13, %v1064_v30 }
 0x200   :  { %v3276_v11 = vpop.eup %3275 }
 0x201   :  { %v1092_v29 = vadd.f32 %v3262_v5, %v1091_v0  ;;  %v3278_v31 = vpop.eup %3277  ;;  %v1066_v37 = vadd.f32 %v3276_v11, %v1065_v21  ;;  %v754_v0 = vld [vmem:[%s5784_s0 + $0xa] sm:$0x1] }
 0x202   :  { %v3280_v52 = vpop.eup %3279 }
 0x203   :  { %v1093_v19 = vadd.f32 %v3266_v32, %v1092_v29  ;;  %v1067_v25 = vadd.f32 %v3280_v52, %v1066_v37  ;;  %v3282_v1 = vpop.eup %3281 }
 0x204   :  { %v3284_v47 = vpop.eup %3283 }
 0x205   :  { %v1094_v15 = vadd.f32 %v3270_v16, %v1093_v19  ;;  %v1068_v26 = vadd.f32 %v3282_v1, %v1067_v25  ;;  %v3286_v59 = vpop.eup %3285 }
 0x206   :  { %v3288_v58 = vpop.eup %3287 }
 0x207   :  { %v1095_v54 = vadd.f32 %v3274_v23, %v1094_v15  ;;  %v1069_v8 = vadd.f32 %v3284_v47, %v1068_v26  ;;  %v3290_v27 = vpop.eup %3289 }
 0x208   :  { %v3292_v51 = vpop.eup %3291 }
 0x209   :  { %v1096_v3 = vadd.f32 %v3278_v31, %v1095_v54  ;;  %v1070_v20 = vadd.f32 %v3286_v59, %v1069_v8  ;;  %v3294_v4 = vpop.eup %3293 }
 0x20a   :  { %v3296_v49 = vpop.eup %3295 }
 0x20b   :  { %v1097_v44 = vrot.slane %v1096_v3, 4  ;;  %v1071_v42 = vadd.f32 %v3288_v58, %v1070_v20 }
 0x20d   :  { %v1098_v6 = vadd.f32 %v1097_v44, %v1096_v3  ;;  %v1072_v24 = vadd.f32 %v3290_v27, %v1071_v42  ;;  %v4318_v42 = vld [vmem:[%s5789_s5 + $0x10] sm:$0xff]  ;;  %v4326_v27 = vld [vmem:[%s5789_s5 + $0x8] sm:$0xff] }
 0x20f   :  { %v1099_v38 = vrot.slane %v1098_v6, 2  ;;  %v1073_v17 = vadd.f32 %v3292_v51, %v1072_v24 }
 0x211   :  { %v1100_v43 = vadd.f32 %v1099_v38, %v1098_v6  ;;  %v1074_v12 = vadd.f32 %v3294_v4, %v1073_v17  ;;  %v4310_v38 = vld [vmem:[%s5789_s5 + $0x18] sm:$0xff]  ;;  %v4342_v17 = vld [vmem:[%s5789_s5 + $0x28] sm:$0xff] }
 0x213   :  { %v1101_v22 = vrot.slane %v1100_v43, 1  ;;  %v1075_v18 = vadd.f32 %v3296_v49, %v1074_v12 }
 0x215   :  { %v1102_v56 = vadd.f32 %v1101_v22, %v1100_v43  ;;  %v1076_v2 = vrot.slane %v1075_v18, 4  ;;  %v4334_v22 = vld [vmem:[%s5789_s5] sm:$0xff] }
 0x217   :  { %3297 = vlog2.f32 %v1102_v56  ;;  %v1077_v48 = vadd.f32 %v1076_v2, %v1075_v18  ;;  %v4356_v2 = vld [vmem:[%s5789_s5 + $0x20] sm:$0xff] }
 0x219   :  { %v1078_v40 = vrot.slane %v1077_v48, 2 }
 0x21b   :  { %v1079_v35 = vadd.f32 %v1078_v40, %v1077_v48 }
 0x21d   :  { %v1080_v7 = vrot.slane %v1079_v35, 1 }
 0x21f   :  { %v1081_v39 = vadd.f32 %v1080_v7, %v1079_v35 }
 0x221   :  { %3299 = vlog2.f32 %v1081_v39 }
 0x224   :  { %v3298_v63 = vpop.eup %3297 }
 0x225   :  { %v1106_v5 = vmul.f32 0.6931472, %v3298_v63  ;;  %v4371_v63 = vld [vmem:[%s5789_s5 + $0x38] sm:$0xff] }
 0x227   :  { %v1108_v9 = vadd.f32 %v1106_v5, %v4213_v62  ;;  %v1117_v62 = vpop.permute.xlu0 %1116 }
 0x228   :  { %vm1121_vm8 = vcmp.eq.s32.totalorder %v1117_v62, 1 }
 0x229   :  { %v1110_v60 = vadd.f32 %v1108_v9, %v754_v0 }
 0x22b   :  { %v4286_v28 = vsel %vm1122_vm7, %v1110_v60, %v4064_v50 }
 0x22c   :  { %v1199_v32 = vrot.slane %v4286_v28, %v3769_v10 }
 0x22e   :  { %1205 = vbcast.lane.b32.xlu0 %v1199_v32, 264  ;;  %1201 = vbcast.lane.b32.xlu1 %v1199_v32, 256  ;;  %v3300_v29 = vpop.eup %3299 }
 0x22f   :  { %v1104_v14 = vmul.f32 0.6931472, %v3300_v29  ;;  %v4397_v29 = vld [vmem:[%s5789_s5 + $0x48] sm:$0xff] }
 0x230   :  { %5843 = vst [vmem:[#allocation7_spill] sm:$0xff] %v4397_v29 }
 0x231   :  { %v1107_v34 = vadd.f32 %v1104_v14, %v4231_v46  ;;  %v1128_v46 = vld [vmem:[%s5786_s2 + $0xb] sm:$0x1] }
 0x232   :  { %1213 = vbcast.lane.b32.xlu0 %v1199_v32, 280  ;;  %1209 = vbcast.lane.b32.xlu1 %v1199_v32, 272  ;;  %vm1484_vm10 = vcmp.gt.s32.totalorder %v1128_v46, 0 }
 0x233   :  { %v1109_v57 = vadd.f32 %v1107_v34, %v753_v33  ;;  %v1486_v36 = vsel %vm1484_vm10, 1, %v5838_v41 }
 0x235   :  { %v4295_v50 = vsel %vm1121_vm8, %v1109_v57, %v4073_v61  ;;  %v1127_v61 = vld [vmem:[%s5786_s2 + $0x3] sm:$0x1]  ;;  %vm3710_vm8 = vmmov 0  }
 0x236   :  { %v1132_v16 = vrot.slane %v4295_v50, %v3769_v10  ;;  %vm1483_vm9 = vcmp.gt.s32.totalorder %v1127_v61, 0  ;;  %v4410_v61 = vld [vmem:[%s5789_s5 + $0x40] sm:$0xff] }
 0x237   :  { %v1485_v19 = vsel %vm1483_vm9, 1, %v5838_v41  ;;  %5844 = vst [vmem:[#allocation8_spill] sm:$0xff] %v4410_v61 }
 0x238   :  { %1138 = vbcast.lane.b32.xlu0 %v1132_v16, 264  ;;  %1134 = vbcast.lane.b32.xlu1 %v1132_v16, 256 }
 0x23c   :  { %1146 = vbcast.lane.b32.xlu0 %v1132_v16, 280  ;;  %1142 = vbcast.lane.b32.xlu1 %v1132_v16, 272 }
 0x240   :  { %1221 = vbcast.lane.b32.xlu0 %v1199_v32, 296  ;;  %1217 = vbcast.lane.b32.xlu1 %v1199_v32, 288 }
 0x244   :  { %1154 = vbcast.lane.b32.xlu0 %v1132_v16, 296  ;;  %1150 = vbcast.lane.b32.xlu1 %v1132_v16, 288 }
 0x248   :  { %1229 = vbcast.lane.b32.xlu0 %v1199_v32, 312  ;;  %1225 = vbcast.lane.b32.xlu1 %v1199_v32, 304 }
 0x24c   :  { %1162 = vbcast.lane.b32.xlu0 %v1132_v16, 312  ;;  %1158 = vbcast.lane.b32.xlu1 %v1132_v16, 304 }
 0x250   :  { %1237 = vbcast.lane.b32.xlu0 %v1199_v32, 328  ;;  %1233 = vbcast.lane.b32.xlu1 %v1199_v32, 320 }
 0x254   :  { %1170 = vbcast.lane.b32.xlu0 %v1132_v16, 328  ;;  %1166 = vbcast.lane.b32.xlu1 %v1132_v16, 320 }
 0x258   :  { %1245 = vbcast.lane.b32.xlu0 %v1199_v32, 344  ;;  %1241 = vbcast.lane.b32.xlu1 %v1199_v32, 336 }
 0x25c   :  { %1178 = vbcast.lane.b32.xlu0 %v1132_v16, 344  ;;  %1174 = vbcast.lane.b32.xlu1 %v1132_v16, 336 }
 0x260   :  { %1253 = vbcast.lane.b32.xlu0 %v1199_v32, 360  ;;  %1249 = vbcast.lane.b32.xlu1 %v1199_v32, 352 }
 0x264   :  { %1186 = vbcast.lane.b32.xlu0 %v1132_v16, 360  ;;  %1182 = vbcast.lane.b32.xlu1 %v1132_v16, 352 }
 0x268   :  { %1261 = vbcast.lane.b32.xlu0 %v1199_v32, 376  ;;  %1257 = vbcast.lane.b32.xlu1 %v1199_v32, 368 }
 0x26c   :  { %1194 = vbcast.lane.b32.xlu0 %v1132_v16, 376  ;;  %1190 = vbcast.lane.b32.xlu1 %v1132_v16, 368 }
 0x270   :  { %1488 = vperm.xlu0 %3163, %v1485_v19   ;;  %1491 = vperm.xlu1 %3164, %v1486_v36  }
 0x2a0   :  { %v1206_v30 = vpop.permute.xlu0 %1205  ;;  %v1202_v13 = vpop.permute.xlu1 %1201 }
 0x2a1   :  { %v4329_v24 = vadd.f32 %v4326_v27, %v1206_v30  ;;  %v4337_v51 = vadd.f32 %v4334_v22, %v1202_v13  ;;  %v4425_v13 = vld [vmem:[%s5789_s5 + $0x58] sm:$0xff] }
 0x2a2   :  { %5845 = vst [vmem:[#allocation9_spill] sm:$0xff] %v4425_v13 }
 0x2a4   :  { %v1214_v23 = vpop.permute.xlu0 %1213  ;;  %v1210_v15 = vpop.permute.xlu1 %1209 }
 0x2a5   :  { %v4313_v58 = vadd.f32 %v4310_v38, %v1214_v23  ;;  %v4321_v43 = vadd.f32 %v4318_v42, %v1210_v15 }
 0x2a7   :  { %v1317_v40 = vmax.f32 %v4329_v24, %v4313_v58  ;;  %v1316_v35 = vmax.f32 %v4337_v51, %v4321_v43 }
 0x2aa   :  { %v1139_v53 = vpop.permute.xlu0 %1138  ;;  %v1135_v21 = vpop.permute.xlu1 %1134 }
 0x2ab   :  { %v4366_v7 = vadd.f32 %v4326_v27, %v1139_v53  ;;  %v4377_v5 = vadd.f32 %v4334_v22, %v1135_v21 }
 0x2ae   :  { %v1147_v11 = vpop.permute.xlu0 %1146  ;;  %v1143_v31 = vpop.permute.xlu1 %1142 }
 0x2af   :  { %v4348_v49 = vadd.f32 %v4310_v38, %v1147_v11  ;;  %v4351_v18 = vadd.f32 %v4318_v42, %v1143_v31  ;;  %v4436_v11 = vld [vmem:[%s5789_s5 + $0x50] sm:$0xff] }
 0x2b0   :  { %5846 = vst [vmem:[#allocation10_spill] sm:$0xff] %v4436_v11 }
 0x2b1   :  { %v1296_v34 = vmax.f32 %v4366_v7, %v4348_v49  ;;  %v1295_v57 = vmax.f32 %v4377_v5, %v4351_v18 }
 0x2b2   :  { %v1222_v54 = vpop.permute.xlu0 %1221  ;;  %v1218_v45 = vpop.permute.xlu1 %1217 }
 0x2b3   :  { %v4345_v56 = vadd.f32 %v4342_v17, %v1222_v54  ;;  %v4359_v48 = vadd.f32 %v4356_v2, %v1218_v45 }
 0x2b5   :  { %v1319_v32 = vmax.f32 %v1317_v40, %v4345_v56  ;;  %v1318_v16 = vmax.f32 %v1316_v35, %v4359_v48 }
 0x2b6   :  { %v1155_v37 = vpop.permute.xlu0 %1154  ;;  %v1151_v52 = vpop.permute.xlu1 %1150 }
 0x2b7   :  { %v4380_v0 = vadd.f32 %v4342_v17, %v1155_v37  ;;  %v4383_v9 = vadd.f32 %v4356_v2, %v1151_v52  ;;  %v4451_v52 = vld [vmem:[%s5789_s5 + $0x68] sm:$0xff] }
 0x2b8   :  { %5847 = vst [vmem:[#allocation11_spill] sm:$0xff] %v4451_v52 }
 0x2b9   :  { %v1298_v15 = vmax.f32 %v1296_v34, %v4380_v0  ;;  %v1297_v53 = vmax.f32 %v1295_v57, %v4383_v9 }
 0x2ba   :  { %v1230_v3 = vpop.permute.xlu0 %1229  ;;  %v1226_v25 = vpop.permute.xlu1 %1225 }
 0x2bb   :  { %v4374_v39 = vadd.f32 %v4371_v63, %v1230_v3  ;;  %v4391_v60 = vadd.f32 %v4388_v55, %v1226_v25 }
 0x2bd   :  { %v1321_v19 = vmax.f32 %v1319_v32, %v4374_v39  ;;  %v1320_v21 = vmax.f32 %v1318_v16, %v4391_v60 }
 0x2be   :  { %v1163_v1 = vpop.permute.xlu0 %1162  ;;  %v1159_v26 = vpop.permute.xlu1 %1158 }
 0x2bf   :  { %v4417_v36 = vadd.f32 %v4371_v63, %v1163_v1  ;;  %v4420_v30 = vadd.f32 %v4388_v55, %v1159_v26 }
 0x2c2   :  { %v1238_v44 = vpop.permute.xlu0 %1237  ;;  %v1234_v47 = vpop.permute.xlu1 %1233 }
 0x2c3   :  { %v4400_v14 = vadd.f32 %v4397_v29, %v1238_v44  ;;  %v4413_v46 = vadd.f32 %v4410_v61, %v1234_v47  ;;  %v4460_v44 = vld [vmem:[%s5789_s5 + $0x60] sm:$0xff] }
 0x2c4   :  { %5848 = vst [vmem:[#allocation12_spill] sm:$0xff] %v4460_v44 }
 0x2c5   :  { %v1323_v54 = vmax.f32 %v1321_v19, %v4400_v14  ;;  %v1322_v26 = vmax.f32 %v1320_v21, %v4413_v46 }
 0x2c6   :  { %v1171_v8 = vpop.permute.xlu0 %1170  ;;  %v1167_v6 = vpop.permute.xlu1 %1166 }
 0x2c7   :  { %v4443_v45 = vadd.f32 %v4397_v29, %v1171_v8  ;;  %v4446_v37 = vadd.f32 %v4410_v61, %v1167_v6  ;;  %v1300_v8 = vmax.f32 %v1298_v15, %v4417_v36  ;;  %v1299_v6 = vmax.f32 %v1297_v53, %v4420_v30  ;;  %v4496_v53 = vld [vmem:[%s5789_s5 + $0x70] sm:$0xff] }
 0x2c9   :  { %v1302_v32 = vmax.f32 %v1300_v8, %v4443_v45 }
 0x2ca   :  { %v1246_v59 = vpop.permute.xlu0 %1245  ;;  %v1242_v20 = vpop.permute.xlu1 %1241 }
 0x2cb   :  { %v4428_v23 = vadd.f32 %v4425_v13, %v1246_v59  ;;  %v4439_v31 = vadd.f32 %v4436_v11, %v1242_v20 }
 0x2cd   :  { %v1325_v59 = vmax.f32 %v1323_v54, %v4428_v23  ;;  %v1324_v40 = vmax.f32 %v1322_v26, %v4439_v31 }
 0x2ce   :  { %v1179_v4 = vpop.permute.xlu0 %1178  ;;  %v1175_v12 = vpop.permute.xlu1 %1174 }
 0x2cf   :  { %v4469_v20 = vadd.f32 %v4425_v13, %v1179_v4  ;;  %v4473_v35 = vadd.f32 %v4436_v11, %v1175_v12  ;;  %v4488_v12 = vld [vmem:[%s5789_s5 + $0x78] sm:$0xff] }
 0x2d1   :  { %v1304_v54 = vmax.f32 %v1302_v32, %v4469_v20 }
 0x2d2   :  { %v1254_v33 = vpop.permute.xlu0 %1253  ;;  %v1250_v62 = vpop.permute.xlu1 %1249 }
 0x2d3   :  { %v4454_v3 = vadd.f32 %v4451_v52, %v1254_v33  ;;  %v4463_v47 = vadd.f32 %v4460_v44, %v1250_v62  ;;  %v1301_v33 = vmax.f32 %v1299_v6, %v4446_v37 }
 0x2d5   :  { %v1327_v62 = vmax.f32 %v1325_v59, %v4454_v3  ;;  %v1326_v19 = vmax.f32 %v1324_v40, %v4463_v47 }
 0x2d6   :  { %v1187_v25 = vpop.permute.xlu0 %1186  ;;  %v1183_v1 = vpop.permute.xlu1 %1182 }
 0x2d7   :  { %v4479_v34 = vadd.f32 %v4451_v52, %v1187_v25  ;;  %v4483_v4 = vadd.f32 %v4460_v44, %v1183_v1  ;;  %v1303_v25 = vmax.f32 %v1301_v33, %v4473_v35 }
 0x2d9   :  { %v1306_v8 = vmax.f32 %v1304_v54, %v4479_v34  ;;  %v1305_v40 = vmax.f32 %v1303_v25, %v4483_v4 }
 0x2da   :  { %v1262_v57 = vpop.permute.xlu0 %1261  ;;  %v1258_v16 = vpop.permute.xlu1 %1257 }
 0x2db   :  { %v4491_v15 = vadd.f32 %v4488_v12, %v1262_v57  ;;  %v4499_v21 = vadd.f32 %v4496_v53, %v1258_v16 }
 0x2dd   :  { %v1329_v1 = vmax.f32 %v1327_v62, %v4491_v15  ;;  %v1328_v26 = vmax.f32 %v1326_v19, %v4499_v21 }
 0x2de   :  { %v1195_v6 = vpop.permute.xlu0 %1194  ;;  %v1191_v59 = vpop.permute.xlu1 %1190 }
 0x2df   :  { %v1330_v57 = vmax.f32 %v1328_v26, %v1329_v1  ;;  %v4508_v44 = vadd.f32 %v4488_v12, %v1195_v6  ;;  %v4511_v16 = vadd.f32 %v4496_v53, %v1191_v59 }
 0x2e1   :  { %v1331_v32 = vrot.slane %v1330_v57, 4  ;;  %v1308_v33 = vmax.f32 %v1306_v8, %v4508_v44  ;;  %v1307_v62 = vmax.f32 %v1305_v40, %v4511_v16 }
 0x2e3   :  { %v1332_v52 = vmax.f32 %v1330_v57, %v1331_v32  ;;  %v1309_v19 = vmax.f32 %v1307_v62, %v1308_v33 }
 0x2e5   :  { %v1333_v11 = vrot.slane %v1332_v52, 2  ;;  %v1310_v54 = vrot.slane %v1309_v19, 4 }
 0x2e7   :  { %v1334_v13 = vmax.f32 %v1332_v52, %v1333_v11  ;;  %v1311_v29 = vmax.f32 %v1309_v19, %v1310_v54 }
 0x2e9   :  { %v1335_v61 = vrot.slane %v1334_v13, 1  ;;  %v1312_v6 = vrot.slane %v1311_v29, 2 }
 0x2eb   :  { %v4515_v25 = vmax.f32 %v1334_v13, %v1335_v61  ;;  %v1313_v13 = vmax.f32 %v1311_v29, %v1312_v6 }
 0x2ed   :  { %v1353_v1 = vsub.f32 %v4337_v51, %v4515_v25  ;;  %v1354_v26 = vsub.f32 %v4329_v24, %v4515_v25  ;;  %v1355_v8 = vsub.f32 %v4321_v43, %v4515_v25  ;;  %v1356_v59 = vsub.f32 %v4313_v58, %v4515_v25 }
 0x2ee   :  { %v1357_v11 = vsub.f32 %v4359_v48, %v4515_v25  ;;  %v1358_v51 = vsub.f32 %v4345_v56, %v4515_v25  ;;  %v1359_v43 = vsub.f32 %v4391_v60, %v4515_v25  ;;  %v1314_v32 = vrot.slane %v1313_v13, 1 }
 0x2ef   :  { %v1401_v40 = vmul.f32 1.442695, %v1353_v1  ;;  %v1403_v57 = vmul.f32 1.442695, %v1354_v26  ;;  %v1405_v61 = vmul.f32 1.442695, %v1355_v8  ;;  %v1360_v58 = vsub.f32 %v4374_v39, %v4515_v25 }
 0x2f0   :  { %v1407_v24 = vmul.f32 1.442695, %v1356_v59  ;;  %v1409_v52 = vmul.f32 1.442695, %v1357_v11  ;;  %v1411_v33 = vmul.f32 1.442695, %v1358_v51  ;;  %v4533_v48 = vmax.f32 %v1313_v13, %v1314_v32 }
 0x2f1   :  { %3301 = vpow2.f32 %v1401_v40  ;;  %v1361_v29 = vsub.f32 %v4413_v46, %v4515_v25  ;;  %v1362_v56 = vsub.f32 %v4400_v14, %v4515_v25  ;;  %v1413_v62 = vmul.f32 1.442695, %v1359_v43 }
 0x2f2   :  { %3303 = vpow2.f32 %v1403_v57  ;;  %v1337_v60 = vsub.f32 %v4377_v5, %v4533_v48  ;;  %v1415_v19 = vmul.f32 1.442695, %v1360_v58  ;;  %v1338_v39 = vsub.f32 %v4366_v7, %v4533_v48 }
 0x2f3   :  { %3305 = vpow2.f32 %v1405_v61  ;;  %v1363_v54 = vsub.f32 %v4439_v31, %v4515_v25  ;;  %v1417_v1 = vmul.f32 1.442695, %v1361_v29  ;;  %v1419_v26 = vmul.f32 1.442695, %v1362_v56 }
 0x2f4   :  { %3307 = vpow2.f32 %v1407_v24  ;;  %v1339_v46 = vsub.f32 %v4351_v18, %v4533_v48  ;;  %v1364_v14 = vsub.f32 %v4428_v23, %v4515_v25  ;;  %v1369_v8 = vmul.f32 1.442695, %v1337_v60 }
 0x2f5   :  { %3309 = vpow2.f32 %v1409_v52  ;;  %v1340_v5 = vsub.f32 %v4348_v49, %v4533_v48  ;;  %v1371_v59 = vmul.f32 1.442695, %v1338_v39  ;;  %v1365_v31 = vsub.f32 %v4463_v47, %v4515_v25 }
 0x2f6   :  { %3311 = vpow2.f32 %v1411_v33  ;;  %v1421_v40 = vmul.f32 1.442695, %v1363_v54  ;;  %v1341_v18 = vsub.f32 %v4383_v9, %v4533_v48  ;;  %v1373_v11 = vmul.f32 1.442695, %v1339_v46 }
 0x2f7   :  { %3313 = vpow2.f32 %v1413_v62  ;;  %v1366_v61 = vsub.f32 %v4454_v3, %v4515_v25  ;;  %v1423_v13 = vmul.f32 1.442695, %v1364_v14  ;;  %v1342_v51 = vsub.f32 %v4380_v0, %v4533_v48 }
 0x2f8   :  { %3315 = vpow2.f32 %v1415_v19  ;;  %v1375_v47 = vmul.f32 1.442695, %v1340_v5  ;;  %v1367_v43 = vsub.f32 %v4499_v21, %v4515_v25  ;;  %v1425_v52 = vmul.f32 1.442695, %v1365_v31 }
 0x2f9   :  { %3317 = vpow2.f32 %v1417_v1  ;;  %v1343_v32 = vsub.f32 %v4420_v30, %v4533_v48  ;;  %v1377_v3 = vmul.f32 1.442695, %v1341_v18  ;;  %v1368_v33 = vsub.f32 %v4491_v15, %v4515_v25 }
 0x2fa   :  { %3319 = vpow2.f32 %v1419_v26  ;;  %v1427_v0 = vmul.f32 1.442695, %v1366_v61  ;;  %v1344_v56 = vsub.f32 %v4417_v36, %v4533_v48  ;;  %v1379_v21 = vmul.f32 1.442695, %v1342_v51 }
 0x2fb   :  { %3321 = vpow2.f32 %v1369_v8  ;;  %v1429_v60 = vmul.f32 1.442695, %v1367_v43  ;;  %v1345_v30 = vsub.f32 %v4446_v37, %v4533_v48  ;;  %v1381_v39 = vmul.f32 1.442695, %v1343_v32 }
 0x2fc   :  { %3323 = vpow2.f32 %v1371_v59  ;;  %v1431_v15 = vmul.f32 1.442695, %v1368_v33  ;;  %v1346_v26 = vsub.f32 %v4443_v45, %v4533_v48  ;;  %v1383_v36 = vmul.f32 1.442695, %v1344_v56 }
 0x2fd   :  { %3325 = vpow2.f32 %v1421_v40  ;;  %v1385_v37 = vmul.f32 1.442695, %v1345_v30  ;;  %v1348_v31 = vsub.f32 %v4469_v20, %v4533_v48  ;;  %v1351_v43 = vsub.f32 %v4511_v16, %v4533_v48 }
 0x2fe   :  { %v3302_v6 = vpop.eup %3301  ;;  %3327 = vpow2.f32 %v1373_v11  ;;  %v1387_v45 = vmul.f32 1.442695, %v1346_v26 }
 0x2ff   :  { %v3304_v7 = vpop.eup %3303  ;;  %3329 = vpow2.f32 %v1423_v13  ;;  %v1350_v13 = vsub.f32 %v4479_v34, %v4533_v48 }
 0x300   :  { %v1454_v57 = vadd.f32 %v3304_v7, %v3302_v6  ;;  %v3306_v23 = vpop.eup %3305  ;;  %3331 = vpow2.f32 %v1375_v47  ;;  %v1347_v6 = vsub.f32 %v4473_v35, %v4533_v48  ;;  %v1391_v47 = vmul.f32 1.442695, %v1348_v31 }
 0x301   :  { %v3308_v24 = vpop.eup %3307  ;;  %3333 = vpow2.f32 %v1425_v52 }
 0x302   :  { %v1455_v49 = vadd.f32 %v3306_v23, %v1454_v57  ;;  %v3310_v58 = vpop.eup %3309  ;;  %3335 = vpow2.f32 %v1377_v3  ;;  %v1349_v57 = vsub.f32 %v4483_v4, %v4533_v48  ;;  %v1389_v23 = vmul.f32 1.442695, %v1347_v6 }
 0x303   :  { %v3312_v62 = vpop.eup %3311  ;;  %3337 = vpow2.f32 %v1427_v0  ;;  %v1395_v0 = vmul.f32 1.442695, %v1350_v13 }
 0x304   :  { %v1456_v9 = vadd.f32 %v3308_v24, %v1455_v49  ;;  %v3314_v54 = vpop.eup %3313  ;;  %3339 = vpow2.f32 %v1379_v21 }
 0x305   :  { %v3316_v46 = vpop.eup %3315  ;;  %3341 = vpow2.f32 %v1429_v60  ;;  %v1397_v60 = vmul.f32 1.442695, %v1351_v43 }
 0x306   :  { %v1457_v29 = vadd.f32 %v3310_v58, %v1456_v9  ;;  %v3318_v14 = vpop.eup %3317  ;;  %3343 = vpow2.f32 %v1381_v39  ;;  %v1393_v9 = vmul.f32 1.442695, %v1349_v57  ;;  %v1352_v58 = vsub.f32 %v4508_v44, %v4533_v48 }
 0x307   :  { %v3320_v5 = vpop.eup %3319  ;;  %3345 = vpow2.f32 %v1431_v15 }
 0x308   :  { %v1458_v19 = vadd.f32 %v3312_v62, %v1457_v29  ;;  %v3322_v59 = vpop.eup %3321  ;;  %3347 = vpow2.f32 %v1383_v36 }
 0x309   :  { %v3324_v40 = vpop.eup %3323  ;;  %3349 = vpow2.f32 %v1385_v37 }
 0x30a   :  { %v1459_v1 = vadd.f32 %v3314_v54, %v1458_v19  ;;  %v3326_v18 = vpop.eup %3325  ;;  %v1433_v35 = vadd.f32 %v3324_v40, %v3322_v59  ;;  %3351 = vpow2.f32 %v1387_v45  ;;  %v1399_v54 = vmul.f32 1.442695, %v1352_v58  ;;  %v1126_v58 = vld [vmem:[%s5784_s0 + $0xb] sm:$0x1] }
 0x30b   :  { %v3328_v61 = vpop.eup %3327  ;;  %3353 = vpow2.f32 %v1389_v23 }
 0x30c   :  { %v1460_v8 = vadd.f32 %v3316_v46, %v1459_v1  ;;  %v3330_v49 = vpop.eup %3329  ;;  %v1434_v20 = vadd.f32 %v3328_v61, %v1433_v35  ;;  %3355 = vpow2.f32 %v1391_v47 }
 0x30d   :  { %v3332_v24 = vpop.eup %3331  ;;  %3357 = vpow2.f32 %v1393_v9 }
 0x30e   :  { %v1461_v7 = vadd.f32 %v3318_v14, %v1460_v8  ;;  %v3334_v52 = vpop.eup %3333  ;;  %v1435_v32 = vadd.f32 %v3332_v24, %v1434_v20  ;;  %3359 = vpow2.f32 %v1395_v0 }
 0x30f   :  { %v3336_v3 = vpop.eup %3335  ;;  %3361 = vpow2.f32 %v1397_v60  ;;  %v1125_v60 = vld [vmem:[%s5784_s0 + $0x3] sm:$0x1] }
 0x310   :  { %v1462_v11 = vadd.f32 %v3320_v5, %v1461_v7  ;;  %v3338_v33 = vpop.eup %3337  ;;  %v1436_v29 = vadd.f32 %v3336_v3, %v1435_v32  ;;  %3363 = vpow2.f32 %v1399_v54 }
 0x311   :  { %v3340_v56 = vpop.eup %3339 }
 0x312   :  { %v1463_v51 = vadd.f32 %v3326_v18, %v1462_v11  ;;  %v3342_v21 = vpop.eup %3341  ;;  %v1437_v16 = vadd.f32 %v3340_v56, %v1436_v29 }
 0x313   :  { %v3344_v19 = vpop.eup %3343 }
 0x314   :  { %v1464_v4 = vadd.f32 %v3330_v49, %v1463_v51  ;;  %v3346_v30 = vpop.eup %3345  ;;  %v1438_v15 = vadd.f32 %v3344_v19, %v1437_v16 }
 0x315   :  { %v3348_v1 = vpop.eup %3347 }
 0x316   :  { %v1465_v34 = vadd.f32 %v3334_v52, %v1464_v4  ;;  %v1439_v44 = vadd.f32 %v3348_v1, %v1438_v15  ;;  %v3350_v36 = vpop.eup %3349 }
 0x317   :  { %v3352_v8 = vpop.eup %3351 }
 0x318   :  { %v1466_v62 = vadd.f32 %v3338_v33, %v1465_v34  ;;  %v1440_v46 = vadd.f32 %v3350_v36, %v1439_v44  ;;  %v3354_v5 = vpop.eup %3353  ;;  %v1492_v34 = vpop.permute.xlu1 %1491 }
 0x319   :  { %v3356_v31 = vpop.eup %3355  ;;  %vm1494_vm11 = vcmp.eq.s32.totalorder %v1492_v34, 1 }
 0x31a   :  { %v1467_v39 = vadd.f32 %v3342_v21, %v1466_v62  ;;  %v1441_v6 = vadd.f32 %v3352_v8, %v1440_v46  ;;  %v3358_v57 = vpop.eup %3357 }
 0x31b   :  { %v3360_v23 = vpop.eup %3359 }
 0x31c   :  { %v1468_v26 = vadd.f32 %v3346_v30, %v1467_v39  ;;  %v1442_v59 = vadd.f32 %v3354_v5, %v1441_v6  ;;  %v3362_v13 = vpop.eup %3361 }
 0x31d   :  { %v3364_v51 = vpop.eup %3363 }
 0x31e   :  { %v1469_v14 = vrot.slane %v1468_v26, 4  ;;  %v1443_v45 = vadd.f32 %v3356_v31, %v1442_v59 }
 0x320   :  { %v1470_v37 = vadd.f32 %v1469_v14, %v1468_v26  ;;  %v1444_v18 = vadd.f32 %v3358_v57, %v1443_v45 }
 0x322   :  { %v1471_v7 = vrot.slane %v1470_v37, 2  ;;  %v1445_v35 = vadd.f32 %v3360_v23, %v1444_v18 }
 0x324   :  { %v1472_v40 = vadd.f32 %v1471_v7, %v1470_v37  ;;  %v1446_v49 = vadd.f32 %v3362_v13, %v1445_v35 }
 0x326   :  { %v1473_v11 = vrot.slane %v1472_v40, 1  ;;  %v1447_v47 = vadd.f32 %v3364_v51, %v1446_v49 }
 0x328   :  { %v1474_v61 = vadd.f32 %v1473_v11, %v1472_v40  ;;  %v1448_v20 = vrot.slane %v1447_v47, 4 }
 0x32a   :  { %3365 = vlog2.f32 %v1474_v61  ;;  %v1449_v24 = vadd.f32 %v1448_v20, %v1447_v47 }
 0x32c   :  { %v1450_v43 = vrot.slane %v1449_v24, 2 }
 0x32e   :  { %v1451_v52 = vadd.f32 %v1450_v43, %v1449_v24 }
 0x330   :  { %v1452_v4 = vrot.slane %v1451_v52, 1 }
 0x332   :  { %v1453_v32 = vadd.f32 %v1452_v4, %v1451_v52 }
 0x334   :  { %3367 = vlog2.f32 %v1453_v32 }
 0x337   :  { %v3366_v9 = vpop.eup %3365 }
 0x338   :  { %v1478_v3 = vmul.f32 0.6931472, %v3366_v9 }
 0x33a   :  { %v1480_v33 = vadd.f32 %v1478_v3, %v4515_v25  ;;  %v1489_v25 = vpop.permute.xlu0 %1488 }
 0x33b   :  { %vm1493_vm12 = vcmp.eq.s32.totalorder %v1489_v25, 1 }
 0x33c   :  { %v1482_v0 = vadd.f32 %v1480_v33, %v1126_v58 }
 0x33e   :  { %v4588_v29 = vsel %vm1494_vm11, %v1482_v0, %v4286_v28 }
 0x33f   :  { %v1571_v56 = vrot.slane %v4588_v29, %v3769_v10 }
 0x341   :  { %1577 = vbcast.lane.b32.xlu0 %v1571_v56, 264  ;;  %1573 = vbcast.lane.b32.xlu1 %v1571_v56, 256  ;;  %v3368_v21 = vpop.eup %3367 }
 0x342   :  { %v1476_v62 = vmul.f32 0.6931472, %v3368_v21  ;;  %v5849_v21 = vld [vmem:[#allocation7_spill] sm:$0xff] }
 0x344   :  { %v1479_v16 = vadd.f32 %v1476_v62, %v4533_v48  ;;  %v1500_v48 = vld [vmem:[%s5786_s2 + $0xc] sm:$0x1] }
 0x345   :  { %1585 = vbcast.lane.b32.xlu0 %v1571_v56, 280  ;;  %1581 = vbcast.lane.b32.xlu1 %v1571_v56, 272  ;;  %vm1856_vm14 = vcmp.gt.s32.totalorder %v1500_v48, 0  ;;  %v5851_v48 = vld [vmem:[#allocation9_spill] sm:$0xff] }
 0x346   :  { %v1481_v19 = vadd.f32 %v1479_v16, %v1125_v60  ;;  %v1858_v54 = vsel %vm1856_vm14, 1, %v5838_v41 }
 0x348   :  { %v4597_v28 = vsel %vm1493_vm12, %v1481_v19, %v4295_v50  ;;  %v1499_v50 = vld [vmem:[%s5786_s2 + $0x4] sm:$0x1] }
 0x349   :  { %v1504_v30 = vrot.slane %v4597_v28, %v3769_v10  ;;  %vm1855_vm13 = vcmp.gt.s32.totalorder %v1499_v50, 0 }
 0x34a   :  { %v1857_v39 = vsel %vm1855_vm13, 1, %v5838_v41 }
 0x34b   :  { %1510 = vbcast.lane.b32.xlu0 %v1504_v30, 264  ;;  %1506 = vbcast.lane.b32.xlu1 %v1504_v30, 256 }
 0x34f   :  { %1518 = vbcast.lane.b32.xlu0 %v1504_v30, 280  ;;  %1514 = vbcast.lane.b32.xlu1 %v1504_v30, 272 }
 0x353   :  { %1593 = vbcast.lane.b32.xlu0 %v1571_v56, 296  ;;  %1589 = vbcast.lane.b32.xlu1 %v1571_v56, 288 }
 0x357   :  { %1526 = vbcast.lane.b32.xlu0 %v1504_v30, 296  ;;  %1522 = vbcast.lane.b32.xlu1 %v1504_v30, 288 }
 0x35b   :  { %1601 = vbcast.lane.b32.xlu0 %v1571_v56, 312  ;;  %1597 = vbcast.lane.b32.xlu1 %v1571_v56, 304 }
 0x35f   :  { %1534 = vbcast.lane.b32.xlu0 %v1504_v30, 312  ;;  %1530 = vbcast.lane.b32.xlu1 %v1504_v30, 304 }
 0x363   :  { %1609 = vbcast.lane.b32.xlu0 %v1571_v56, 328  ;;  %1605 = vbcast.lane.b32.xlu1 %v1571_v56, 320 }
 0x367   :  { %1542 = vbcast.lane.b32.xlu0 %v1504_v30, 328  ;;  %1538 = vbcast.lane.b32.xlu1 %v1504_v30, 320 }
 0x36b   :  { %1617 = vbcast.lane.b32.xlu0 %v1571_v56, 344  ;;  %1613 = vbcast.lane.b32.xlu1 %v1571_v56, 336 }
 0x36f   :  { %1550 = vbcast.lane.b32.xlu0 %v1504_v30, 344  ;;  %1546 = vbcast.lane.b32.xlu1 %v1504_v30, 336 }
 0x373   :  { %1625 = vbcast.lane.b32.xlu0 %v1571_v56, 360  ;;  %1621 = vbcast.lane.b32.xlu1 %v1571_v56, 352 }
 0x377   :  { %1558 = vbcast.lane.b32.xlu0 %v1504_v30, 360  ;;  %1554 = vbcast.lane.b32.xlu1 %v1504_v30, 352 }
 0x37b   :  { %1633 = vbcast.lane.b32.xlu0 %v1571_v56, 376  ;;  %1629 = vbcast.lane.b32.xlu1 %v1571_v56, 368 }
 0x37f   :  { %1566 = vbcast.lane.b32.xlu0 %v1504_v30, 376  ;;  %1562 = vbcast.lane.b32.xlu1 %v1504_v30, 368 }
 0x383   :  { %1860 = vperm.xlu0 %3163, %v1857_v39   ;;  %1863 = vperm.xlu1 %3164, %v1858_v54  }
 0x3b3   :  { %v1578_v15 = vpop.permute.xlu0 %1577  ;;  %v1574_v1 = vpop.permute.xlu1 %1573 }
 0x3b4   :  { %v4616_v51 = vadd.f32 %v4326_v27, %v1578_v15  ;;  %v4619_v47 = vadd.f32 %v4334_v22, %v1574_v1 }
 0x3b7   :  { %v1586_v26 = vpop.permute.xlu0 %1585  ;;  %v1582_v44 = vpop.permute.xlu1 %1581 }
 0x3b8   :  { %v4610_v13 = vadd.f32 %v4310_v38, %v1586_v26  ;;  %v4613_v49 = vadd.f32 %v4318_v42, %v1582_v44  ;;  %v5852_v26 = vld [vmem:[#allocation10_spill] sm:$0xff] }
 0x3ba   :  { %v1689_v32 = vmax.f32 %v4616_v51, %v4610_v13  ;;  %v1688_v3 = vmax.f32 %v4619_v47, %v4613_v49 }
 0x3bd   :  { %v1511_v36 = vpop.permute.xlu0 %1510  ;;  %v1507_v46 = vpop.permute.xlu1 %1506 }
 0x3be   :  { %v4638_v58 = vadd.f32 %v4326_v27, %v1511_v36 }
 0x3c1   :  { %v1519_v14 = vpop.permute.xlu0 %1518  ;;  %v1515_v8 = vpop.permute.xlu1 %1514 }
 0x3c2   :  { %v4625_v52 = vadd.f32 %v4310_v38, %v1519_v14  ;;  %v4628_v4 = vadd.f32 %v4318_v42, %v1515_v8  ;;  %v4644_v38 = vadd.f32 %v4334_v22, %v1507_v46  ;;  %v5853_v46 = vld [vmem:[#allocation11_spill] sm:$0xff] }
 0x3c4   :  { %v1668_v22 = vmax.f32 %v4638_v58, %v4625_v52 }
 0x3c5   :  { %v1594_v6 = vpop.permute.xlu0 %1593  ;;  %v1590_v37 = vpop.permute.xlu1 %1589 }
 0x3c6   :  { %v4622_v20 = vadd.f32 %v4342_v17, %v1594_v6  ;;  %v4631_v9 = vadd.f32 %v4356_v2, %v1590_v37 }
 0x3c8   :  { %v1691_v56 = vmax.f32 %v1689_v32, %v4622_v20  ;;  %v1690_v25 = vmax.f32 %v1688_v3, %v4631_v9 }
 0x3c9   :  { %v1527_v5 = vpop.permute.xlu0 %1526  ;;  %v1523_v59 = vpop.permute.xlu1 %1522 }
 0x3ca   :  { %v4647_v42 = vadd.f32 %v4342_v17, %v1527_v5  ;;  %v4650_v34 = vadd.f32 %v4356_v2, %v1523_v59  ;;  %v1667_v17 = vmax.f32 %v4644_v38, %v4628_v4  ;;  %v5850_v2 = vld [vmem:[#allocation8_spill] sm:$0xff] }
 0x3cb   :  { %v5854_v5 = vld [vmem:[#allocation12_spill] sm:$0xff] }
 0x3cc   :  { %v1670_v54 = vmax.f32 %v1668_v22, %v4647_v42  ;;  %v1669_v15 = vmax.f32 %v1667_v17, %v4650_v34 }
 0x3cd   :  { %v1602_v7 = vpop.permute.xlu0 %1601  ;;  %v1598_v31 = vpop.permute.xlu1 %1597 }
 0x3ce   :  { %v4641_v33 = vadd.f32 %v4371_v63, %v1602_v7  ;;  %v4653_v0 = vadd.f32 %v4388_v55, %v1598_v31 }
 0x3d0   :  { %v1693_v19 = vmax.f32 %v1691_v56, %v4641_v33  ;;  %v1692_v1 = vmax.f32 %v1690_v25, %v4653_v0 }
 0x3d1   :  { %v1535_v45 = vpop.permute.xlu0 %1534  ;;  %v1531_v40 = vpop.permute.xlu1 %1530 }
 0x3d2   :  { %v4669_v30 = vadd.f32 %v4371_v63, %v1535_v45  ;;  %v4672_v50 = vadd.f32 %v4388_v55, %v1531_v40 }
 0x3d4   :  { %v1672_v7 = vmax.f32 %v1670_v54, %v4669_v30  ;;  %v1671_v31 = vmax.f32 %v1669_v15, %v4672_v50 }
 0x3d5   :  { %v1610_v57 = vpop.permute.xlu0 %1609  ;;  %v1606_v18 = vpop.permute.xlu1 %1605 }
 0x3d6   :  { %v4657_v27 = vadd.f32 %v5849_v21, %v1610_v57  ;;  %v4665_v16 = vadd.f32 %v5850_v2, %v1606_v18 }
 0x3d8   :  { %v1695_v36 = vmax.f32 %v1693_v19, %v4657_v27  ;;  %v1694_v37 = vmax.f32 %v1692_v1, %v4665_v16 }
 0x3d9   :  { %v1543_v11 = vpop.permute.xlu0 %1542  ;;  %v1539_v23 = vpop.permute.xlu1 %1538 }
 0x3da   :  { %v4685_v63 = vadd.f32 %v5849_v21, %v1543_v11  ;;  %v4688_v55 = vadd.f32 %v5850_v2, %v1539_v23 }
 0x3dc   :  { %v1674_v11 = vmax.f32 %v1672_v7, %v4685_v63  ;;  %v1673_v23 = vmax.f32 %v1671_v31, %v4688_v55 }
 0x3dd   :  { %v1618_v35 = vpop.permute.xlu0 %1617  ;;  %v1614_v61 = vpop.permute.xlu1 %1613 }
 0x3de   :  { %v4675_v39 = vadd.f32 %v5851_v48, %v1618_v35  ;;  %v4681_v44 = vadd.f32 %v5852_v26, %v1614_v61 }
 0x3e0   :  { %v1697_v45 = vmax.f32 %v1695_v36, %v4675_v39  ;;  %v1696_v57 = vmax.f32 %v1694_v37, %v4681_v44 }
 0x3e1   :  { %v1551_v24 = vpop.permute.xlu0 %1550  ;;  %v1547_v43 = vpop.permute.xlu1 %1546 }
 0x3e2   :  { %v4701_v40 = vadd.f32 %v5851_v48, %v1551_v24  ;;  %v4705_v18 = vadd.f32 %v5852_v26, %v1547_v43 }
 0x3e5   :  { %v1626_v62 = vpop.permute.xlu0 %1625  ;;  %v1622_v60 = vpop.permute.xlu1 %1621 }
 0x3e6   :  { %v4691_v14 = vadd.f32 %v5853_v46, %v1626_v62  ;;  %v4695_v59 = vadd.f32 %v5854_v5, %v1622_v60  ;;  %v1676_v62 = vmax.f32 %v1674_v11, %v4701_v40  ;;  %v1675_v60 = vmax.f32 %v1673_v23, %v4705_v18 }
 0x3e8   :  { %v1699_v35 = vmax.f32 %v1697_v45, %v4691_v14  ;;  %v1698_v56 = vmax.f32 %v1696_v57, %v4695_v59 }
 0x3e9   :  { %v1559_v8 = vpop.permute.xlu0 %1558  ;;  %v1555_v6 = vpop.permute.xlu1 %1554 }
 0x3ea   :  { %v4711_v61 = vadd.f32 %v5853_v46, %v1559_v8  ;;  %v4715_v24 = vadd.f32 %v5854_v5, %v1555_v6 }
 0x3ec   :  { %v1678_v25 = vmax.f32 %v1676_v62, %v4711_v61  ;;  %v1677_v48 = vmax.f32 %v1675_v60, %v4715_v24 }
 0x3ed   :  { %v1634_v32 = vpop.permute.xlu0 %1633  ;;  %v1630_v3 = vpop.permute.xlu1 %1629 }
 0x3ee   :  { %v4718_v21 = vadd.f32 %v4488_v12, %v1634_v32  ;;  %v4721_v43 = vadd.f32 %v4496_v53, %v1630_v3 }
 0x3f0   :  { %v1701_v22 = vmax.f32 %v1699_v35, %v4718_v21  ;;  %v1700_v17 = vmax.f32 %v1698_v56, %v4721_v43 }
 0x3f1   :  { %v1567_v2 = vpop.permute.xlu0 %1566  ;;  %v1563_v19 = vpop.permute.xlu1 %1562 }
 0x3f2   :  { %v1702_v54 = vmax.f32 %v1700_v17, %v1701_v22  ;;  %v4730_v15 = vadd.f32 %v4488_v12, %v1567_v2  ;;  %v4733_v1 = vadd.f32 %v4496_v53, %v1563_v19 }
 0x3f4   :  { %v1703_v26 = vrot.slane %v1702_v54, 4  ;;  %v1680_v36 = vmax.f32 %v1678_v25, %v4730_v15  ;;  %v1679_v46 = vmax.f32 %v1677_v48, %v4733_v1 }
 0x3f6   :  { %v1704_v8 = vmax.f32 %v1702_v54, %v1703_v26  ;;  %v1681_v6 = vmax.f32 %v1679_v46, %v1680_v36 }
 0x3f8   :  { %v1705_v37 = vrot.slane %v1704_v8, 2  ;;  %v1682_v5 = vrot.slane %v1681_v6, 4 }
 0x3fa   :  { %v1706_v7 = vmax.f32 %v1704_v8, %v1705_v37  ;;  %v1683_v45 = vmax.f32 %v1681_v6, %v1682_v5 }
 0x3fc   :  { %v1707_v31 = vrot.slane %v1706_v7, 1  ;;  %v1684_v23 = vrot.slane %v1683_v45, 2 }
 0x3fe   :  { %v4737_v57 = vmax.f32 %v1706_v7, %v1707_v31  ;;  %v1685_v60 = vmax.f32 %v1683_v45, %v1684_v23 }
 0x400   :  { %v1725_v12 = vsub.f32 %v4619_v47, %v4737_v57  ;;  %v1726_v53 = vsub.f32 %v4616_v51, %v4737_v57  ;;  %v1727_v11 = vsub.f32 %v4613_v49, %v4737_v57  ;;  %v1728_v35 = vsub.f32 %v4610_v13, %v4737_v57 }
 0x401   :  { %v1729_v56 = vsub.f32 %v4631_v9, %v4737_v57  ;;  %v1730_v47 = vsub.f32 %v4622_v20, %v4737_v57  ;;  %v1731_v49 = vsub.f32 %v4653_v0, %v4737_v57  ;;  %v1686_v17 = vrot.slane %v1685_v60, 1 }
 0x402   :  { %v1773_v32 = vmul.f32 1.442695, %v1725_v12  ;;  %v1775_v3 = vmul.f32 1.442695, %v1726_v53  ;;  %v1777_v62 = vmul.f32 1.442695, %v1727_v11  ;;  %v1732_v13 = vsub.f32 %v4641_v33, %v4737_v57 }
 0x403   :  { %v1779_v51 = vmul.f32 1.442695, %v1728_v35  ;;  %v1781_v22 = vmul.f32 1.442695, %v1729_v56  ;;  %v1783_v25 = vmul.f32 1.442695, %v1730_v47  ;;  %v4755_v9 = vmax.f32 %v1685_v60, %v1686_v17 }
 0x404   :  { %3369 = vpow2.f32 %v1773_v32  ;;  %v1733_v2 = vsub.f32 %v4665_v16, %v4737_v57  ;;  %v1734_v20 = vsub.f32 %v4657_v27, %v4737_v57  ;;  %v1785_v19 = vmul.f32 1.442695, %v1731_v49 }
 0x405   :  { %3371 = vpow2.f32 %v1775_v3  ;;  %v1709_v0 = vsub.f32 %v4644_v38, %v4755_v9  ;;  %v1787_v48 = vmul.f32 1.442695, %v1732_v13  ;;  %v1710_v33 = vsub.f32 %v4638_v58, %v4755_v9 }
 0x406   :  { %3373 = vpow2.f32 %v1777_v62  ;;  %v1735_v54 = vsub.f32 %v4681_v44, %v4737_v57  ;;  %v1789_v26 = vmul.f32 1.442695, %v1733_v2  ;;  %v1791_v36 = vmul.f32 1.442695, %v1734_v20 }
 0x407   :  { %3375 = vpow2.f32 %v1779_v51  ;;  %v1711_v16 = vsub.f32 %v4628_v4, %v4755_v9  ;;  %v1736_v27 = vsub.f32 %v4675_v39, %v4737_v57  ;;  %v1741_v46 = vmul.f32 1.442695, %v1709_v0 }
 0x408   :  { %3377 = vpow2.f32 %v1781_v22  ;;  %v1712_v38 = vsub.f32 %v4625_v52, %v4755_v9  ;;  %v1743_v6 = vmul.f32 1.442695, %v1710_v33  ;;  %v1737_v44 = vsub.f32 %v4695_v59, %v4737_v57 }
 0x409   :  { %3379 = vpow2.f32 %v1783_v25  ;;  %v1793_v37 = vmul.f32 1.442695, %v1735_v54  ;;  %v1713_v4 = vsub.f32 %v4650_v34, %v4755_v9  ;;  %v1745_v7 = vmul.f32 1.442695, %v1711_v16 }
 0x40a   :  { %3381 = vpow2.f32 %v1785_v19  ;;  %v1738_v31 = vsub.f32 %v4691_v14, %v4737_v57  ;;  %v1795_v45 = vmul.f32 1.442695, %v1736_v27  ;;  %v1714_v12 = vsub.f32 %v4647_v42, %v4755_v9 }
 0x40b   :  { %3383 = vpow2.f32 %v1787_v48  ;;  %v1747_v59 = vmul.f32 1.442695, %v1712_v38  ;;  %v1739_v11 = vsub.f32 %v4721_v43, %v4737_v57  ;;  %v1797_v23 = vmul.f32 1.442695, %v1737_v44 }
 0x40c   :  { %3385 = vpow2.f32 %v1789_v26  ;;  %v1715_v35 = vsub.f32 %v4672_v50, %v4755_v9  ;;  %v1749_v14 = vmul.f32 1.442695, %v1713_v4  ;;  %v1740_v3 = vsub.f32 %v4718_v21, %v4737_v57 }
 0x40d   :  { %3387 = vpow2.f32 %v1791_v36  ;;  %v1799_v42 = vmul.f32 1.442695, %v1738_v31  ;;  %v1716_v62 = vsub.f32 %v4669_v30, %v4755_v9  ;;  %v1751_v43 = vmul.f32 1.442695, %v1714_v12 }
 0x40e   :  { %3389 = vpow2.f32 %v1741_v46  ;;  %v1801_v47 = vmul.f32 1.442695, %v1739_v11  ;;  %v1717_v50 = vsub.f32 %v4688_v55, %v4755_v9  ;;  %v1753_v49 = vmul.f32 1.442695, %v1715_v35 }
 0x40f   :  { %3391 = vpow2.f32 %v1743_v6  ;;  %v1803_v21 = vmul.f32 1.442695, %v1740_v3  ;;  %v1718_v13 = vsub.f32 %v4685_v63, %v4755_v9  ;;  %v1755_v30 = vmul.f32 1.442695, %v1716_v62 }
 0x410   :  { %3393 = vpow2.f32 %v1793_v37  ;;  %v1719_v19 = vsub.f32 %v4705_v18, %v4755_v9  ;;  %v1757_v55 = vmul.f32 1.442695, %v1717_v50  ;;  %v1720_v54 = vsub.f32 %v4701_v40, %v4755_v9 }
 0x411   :  { %v3370_v8 = vpop.eup %3369  ;;  %3395 = vpow2.f32 %v1745_v7  ;;  %v1759_v63 = vmul.f32 1.442695, %v1718_v13  ;;  %v1721_v36 = vsub.f32 %v4715_v24, %v4755_v9  ;;  %v1722_v38 = vsub.f32 %v4711_v61, %v4755_v9 }
 0x412   :  { %v3372_v58 = vpop.eup %3371  ;;  %3397 = vpow2.f32 %v1795_v45  ;;  %v1761_v46 = vmul.f32 1.442695, %v1719_v19  ;;  %v1763_v44 = vmul.f32 1.442695, %v1720_v54  ;;  %v1724_v45 = vsub.f32 %v4730_v15, %v4755_v9 }
 0x413   :  { %v1826_v5 = vadd.f32 %v3372_v58, %v3370_v8  ;;  %v3374_v39 = vpop.eup %3373  ;;  %3399 = vpow2.f32 %v1747_v59  ;;  %v1765_v7 = vmul.f32 1.442695, %v1721_v36  ;;  %v1767_v12 = vmul.f32 1.442695, %v1722_v38 }
 0x414   :  { %v3376_v53 = vpop.eup %3375  ;;  %3401 = vpow2.f32 %v1797_v23  ;;  %v1771_v3 = vmul.f32 1.442695, %v1724_v45 }
 0x415   :  { %v1827_v52 = vadd.f32 %v3374_v39, %v1826_v5  ;;  %v3378_v32 = vpop.eup %3377  ;;  %3403 = vpow2.f32 %v1749_v14  ;;  %v1723_v5 = vsub.f32 %v4733_v1, %v4755_v9 }
 0x416   :  { %v3380_v60 = vpop.eup %3379  ;;  %3405 = vpow2.f32 %v1799_v42 }
 0x417   :  { %v1828_v34 = vadd.f32 %v3376_v53, %v1827_v52  ;;  %v3382_v22 = vpop.eup %3381  ;;  %3407 = vpow2.f32 %v1751_v43 }
 0x418   :  { %v3384_v25 = vpop.eup %3383  ;;  %3409 = vpow2.f32 %v1801_v47 }
 0x419   :  { %v1829_v56 = vadd.f32 %v3378_v32, %v1828_v34  ;;  %v3386_v2 = vpop.eup %3385  ;;  %3411 = vpow2.f32 %v1753_v49  ;;  %v1769_v34 = vmul.f32 1.442695, %v1723_v5 }
 0x41a   :  { %v3388_v0 = vpop.eup %3387  ;;  %3413 = vpow2.f32 %v1803_v21 }
 0x41b   :  { %v1830_v51 = vadd.f32 %v3380_v60, %v1829_v56  ;;  %v3390_v48 = vpop.eup %3389  ;;  %3415 = vpow2.f32 %v1755_v30 }
 0x41c   :  { %v3392_v26 = vpop.eup %3391  ;;  %3417 = vpow2.f32 %v1757_v55 }
 0x41d   :  { %v1831_v17 = vadd.f32 %v3382_v22, %v1830_v51  ;;  %v3394_v16 = vpop.eup %3393  ;;  %v1805_v18 = vadd.f32 %v3392_v26, %v3390_v48  ;;  %3419 = vpow2.f32 %v1759_v63 }
 0x41e   :  { %v3396_v8 = vpop.eup %3395  ;;  %3421 = vpow2.f32 %v1761_v46 }
 0x41f   :  { %v1832_v20 = vadd.f32 %v3384_v25, %v1831_v17  ;;  %v3398_v6 = vpop.eup %3397  ;;  %v1806_v40 = vadd.f32 %v3396_v8, %v1805_v18  ;;  %3423 = vpow2.f32 %v1763_v44 }
 0x420   :  { %v3400_v37 = vpop.eup %3399  ;;  %3425 = vpow2.f32 %v1765_v7 }
 0x421   :  { %v1833_v33 = vadd.f32 %v3386_v2, %v1832_v20  ;;  %v3402_v4 = vpop.eup %3401  ;;  %v1807_v39 = vadd.f32 %v3400_v37, %v1806_v40  ;;  %3427 = vpow2.f32 %v1767_v12  ;;  %v1864_v40 = vpop.permute.xlu1 %1863 }
 0x422   :  { %v3404_v31 = vpop.eup %3403  ;;  %3429 = vpow2.f32 %v1769_v34  ;;  %vm1866_vm15 = vcmp.eq.s32.totalorder %v1864_v40, 1  ;;  %v4912_v40 = vld [vmem:[%s5789_s5 + $0x30] sm:$0xff] }
 0x423   :  { %v1834_v27 = vadd.f32 %v3388_v0, %v1833_v33  ;;  %v3406_v52 = vpop.eup %3405  ;;  %v1808_v59 = vadd.f32 %v3404_v31, %v1807_v39  ;;  %3431 = vpow2.f32 %v1771_v3  ;;  %v1497_v39 = vld [vmem:[%s5784_s0 + $0x4] sm:$0x1] }
 0x424   :  { %v3408_v53 = vpop.eup %3407 }
 0x425   :  { %v1835_v58 = vadd.f32 %v3394_v16, %v1834_v27  ;;  %v3410_v11 = vpop.eup %3409  ;;  %v1809_v1 = vadd.f32 %v3408_v53, %v1808_v59 }
 0x426   :  { %v3412_v35 = vpop.eup %3411 }
 0x427   :  { %v1836_v24 = vadd.f32 %v3398_v6, %v1835_v58  ;;  %v3414_v14 = vpop.eup %3413  ;;  %v1810_v42 = vadd.f32 %v3412_v35, %v1809_v1  ;;  %v1498_v58 = vld [vmem:[%s5784_s0 + $0xc] sm:$0x1] }
 0x428   :  { %v3416_v56 = vpop.eup %3415 }
 0x429   :  { %v1837_v61 = vadd.f32 %v3402_v4, %v1836_v24  ;;  %v1811_v15 = vadd.f32 %v3416_v56, %v1810_v42  ;;  %v3418_v43 = vpop.eup %3417 }
 0x42a   :  { %v3420_v51 = vpop.eup %3419 }
 0x42b   :  { %v1838_v23 = vadd.f32 %v3406_v52, %v1837_v61  ;;  %v1812_v60 = vadd.f32 %v3418_v43, %v1811_v15  ;;  %v3422_v22 = vpop.eup %3421 }
 0x42c   :  { %v3424_v13 = vpop.eup %3423 }
 0x42d   :  { %v1839_v32 = vadd.f32 %v3410_v11, %v1838_v23  ;;  %v1813_v50 = vadd.f32 %v3420_v51, %v1812_v60  ;;  %v3426_v2 = vpop.eup %3425 }
 0x42e   :  { %v3428_v55 = vpop.eup %3427 }
 0x42f   :  { %v1840_v62 = vadd.f32 %v3414_v14, %v1839_v32  ;;  %v1814_v21 = vadd.f32 %v3422_v22, %v1813_v50  ;;  %v3430_v33 = vpop.eup %3429 }
 0x430   :  { %v3432_v63 = vpop.eup %3431 }
 0x431   :  { %v1841_v47 = vrot.slane %v1840_v62, 4  ;;  %v1815_v30 = vadd.f32 %v3424_v13, %v1814_v21 }
 0x433   :  { %v1842_v49 = vadd.f32 %v1841_v47, %v1840_v62  ;;  %v1816_v20 = vadd.f32 %v3426_v2, %v1815_v30  ;;  %v4842_v30 = vld [vmem:[%s5789_s5 + $0x10] sm:$0xff]  ;;  %v4850_v2 = vld [vmem:[%s5789_s5 + $0x8] sm:$0xff] }
 0x434   :  { %5856 = vst [vmem:[#allocation8_spill] sm:$0xff] %v4842_v30  ;;  %5857 = vst [vmem:[#allocation9_spill] sm:$0xff] %v4850_v2 }
 0x435   :  { %v1843_v17 = vrot.slane %v1842_v49, 2  ;;  %v1817_v0 = vadd.f32 %v3428_v55, %v1816_v20 }
 0x437   :  { %v1844_v25 = vadd.f32 %v1843_v17, %v1842_v49  ;;  %v1818_v54 = vadd.f32 %v3430_v33, %v1817_v0  ;;  %v4834_v17 = vld [vmem:[%s5789_s5 + $0x18] sm:$0xff]  ;;  %v4866_v0 = vld [vmem:[%s5789_s5 + $0x28] sm:$0xff] }
 0x438   :  { %5855 = vst [vmem:[#allocation7_spill] sm:$0xff] %v4834_v17 }
 0x439   :  { %v1845_v19 = vrot.slane %v1844_v25, 1  ;;  %v1819_v26 = vadd.f32 %v3432_v63, %v1818_v54 }
 0x43b   :  { %v1846_v48 = vadd.f32 %v1845_v19, %v1844_v25  ;;  %v1820_v36 = vrot.slane %v1819_v26, 4  ;;  %v4858_v19 = vld [vmem:[%s5789_s5] sm:$0xff] }
 0x43c   :  { %5858 = vst [vmem:[#allocation10_spill] sm:$0xff] %v4858_v19 }
 0x43d   :  { %3433 = vlog2.f32 %v1846_v48  ;;  %v1821_v16 = vadd.f32 %v1820_v36, %v1819_v26  ;;  %v4880_v36 = vld [vmem:[%s5789_s5 + $0x20] sm:$0xff] }
 0x43e   :  { %5859 = vst [vmem:[#allocation11_spill] sm:$0xff] %v4880_v36 }
 0x43f   :  { %v1822_v27 = vrot.slane %v1821_v16, 2 }
 0x441   :  { %v1823_v46 = vadd.f32 %v1822_v27, %v1821_v16 }
 0x443   :  { %v1824_v18 = vrot.slane %v1823_v46, 1 }
 0x445   :  { %v1825_v38 = vadd.f32 %v1824_v18, %v1823_v46 }
 0x447   :  { %3435 = vlog2.f32 %v1825_v38 }
 0x44a   :  { %v3434_v8 = vpop.eup %3433 }
 0x44b   :  { %v1850_v6 = vmul.f32 0.6931472, %v3434_v8  ;;  %v4895_v8 = vld [vmem:[%s5789_s5 + $0x38] sm:$0xff] }
 0x44d   :  { %v1852_v44 = vadd.f32 %v1850_v6, %v4737_v57  ;;  %v1861_v57 = vpop.permute.xlu0 %1860 }
 0x44e   :  { %vm1865_vm1 = vcmp.eq.s32.totalorder %v1861_v57, 1 }
 0x44f   :  { %v1854_v37 = vadd.f32 %v1852_v44, %v1498_v58 }
 0x451   :  { %v4810_v5 = vsel %vm1866_vm15, %v1854_v37, %v4588_v29  ;;  %vm225_vm15 = vcmask 1046528  }
 0x452   :  { %v1943_v4 = vrot.slane %v4810_v5, %v3769_v10 }
 0x454   :  { %1949 = vbcast.lane.b32.xlu0 %v1943_v4, 264  ;;  %1945 = vbcast.lane.b32.xlu1 %v1943_v4, 256  ;;  %v3436_v24 = vpop.eup %3435 }
 0x455   :  { %v1848_v7 = vmul.f32 0.6931472, %v3436_v24  ;;  %v4921_v24 = vld [vmem:[%s5789_s5 + $0x48] sm:$0xff] }
 0x457   :  { %v1851_v31 = vadd.f32 %v1848_v7, %v4755_v9  ;;  %v1872_v9 = vld [vmem:[%s5786_s2 + $0xd] sm:$0x1] }
 0x458   :  { %1957 = vbcast.lane.b32.xlu0 %v1943_v4, 280  ;;  %1953 = vbcast.lane.b32.xlu1 %v1943_v4, 272  ;;  %vm2228_vm3 = vcmp.gt.s32.totalorder %v1872_v9, 0 }
 0x459   :  { %v1853_v45 = vadd.f32 %v1851_v31, %v1497_v39  ;;  %v2230_v12 = vsel %vm2228_vm3, 1, %v5838_v41 }
 0x45b   :  { %v4819_v29 = vsel %vm1865_vm1, %v1853_v45, %v4597_v28  ;;  %v1871_v28 = vld [vmem:[%s5786_s2 + $0x5] sm:$0x1]  ;;  %vm321_vm1 = vcmask 58368  }
 0x45c   :  { %v1876_v52 = vrot.slane %v4819_v29, %v3769_v10  ;;  %vm2227_vm2 = vcmp.gt.s32.totalorder %v1871_v28, 0  ;;  %v4934_v28 = vld [vmem:[%s5789_s5 + $0x40] sm:$0xff] }
 0x45d   :  { %v2229_v61 = vsel %vm2227_vm2, 1, %v5838_v41 }
 0x45e   :  { %1882 = vbcast.lane.b32.xlu0 %v1876_v52, 264  ;;  %1878 = vbcast.lane.b32.xlu1 %v1876_v52, 256 }
 0x462   :  { %1890 = vbcast.lane.b32.xlu0 %v1876_v52, 280  ;;  %1886 = vbcast.lane.b32.xlu1 %v1876_v52, 272 }
 0x466   :  { %1965 = vbcast.lane.b32.xlu0 %v1943_v4, 296  ;;  %1961 = vbcast.lane.b32.xlu1 %v1943_v4, 288 }
 0x46a   :  { %1898 = vbcast.lane.b32.xlu0 %v1876_v52, 296  ;;  %1894 = vbcast.lane.b32.xlu1 %v1876_v52, 288 }
 0x46e   :  { %1973 = vbcast.lane.b32.xlu0 %v1943_v4, 312  ;;  %1969 = vbcast.lane.b32.xlu1 %v1943_v4, 304 }
 0x472   :  { %1906 = vbcast.lane.b32.xlu0 %v1876_v52, 312  ;;  %1902 = vbcast.lane.b32.xlu1 %v1876_v52, 304 }
 0x476   :  { %1981 = vbcast.lane.b32.xlu0 %v1943_v4, 328  ;;  %1977 = vbcast.lane.b32.xlu1 %v1943_v4, 320 }
 0x47a   :  { %1914 = vbcast.lane.b32.xlu0 %v1876_v52, 328  ;;  %1910 = vbcast.lane.b32.xlu1 %v1876_v52, 320 }
 0x47e   :  { %1989 = vbcast.lane.b32.xlu0 %v1943_v4, 344  ;;  %1985 = vbcast.lane.b32.xlu1 %v1943_v4, 336 }
 0x482   :  { %1922 = vbcast.lane.b32.xlu0 %v1876_v52, 344  ;;  %1918 = vbcast.lane.b32.xlu1 %v1876_v52, 336 }
 0x486   :  { %1997 = vbcast.lane.b32.xlu0 %v1943_v4, 360  ;;  %1993 = vbcast.lane.b32.xlu1 %v1943_v4, 352 }
 0x48a   :  { %1930 = vbcast.lane.b32.xlu0 %v1876_v52, 360  ;;  %1926 = vbcast.lane.b32.xlu1 %v1876_v52, 352 }
 0x48e   :  { %2005 = vbcast.lane.b32.xlu0 %v1943_v4, 376  ;;  %2001 = vbcast.lane.b32.xlu1 %v1943_v4, 368 }
 0x492   :  { %1938 = vbcast.lane.b32.xlu0 %v1876_v52, 376  ;;  %1934 = vbcast.lane.b32.xlu1 %v1876_v52, 368 }
 0x496   :  { %2232 = vperm.xlu0 %3163, %v2229_v61   ;;  %2235 = vperm.xlu1 %3164, %v2230_v12  }
 0x4c6   :  { %v1950_v59 = vpop.permute.xlu0 %1949  ;;  %v1946_v53 = vpop.permute.xlu1 %1945 }
 0x4c7   :  { %v4853_v20 = vadd.f32 %v4850_v2, %v1950_v59  ;;  %v4861_v55 = vadd.f32 %v4858_v19, %v1946_v53  ;;  %v4949_v53 = vld [vmem:[%s5789_s5 + $0x58] sm:$0xff] }
 0x4ca   :  { %v1958_v11 = vpop.permute.xlu0 %1957  ;;  %v1954_v23 = vpop.permute.xlu1 %1953 }
 0x4cb   :  { %v4837_v13 = vadd.f32 %v4834_v17, %v1958_v11  ;;  %v4845_v25 = vadd.f32 %v4842_v30, %v1954_v23 }
 0x4cd   :  { %v2061_v27 = vmax.f32 %v4853_v20, %v4837_v13  ;;  %v2060_v46 = vmax.f32 %v4861_v55, %v4845_v25 }
 0x4d0   :  { %v1883_v34 = vpop.permute.xlu0 %1882  ;;  %v1879_v1 = vpop.permute.xlu1 %1878 }
 0x4d1   :  { %v4890_v18 = vadd.f32 %v4850_v2, %v1883_v34  ;;  %v4901_v6 = vadd.f32 %v4858_v19, %v1879_v1 }
 0x4d4   :  { %v1891_v35 = vpop.permute.xlu0 %1890  ;;  %v1887_v14 = vpop.permute.xlu1 %1886 }
 0x4d5   :  { %v4872_v63 = vadd.f32 %v4834_v17, %v1891_v35  ;;  %v4875_v26 = vadd.f32 %v4842_v30, %v1887_v14  ;;  %v4960_v35 = vld [vmem:[%s5789_s5 + $0x50] sm:$0xff] }
 0x4d7   :  { %v2040_v31 = vmax.f32 %v4890_v18, %v4872_v63  ;;  %v2039_v45 = vmax.f32 %v4901_v6, %v4875_v26 }
 0x4d8   :  { %v1966_v32 = vpop.permute.xlu0 %1965  ;;  %v1962_v3 = vpop.permute.xlu1 %1961 }
 0x4d9   :  { %v4869_v48 = vadd.f32 %v4866_v0, %v1966_v32  ;;  %v4883_v16 = vadd.f32 %v4880_v36, %v1962_v3 }
 0x4db   :  { %v2063_v4 = vmax.f32 %v2061_v27, %v4869_v48  ;;  %v2062_v52 = vmax.f32 %v2060_v46, %v4883_v16 }
 0x4dc   :  { %v1899_v42 = vpop.permute.xlu0 %1898  ;;  %v1895_v56 = vpop.permute.xlu1 %1894 }
 0x4dd   :  { %v4904_v58 = vadd.f32 %v4866_v0, %v1899_v42  ;;  %v4907_v44 = vadd.f32 %v4880_v36, %v1895_v56  ;;  %v4975_v56 = vld [vmem:[%s5789_s5 + $0x68] sm:$0xff] }
 0x4df   :  { %v2042_v23 = vmax.f32 %v2040_v31, %v4904_v58  ;;  %v2041_v34 = vmax.f32 %v2039_v45, %v4907_v44 }
 0x4e0   :  { %v1974_v62 = vpop.permute.xlu0 %1973  ;;  %v1970_v15 = vpop.permute.xlu1 %1969 }
 0x4e1   :  { %v4898_v38 = vadd.f32 %v4895_v8, %v1974_v62  ;;  %v4915_v37 = vadd.f32 %v4912_v40, %v1970_v15 }
 0x4e3   :  { %v2065_v61 = vmax.f32 %v2063_v4, %v4898_v38  ;;  %v2064_v1 = vmax.f32 %v2062_v52, %v4915_v37 }
 0x4e4   :  { %v1907_v43 = vpop.permute.xlu0 %1906  ;;  %v1903_v60 = vpop.permute.xlu1 %1902 }
 0x4e5   :  { %v4941_v12 = vadd.f32 %v4895_v8, %v1907_v43  ;;  %v4944_v59 = vadd.f32 %v4912_v40, %v1903_v60 }
 0x4e8   :  { %v1982_v47 = vpop.permute.xlu0 %1981  ;;  %v1978_v51 = vpop.permute.xlu1 %1977 }
 0x4e9   :  { %v4924_v7 = vadd.f32 %v4921_v24, %v1982_v47  ;;  %v4937_v9 = vadd.f32 %v4934_v28, %v1978_v51  ;;  %v4984_v47 = vld [vmem:[%s5789_s5 + $0x60] sm:$0xff] }
 0x4eb   :  { %v2067_v32 = vmax.f32 %v2065_v61, %v4924_v7  ;;  %v2066_v60 = vmax.f32 %v2064_v1, %v4937_v9 }
 0x4ec   :  { %v1915_v50 = vpop.permute.xlu0 %1914  ;;  %v1911_v49 = vpop.permute.xlu1 %1910 }
 0x4ed   :  { %v4967_v3 = vadd.f32 %v4921_v24, %v1915_v50  ;;  %v4970_v42 = vadd.f32 %v4934_v28, %v1911_v49  ;;  %v2044_v50 = vmax.f32 %v2042_v23, %v4941_v12  ;;  %v2043_v49 = vmax.f32 %v2041_v34, %v4944_v59  ;;  %v5020_v34 = vld [vmem:[%s5789_s5 + $0x70] sm:$0xff] }
 0x4ef   :  { %v2046_v4 = vmax.f32 %v2044_v50, %v4967_v3 }
 0x4f0   :  { %v1990_v22 = vpop.permute.xlu0 %1989  ;;  %v1986_v21 = vpop.permute.xlu1 %1985 }
 0x4f1   :  { %v4952_v11 = vadd.f32 %v4949_v53, %v1990_v22  ;;  %v4963_v14 = vadd.f32 %v4960_v35, %v1986_v21 }
 0x4f3   :  { %v2069_v22 = vmax.f32 %v2067_v32, %v4952_v11  ;;  %v2068_v27 = vmax.f32 %v2066_v60, %v4963_v14 }
 0x4f4   :  { %v1923_v33 = vpop.permute.xlu0 %1922  ;;  %v1919_v54 = vpop.permute.xlu1 %1918 }
 0x4f5   :  { %v4993_v21 = vadd.f32 %v4949_v53, %v1923_v33  ;;  %v4997_v46 = vadd.f32 %v4960_v35, %v1919_v54  ;;  %v5012_v54 = vld [vmem:[%s5789_s5 + $0x78] sm:$0xff] }
 0x4f7   :  { %v2048_v32 = vmax.f32 %v2046_v4, %v4993_v21 }
 0x4f8   :  { %v1998_v39 = vpop.permute.xlu0 %1997  ;;  %v1994_v57 = vpop.permute.xlu1 %1993 }
 0x4f9   :  { %v4978_v62 = vadd.f32 %v4975_v56, %v1998_v39  ;;  %v4987_v51 = vadd.f32 %v4984_v47, %v1994_v57  ;;  %v2045_v39 = vmax.f32 %v2043_v49, %v4970_v42 }
 0x4fb   :  { %v2071_v57 = vmax.f32 %v2069_v22, %v4978_v62  ;;  %v2070_v61 = vmax.f32 %v2068_v27, %v4987_v51 }
 0x4fc   :  { %v1931_v15 = vpop.permute.xlu0 %1930  ;;  %v1927_v43 = vpop.permute.xlu1 %1926 }
 0x4fd   :  { %v5003_v31 = vadd.f32 %v4975_v56, %v1931_v15  ;;  %v5007_v33 = vadd.f32 %v4984_v47, %v1927_v43  ;;  %v2047_v15 = vmax.f32 %v2045_v39, %v4997_v46 }
 0x4ff   :  { %v2050_v50 = vmax.f32 %v2048_v32, %v5003_v31  ;;  %v2049_v27 = vmax.f32 %v2047_v15, %v5007_v33 }
 0x500   :  { %v2006_v45 = vpop.permute.xlu0 %2005  ;;  %v2002_v52 = vpop.permute.xlu1 %2001 }
 0x501   :  { %v5015_v23 = vadd.f32 %v5012_v54, %v2006_v45  ;;  %v5023_v1 = vadd.f32 %v5020_v34, %v2002_v52 }
 0x503   :  { %v2073_v43 = vmax.f32 %v2071_v57, %v5015_v23  ;;  %v2072_v60 = vmax.f32 %v2070_v61, %v5023_v1 }
 0x504   :  { %v1939_v49 = vpop.permute.xlu0 %1938  ;;  %v1935_v22 = vpop.permute.xlu1 %1934 }
 0x505   :  { %v2074_v45 = vmax.f32 %v2072_v60, %v2073_v43  ;;  %v5032_v41 = vadd.f32 %v5012_v54, %v1939_v49  ;;  %v5035_v52 = vadd.f32 %v5020_v34, %v1935_v22 }
 0x507   :  { %v2075_v4 = vrot.slane %v2074_v45, 4  ;;  %v2052_v39 = vmax.f32 %v2050_v50, %v5032_v41  ;;  %v2051_v57 = vmax.f32 %v2049_v27, %v5035_v52 }
 0x509   :  { %v2076_v19 = vmax.f32 %v2074_v45, %v2075_v4  ;;  %v2053_v61 = vmax.f32 %v2051_v57, %v2052_v39 }
 0x50b   :  { %v2077_v2 = vrot.slane %v2076_v19, 2  ;;  %v2054_v32 = vrot.slane %v2053_v61, 4 }
 0x50d   :  { %v2078_v30 = vmax.f32 %v2076_v19, %v2077_v2  ;;  %v2055_v36 = vmax.f32 %v2053_v61, %v2054_v32 }
 0x50f   :  { %v2079_v17 = vrot.slane %v2078_v30, 1  ;;  %v2056_v49 = vrot.slane %v2055_v36, 2 }
 0x511   :  { %v5039_v15 = vmax.f32 %v2078_v30, %v2079_v17  ;;  %v2057_v30 = vmax.f32 %v2055_v36, %v2056_v49 }
 0x513   :  { %v2097_v43 = vsub.f32 %v4861_v55, %v5039_v15  ;;  %v2098_v60 = vsub.f32 %v4853_v20, %v5039_v15  ;;  %v2099_v50 = vsub.f32 %v4845_v25, %v5039_v15  ;;  %v2100_v22 = vsub.f32 %v4837_v13, %v5039_v15 }
 0x514   :  { %v2101_v2 = vsub.f32 %v4883_v16, %v5039_v15  ;;  %v2102_v19 = vsub.f32 %v4869_v48, %v5039_v15  ;;  %v2103_v25 = vsub.f32 %v4915_v37, %v5039_v15  ;;  %v2058_v4 = vrot.slane %v2057_v30, 1 }
 0x515   :  { %v2145_v27 = vmul.f32 1.442695, %v2097_v43  ;;  %v2147_v45 = vmul.f32 1.442695, %v2098_v60  ;;  %v2149_v17 = vmul.f32 1.442695, %v2099_v50  ;;  %v2104_v13 = vsub.f32 %v4898_v38, %v5039_v15 }
 0x516   :  { %v2151_v20 = vmul.f32 1.442695, %v2100_v22  ;;  %v2153_v55 = vmul.f32 1.442695, %v2101_v2  ;;  %v2155_v39 = vmul.f32 1.442695, %v2102_v19  ;;  %v5057_v16 = vmax.f32 %v2057_v30, %v2058_v4 }
 0x517   :  { %3437 = vpow2.f32 %v2145_v27  ;;  %v2105_v36 = vsub.f32 %v4937_v9, %v5039_v15  ;;  %v2106_v48 = vsub.f32 %v4924_v7, %v5039_v15  ;;  %v2157_v57 = vmul.f32 1.442695, %v2103_v25 }
 0x518   :  { %3439 = vpow2.f32 %v2147_v45  ;;  %v2081_v37 = vsub.f32 %v4901_v6, %v5057_v16  ;;  %v2159_v61 = vmul.f32 1.442695, %v2104_v13  ;;  %v2082_v38 = vsub.f32 %v4890_v18, %v5057_v16 }
 0x519   :  { %3441 = vpow2.f32 %v2149_v17  ;;  %v2107_v32 = vsub.f32 %v4963_v14, %v5039_v15  ;;  %v2161_v43 = vmul.f32 1.442695, %v2105_v36  ;;  %v2163_v60 = vmul.f32 1.442695, %v2106_v48 }
 0x51a   :  { %3443 = vpow2.f32 %v2151_v20  ;;  %v2083_v9 = vsub.f32 %v4875_v26, %v5057_v16  ;;  %v2108_v7 = vsub.f32 %v4952_v11, %v5039_v15  ;;  %v2113_v50 = vmul.f32 1.442695, %v2081_v37 }
 0x51b   :  { %3445 = vpow2.f32 %v2153_v55  ;;  %v2084_v6 = vsub.f32 %v4872_v63, %v5057_v16  ;;  %v2115_v22 = vmul.f32 1.442695, %v2082_v38  ;;  %v2109_v14 = vsub.f32 %v4987_v51, %v5039_v15 }
 0x51c   :  { %3447 = vpow2.f32 %v2155_v39  ;;  %v2165_v27 = vmul.f32 1.442695, %v2107_v32  ;;  %v2085_v26 = vsub.f32 %v4907_v44, %v5057_v16  ;;  %v2117_v2 = vmul.f32 1.442695, %v2083_v9 }
 0x51d   :  { %3449 = vpow2.f32 %v2157_v57  ;;  %v2110_v17 = vsub.f32 %v4978_v62, %v5039_v15  ;;  %v2167_v30 = vmul.f32 1.442695, %v2108_v7  ;;  %v2086_v19 = vsub.f32 %v4904_v58, %v5057_v16 }
 0x51e   :  { %3451 = vpow2.f32 %v2159_v61  ;;  %v2119_v51 = vmul.f32 1.442695, %v2084_v6  ;;  %v2111_v25 = vsub.f32 %v5023_v1, %v5039_v15  ;;  %v2169_v55 = vmul.f32 1.442695, %v2109_v14 }
 0x51f   :  { %3453 = vpow2.f32 %v2161_v43  ;;  %v2087_v4 = vsub.f32 %v4944_v59, %v5057_v16  ;;  %v2121_v62 = vmul.f32 1.442695, %v2085_v26  ;;  %v2112_v39 = vsub.f32 %v5015_v23, %v5039_v15 }
 0x520   :  { %3455 = vpow2.f32 %v2163_v60  ;;  %v2171_v58 = vmul.f32 1.442695, %v2110_v17  ;;  %v2088_v48 = vsub.f32 %v4941_v12, %v5057_v16  ;;  %v2123_v1 = vmul.f32 1.442695, %v2086_v19 }
 0x521   :  { %3457 = vpow2.f32 %v2113_v50  ;;  %v2173_v37 = vmul.f32 1.442695, %v2111_v25  ;;  %v2089_v59 = vsub.f32 %v4970_v42, %v5057_v16  ;;  %v2125_v38 = vmul.f32 1.442695, %v2087_v4 }
 0x522   :  { %3459 = vpow2.f32 %v2115_v22  ;;  %v2175_v23 = vmul.f32 1.442695, %v2112_v39  ;;  %v2090_v60 = vsub.f32 %v4967_v3, %v5057_v16  ;;  %v2127_v12 = vmul.f32 1.442695, %v2088_v48 }
 0x523   :  { %3461 = vpow2.f32 %v2165_v27  ;;  %v2129_v42 = vmul.f32 1.442695, %v2089_v59  ;;  %v2092_v14 = vsub.f32 %v4993_v21, %v5057_v16  ;;  %v2095_v25 = vsub.f32 %v5035_v52, %v5057_v16 }
 0x524   :  { %v3438_v49 = vpop.eup %3437  ;;  %3463 = vpow2.f32 %v2117_v2  ;;  %v2131_v3 = vmul.f32 1.442695, %v2090_v60 }
 0x525   :  { %v3440_v18 = vpop.eup %3439  ;;  %3465 = vpow2.f32 %v2167_v30  ;;  %v2094_v30 = vsub.f32 %v5003_v31, %v5057_v16 }
 0x526   :  { %v2198_v45 = vadd.f32 %v3440_v18, %v3438_v49  ;;  %v3442_v11 = vpop.eup %3441  ;;  %3467 = vpow2.f32 %v2119_v51  ;;  %v2091_v49 = vsub.f32 %v4997_v46, %v5057_v16  ;;  %v2135_v51 = vmul.f32 1.442695, %v2092_v14 }
 0x527   :  { %v3444_v20 = vpop.eup %3443  ;;  %3469 = vpow2.f32 %v2169_v55 }
 0x528   :  { %v2199_v63 = vadd.f32 %v3442_v11, %v2198_v45  ;;  %v3446_v13 = vpop.eup %3445  ;;  %3471 = vpow2.f32 %v2121_v62  ;;  %v2093_v45 = vsub.f32 %v5007_v33, %v5057_v16  ;;  %v2133_v11 = vmul.f32 1.442695, %v2091_v49 }
 0x529   :  { %v3448_v57 = vpop.eup %3447  ;;  %3473 = vpow2.f32 %v2171_v58  ;;  %v2139_v58 = vmul.f32 1.442695, %v2094_v30 }
 0x52a   :  { %v2200_v44 = vadd.f32 %v3444_v20, %v2199_v63  ;;  %v3450_v32 = vpop.eup %3449  ;;  %3475 = vpow2.f32 %v2123_v1 }
 0x52b   :  { %v3452_v9 = vpop.eup %3451  ;;  %3477 = vpow2.f32 %v2173_v37  ;;  %v2141_v37 = vmul.f32 1.442695, %v2095_v25 }
 0x52c   :  { %v2201_v36 = vadd.f32 %v3446_v13, %v2200_v44  ;;  %v3454_v7 = vpop.eup %3453  ;;  %3479 = vpow2.f32 %v2125_v38  ;;  %v2137_v44 = vmul.f32 1.442695, %v2093_v45  ;;  %v2096_v13 = vsub.f32 %v5032_v41, %v5057_v16 }
 0x52d   :  { %v3456_v6 = vpop.eup %3455  ;;  %3481 = vpow2.f32 %v2175_v23 }
 0x52e   :  { %v2202_v61 = vadd.f32 %v3448_v57, %v2201_v36  ;;  %v3458_v22 = vpop.eup %3457  ;;  %3483 = vpow2.f32 %v2127_v12 }
 0x52f   :  { %v3460_v27 = vpop.eup %3459  ;;  %3485 = vpow2.f32 %v2129_v42 }
 0x530   :  { %v2203_v43 = vadd.f32 %v3450_v32, %v2202_v61  ;;  %v3462_v26 = vpop.eup %3461  ;;  %v2177_v46 = vadd.f32 %v3460_v27, %v3458_v22  ;;  %3487 = vpow2.f32 %v2131_v3  ;;  %v2143_v32 = vmul.f32 1.442695, %v2096_v13  ;;  %v1870_v13 = vld [vmem:[%s5784_s0 + $0xd] sm:$0x1] }
 0x531   :  { %v3464_v17 = vpop.eup %3463  ;;  %3489 = vpow2.f32 %v2133_v11 }
 0x532   :  { %v2204_v50 = vadd.f32 %v3452_v9, %v2203_v43  ;;  %v3466_v63 = vpop.eup %3465  ;;  %v2178_v21 = vadd.f32 %v3464_v17, %v2177_v46  ;;  %3491 = vpow2.f32 %v2135_v51 }
 0x533   :  { %v3468_v20 = vpop.eup %3467  ;;  %3493 = vpow2.f32 %v2137_v44 }
 0x534   :  { %v2205_v18 = vadd.f32 %v3454_v7, %v2204_v50  ;;  %v3470_v55 = vpop.eup %3469  ;;  %v2179_v4 = vadd.f32 %v3468_v20, %v2178_v21  ;;  %3495 = vpow2.f32 %v2139_v58 }
 0x535   :  { %v3472_v62 = vpop.eup %3471  ;;  %3497 = vpow2.f32 %v2141_v37 }
 0x536   :  { %v2206_v2 = vadd.f32 %v3456_v6, %v2205_v18  ;;  %v3474_v39 = vpop.eup %3473  ;;  %v2180_v36 = vadd.f32 %v3472_v62, %v2179_v4  ;;  %3499 = vpow2.f32 %v2143_v32  ;;  %v26_v32 = vld [vmem:[%s5785_s1] sm:$0x3] }
 0x537   :  { %v3476_v48 = vpop.eup %3475 }
 0x538   :  { %v2207_v19 = vadd.f32 %v3462_v26, %v2206_v2  ;;  %v3478_v1 = vpop.eup %3477  ;;  %v2181_v52 = vadd.f32 %v3476_v48, %v2180_v36 }
 0x539   :  { %v3480_v61 = vpop.eup %3479 }
 0x53a   :  { %v2208_v33 = vadd.f32 %v3466_v63, %v2207_v19  ;;  %v3482_v59 = vpop.eup %3481  ;;  %v2182_v23 = vadd.f32 %v3480_v61, %v2181_v52 }
 0x53b   :  { %v3484_v43 = vpop.eup %3483 }
 0x53c   :  { %v2209_v31 = vadd.f32 %v3470_v55, %v2208_v33  ;;  %v2183_v41 = vadd.f32 %v3484_v43, %v2182_v23  ;;  %v3486_v12 = vpop.eup %3485  ;;  %v5862_v23 = vld [vmem:[#allocation8_spill] sm:$0xff]  ;;  %v2243_v43 = vld [vmem:[%s5786_s2 + $0x6] sm:$0x1] }
 0x53d   :  { %v3488_v50 = vpop.eup %3487  ;;  %vm2599_vm6 = vcmp.gt.s32.totalorder %v2243_v43, 0 }
 0x53e   :  { %v2210_v57 = vadd.f32 %v3474_v39, %v2209_v31  ;;  %v2184_v9 = vadd.f32 %v3486_v12, %v2183_v41  ;;  %v3490_v6 = vpop.eup %3489  ;;  %v2236_v31 = vpop.permute.xlu1 %2235  ;;  %v5863_v41 = vld [vmem:[#allocation6_spill] sm:$0xff] }
 0x53f   :  { %v3492_v14 = vpop.eup %3491  ;;  %vm2238_vm4 = vcmp.eq.s32.totalorder %v2236_v31, 1  ;;  %v61_v12 = vrot.slane %v26_v32, %v5863_v41 }
 0x540   :  { %v2211_v38 = vadd.f32 %v3478_v1, %v2210_v57  ;;  %v2185_v49 = vadd.f32 %v3488_v50, %v2184_v9  ;;  %v3494_v45 = vpop.eup %3493  ;;  %v1869_v57 = vld [vmem:[%s5784_s0 + $0x5] sm:$0x1]  ;;  %v54_v9 = vrot.slane %v26_v32, %v3769_v10  ;;  %v5865_v50 = vld [vmem:[#allocation10_spill] sm:$0xff] }
 0x541   :  { %v3496_v11 = vpop.eup %3495 }
 0x542   :  { %v2212_v60 = vadd.f32 %v3482_v59, %v2211_v38  ;;  %v2186_v22 = vadd.f32 %v3490_v6, %v2185_v49  ;;  %v3498_v30 = vpop.eup %3497  ;;  %v5861_v38 = vld [vmem:[#allocation7_spill] sm:$0xff]  ;;  %v5866_v49 = vmov 0  }
 0x543   :  { %v3500_v19 = vpop.eup %3499 }
 0x544   :  { %v2213_v7 = vrot.slane %v2212_v60, 4  ;;  %v2187_v3 = vadd.f32 %v3492_v14, %v2186_v22 }
 0x546   :  { %v2214_v42 = vadd.f32 %v2213_v7, %v2212_v60  ;;  %v2188_v26 = vadd.f32 %v3494_v45, %v2187_v3  ;;  %v2244_v60 = vld [vmem:[%s5786_s2 + $0xe] sm:$0x1]  ;;  %v5864_v7 = vld [vmem:[#allocation9_spill] sm:$0xff] }
 0x547   :  { %vm2600_vm7 = vcmp.gt.s32.totalorder %v2244_v60, 0 }
 0x548   :  { %v2215_v18 = vrot.slane %v2214_v42, 2  ;;  %v2189_v46 = vadd.f32 %v3496_v11, %v2188_v26  ;;  %v2602_v6 = vsel %vm2600_vm7, 1, %v5866_v49  ;;  %vm3017_vm7 = vcmask 1024  }
 0x54a   :  { %v2216_v27 = vadd.f32 %v2215_v18, %v2214_v42  ;;  %v2190_v63 = vadd.f32 %v3498_v30, %v2189_v46  ;;  %v2601_v42 = vsel %vm2599_vm6, 1, %v5866_v49  ;;  %vm286_vm6 = vcmask 50176  }
 0x54c   :  { %v2217_v2 = vrot.slane %v2216_v27, 1  ;;  %v2191_v51 = vadd.f32 %v3500_v19, %v2190_v63 }
 0x54e   :  { %v2218_v17 = vadd.f32 %v2217_v2, %v2216_v27  ;;  %v2192_v21 = vrot.slane %v2191_v51, 4 }
 0x550   :  { %3501 = vlog2.f32 %v2218_v17  ;;  %v2193_v20 = vadd.f32 %v2192_v21, %v2191_v51 }
 0x552   :  { %v2194_v25 = vrot.slane %v2193_v20, 2 }
 0x554   :  { %v2195_v55 = vadd.f32 %v2194_v25, %v2193_v20 }
 0x556   :  { %v2196_v33 = vrot.slane %v2195_v55, 1 }
 0x558   :  { %v2197_v4 = vadd.f32 %v2196_v33, %v2195_v55 }
 0x55a   :  { %3503 = vlog2.f32 %v2197_v4 }
 0x55d   :  { %v3502_v44 = vpop.eup %3501 }
 0x55e   :  { %v2222_v62 = vmul.f32 0.6931472, %v3502_v44 }
 0x560   :  { %v2224_v39 = vadd.f32 %v2222_v62, %v5039_v15 }
 0x562   :  { %v2226_v58 = vadd.f32 %v2224_v39, %v1870_v13 }
 0x564   :  { %v5112_v36 = vsel %vm2238_vm4, %v2226_v58, %v4810_v5  ;;  %v2233_v5 = vpop.permute.xlu0 %2232 }
 0x565   :  { %v5116_v48 = vrot.slane %v5112_v36, %v3769_v10  ;;  %vm2237_vm5 = vcmp.eq.s32.totalorder %v2233_v5, 1 }
 0x567   :  { %2321 = vbcast.lane.b32.xlu0 %v5116_v48, 264  ;;  %2317 = vbcast.lane.b32.xlu1 %v5116_v48, 256  ;;  %v3504_v1 = vpop.eup %3503 }
 0x568   :  { %v2220_v15 = vmul.f32 0.6931472, %v3504_v1 }
 0x56a   :  { %v2223_v37 = vadd.f32 %v2220_v15, %v5057_v16  ;;  %v5860_v16 = vld [vmem:[#allocation11_spill] sm:$0xff] }
 0x56b   :  { %2329 = vbcast.lane.b32.xlu0 %v5116_v48, 280  ;;  %2325 = vbcast.lane.b32.xlu1 %v5116_v48, 272 }
 0x56c   :  { %v2225_v52 = vadd.f32 %v2223_v37, %v1869_v57 }
 0x56e   :  { %v5127_v61 = vsel %vm2237_vm5, %v2225_v52, %v4819_v29  ;;  %v5831_v29 = vmov 0.0   ;;  %vm243_vm5 = vcmask 1041408  }
 0x56f   :  { %v5131_v59 = vrot.slane %v5127_v61, %v3769_v10  ;;  %3086 = vmatprep.subr.mxu0 %v5831_v29  ;;  %3121 = vmatprep.subr.mxu1 %v5831_v29 }
 0x570   :  { %3087 = vmatpush3.msra.mxu0 %v5012_v54  ;;  %3122 = vmatpush3.msra.mxu1 %v5012_v54 }
 0x571   :  { %2254 = vbcast.lane.b32.xlu0 %v5131_v59, 264  ;;  %2250 = vbcast.lane.b32.xlu1 %v5131_v59, 256 }
 0x572   :  { %3088 = vmatprep.subr.mxu0 %v5831_v29  ;;  %3123 = vmatprep.subr.mxu1 %v5831_v29 }
 0x573   :  { %3089 = vmatpush3.msra.mxu0 %v5020_v34  ;;  %3124 = vmatpush3.msra.mxu1 %v5020_v34 }
 0x574   :  { %3090 = vmatprep.subr.mxu0 %v5831_v29  ;;  %3125 = vmatprep.subr.mxu1 %v5831_v29 }
 0x575   :  { %2262 = vbcast.lane.b32.xlu0 %v5131_v59, 280  ;;  %2258 = vbcast.lane.b32.xlu1 %v5131_v59, 272 }
 0x576   :  { %3091 = vmatpush3.msra.mxu0 %v4975_v56  ;;  %3126 = vmatpush3.msra.mxu1 %v4975_v56 }
 0x577   :  { %3092 = vmatprep.subr.mxu0 %v5831_v29  ;;  %3127 = vmatprep.subr.mxu1 %v5831_v29 }
 0x578   :  { %3093 = vmatpush3.msra.mxu0 %v4984_v47  ;;  %3128 = vmatpush3.msra.mxu1 %v4984_v47 }
 0x579   :  { %2337 = vbcast.lane.b32.xlu0 %v5116_v48, 296  ;;  %2333 = vbcast.lane.b32.xlu1 %v5116_v48, 288 }
 0x57a   :  { %3094 = vmatprep.subr.mxu0 %v5831_v29  ;;  %3129 = vmatprep.subr.mxu1 %v5831_v29 }
 0x57b   :  { %3095 = vmatpush3.msra.mxu0 %v4949_v53  ;;  %3130 = vmatpush3.msra.mxu1 %v4949_v53 }
 0x57c   :  { %3096 = vmatprep.subr.mxu0 %v5831_v29  ;;  %3131 = vmatprep.subr.mxu1 %v5831_v29 }
 0x57d   :  { %2270 = vbcast.lane.b32.xlu0 %v5131_v59, 296  ;;  %2266 = vbcast.lane.b32.xlu1 %v5131_v59, 288 }
 0x57e   :  { %3097 = vmatpush3.msra.mxu0 %v4960_v35  ;;  %3132 = vmatpush3.msra.mxu1 %v4960_v35 }
 0x57f   :  { %3098 = vmatprep.subr.mxu0 %v5831_v29  ;;  %3133 = vmatprep.subr.mxu1 %v5831_v29 }
 0x580   :  { %3099 = vmatpush3.msra.mxu0 %v4921_v24  ;;  %3134 = vmatpush3.msra.mxu1 %v4921_v24 }
 0x581   :  { %2345 = vbcast.lane.b32.xlu0 %v5116_v48, 312  ;;  %2341 = vbcast.lane.b32.xlu1 %v5116_v48, 304 }
 0x582   :  { %3100 = vmatprep.subr.mxu0 %v5831_v29  ;;  %3135 = vmatprep.subr.mxu1 %v5831_v29 }
 0x583   :  { %3101 = vmatpush3.msra.mxu0 %v4934_v28  ;;  %3136 = vmatpush3.msra.mxu1 %v4934_v28 }
 0x584   :  { %3102 = vmatprep.subr.mxu0 %v5831_v29  ;;  %3137 = vmatprep.subr.mxu1 %v5831_v29 }
 0x585   :  { %2278 = vbcast.lane.b32.xlu0 %v5131_v59, 312  ;;  %2274 = vbcast.lane.b32.xlu1 %v5131_v59, 304 }
 0x586   :  { %3103 = vmatpush3.msra.mxu0 %v4895_v8  ;;  %3138 = vmatpush3.msra.mxu1 %v4895_v8 }
 0x587   :  { %3104 = vmatprep.subr.mxu0 %v5831_v29  ;;  %3139 = vmatprep.subr.mxu1 %v5831_v29 }
 0x588   :  { %3105 = vmatpush3.msra.mxu0 %v4912_v40  ;;  %3140 = vmatpush3.msra.mxu1 %v4912_v40 }
 0x589   :  { %2353 = vbcast.lane.b32.xlu0 %v5116_v48, 328  ;;  %2349 = vbcast.lane.b32.xlu1 %v5116_v48, 320 }
 0x58a   :  { %3106 = vmatprep.subr.mxu0 %v5831_v29  ;;  %3141 = vmatprep.subr.mxu1 %v5831_v29 }
 0x58b   :  { %3107 = vmatpush3.msra.mxu0 %v4866_v0  ;;  %3142 = vmatpush3.msra.mxu1 %v4866_v0 }
 0x58c   :  { %3108 = vmatprep.subr.mxu0 %v5831_v29  ;;  %3143 = vmatprep.subr.mxu1 %v5831_v29 }
 0x58d   :  { %2286 = vbcast.lane.b32.xlu0 %v5131_v59, 328  ;;  %2282 = vbcast.lane.b32.xlu1 %v5131_v59, 320 }
 0x58e   :  { %3109 = vmatpush3.msra.mxu0 %v5860_v16  ;;  %3144 = vmatpush3.msra.mxu1 %v5860_v16 }
 0x58f   :  { %3110 = vmatprep.subr.mxu0 %v5831_v29  ;;  %3145 = vmatprep.subr.mxu1 %v5831_v29 }
 0x590   :  { %3111 = vmatpush3.msra.mxu0 %v5861_v38  ;;  %3146 = vmatpush3.msra.mxu1 %v5861_v38 }
 0x591   :  { %2361 = vbcast.lane.b32.xlu0 %v5116_v48, 344  ;;  %2357 = vbcast.lane.b32.xlu1 %v5116_v48, 336 }
 0x592   :  { %3112 = vmatprep.subr.mxu0 %v5831_v29  ;;  %3147 = vmatprep.subr.mxu1 %v5831_v29 }
 0x593   :  { %3113 = vmatpush3.msra.mxu0 %v5862_v23  ;;  %3148 = vmatpush3.msra.mxu1 %v5862_v23 }
 0x594   :  { %3114 = vmatprep.subr.mxu0 %v5831_v29  ;;  %3149 = vmatprep.subr.mxu1 %v5831_v29 }
 0x595   :  { %2294 = vbcast.lane.b32.xlu0 %v5131_v59, 344  ;;  %2290 = vbcast.lane.b32.xlu1 %v5131_v59, 336 }
 0x596   :  { %3115 = vmatpush3.msra.mxu0 %v5864_v7  ;;  %3150 = vmatpush3.msra.mxu1 %v5864_v7 }
 0x597   :  { %3116 = vmatprep.subr.mxu0 %v5831_v29  ;;  %3151 = vmatprep.subr.mxu1 %v5831_v29 }
 0x598   :  { %3117 = vmatpush3.msra.mxu0 %v5865_v50  ;;  %3152 = vmatpush3.msra.mxu1 %v5865_v50 }
 0x599   :  { %2369 = vbcast.lane.b32.xlu0 %v5116_v48, 360  ;;  %2365 = vbcast.lane.b32.xlu1 %v5116_v48, 352 }
 0x59a   :  { %3118 = vmatprep.mubr.msk.f32.mxu0 %vm3710_vm8, %v5831_v29  ;;  %3153 = vmatprep.mubr.msk.f32.mxu1 %vm3710_vm8, %v5831_v29 }
 0x59d   :  { %2302 = vbcast.lane.b32.xlu0 %v5131_v59, 360  ;;  %2298 = vbcast.lane.b32.xlu1 %v5131_v59, 352 }
 0x5a1   :  { %2377 = vbcast.lane.b32.xlu0 %v5116_v48, 376  ;;  %2373 = vbcast.lane.b32.xlu1 %v5116_v48, 368 }
 0x5a5   :  { %2310 = vbcast.lane.b32.xlu0 %v5131_v59, 376  ;;  %2306 = vbcast.lane.b32.xlu1 %v5131_v59, 368 }
 0x5a9   :  { %63 = vbcast.lane.b32.xlu0 %v61_v12, 256  ;;  %56 = vbcast.lane.b32.xlu1 %v54_v9, 256 }
 0x5ad   :  { %2604 = vperm.xlu0 %3163, %v2601_v42   ;;  %2607 = vperm.xlu1 %3164, %v2602_v6  }
 0x5d9   :  { %v2322_v22 = vpop.permute.xlu0 %2321  ;;  %v2318_v18 = vpop.permute.xlu1 %2317 }
 0x5da   :  { %v5247_v39 = vadd.f32 %v5864_v7, %v2322_v22  ;;  %v5250_v31 = vadd.f32 %v5865_v50, %v2318_v18 }
 0x5dd   :  { %v2330_v14 = vpop.permute.xlu0 %2329  ;;  %v2326_v3 = vpop.permute.xlu1 %2325 }
 0x5de   :  { %v5241_v62 = vadd.f32 %v5861_v38, %v2330_v14  ;;  %v5244_v13 = vadd.f32 %v5862_v23, %v2326_v3 }
 0x5e0   :  { %v2433_v37 = vmax.f32 %v5247_v39, %v5241_v62  ;;  %v2432_v52 = vmax.f32 %v5250_v31, %v5244_v13 }
 0x5e3   :  { %v2255_v27 = vpop.permute.xlu0 %2254  ;;  %v2251_v45 = vpop.permute.xlu1 %2250 }
 0x5e4   :  { %v5269_v59 = vadd.f32 %v5864_v7, %v2255_v27 }
 0x5e7   :  { %v2263_v26 = vpop.permute.xlu0 %2262  ;;  %v2259_v2 = vpop.permute.xlu1 %2258 }
 0x5e8   :  { %v5256_v15 = vadd.f32 %v5861_v38, %v2263_v26  ;;  %v5259_v57 = vadd.f32 %v5862_v23, %v2259_v2  ;;  %v5275_v38 = vadd.f32 %v5865_v50, %v2251_v45 }
 0x5ea   :  { %v2412_v50 = vmax.f32 %v5269_v59, %v5256_v15 }
 0x5eb   :  { %v2338_v11 = vpop.permute.xlu0 %2337  ;;  %v2334_v46 = vpop.permute.xlu1 %2333 }
 0x5ec   :  { %v5253_v58 = vadd.f32 %v4866_v0, %v2338_v11  ;;  %v5262_v5 = vadd.f32 %v5860_v16, %v2334_v46 }
 0x5ee   :  { %v2435_v12 = vmax.f32 %v2433_v37, %v5253_v58  ;;  %v2434_v6 = vmax.f32 %v2432_v52, %v5262_v5 }
 0x5ef   :  { %v2271_v17 = vpop.permute.xlu0 %2270  ;;  %v2267_v30 = vpop.permute.xlu1 %2266 }
 0x5f0   :  { %v5278_v23 = vadd.f32 %v4866_v0, %v2271_v17  ;;  %v5281_v43 = vadd.f32 %v5860_v16, %v2267_v30  ;;  %v2411_v0 = vmax.f32 %v5275_v38, %v5259_v57 }
 0x5f2   :  { %v2414_v27 = vmax.f32 %v2412_v50, %v5278_v23  ;;  %v2413_v45 = vmax.f32 %v2411_v0, %v5281_v43 }
 0x5f3   :  { %v2346_v63 = vpop.permute.xlu0 %2345  ;;  %v2342_v19 = vpop.permute.xlu1 %2341 }
 0x5f4   :  { %v5272_v32 = vadd.f32 %v4895_v8, %v2346_v63  ;;  %v5284_v60 = vadd.f32 %v4912_v40, %v2342_v19 }
 0x5f6   :  { %v2437_v22 = vmax.f32 %v2435_v12, %v5272_v32  ;;  %v2436_v26 = vmax.f32 %v2434_v6, %v5284_v60 }
 0x5f7   :  { %v2279_v51 = vpop.permute.xlu0 %2278  ;;  %v2275_v21 = vpop.permute.xlu1 %2274 }
 0x5f8   :  { %v5300_v18 = vadd.f32 %v4895_v8, %v2279_v51  ;;  %v5303_v14 = vadd.f32 %v4912_v40, %v2275_v21 }
 0x5fa   :  { %v2416_v51 = vmax.f32 %v2414_v27, %v5300_v18  ;;  %v2415_v21 = vmax.f32 %v2413_v45, %v5303_v14 }
 0x5fb   :  { %v2354_v20 = vpop.permute.xlu0 %2353  ;;  %v2350_v25 = vpop.permute.xlu1 %2349 }
 0x5fc   :  { %v5288_v9 = vadd.f32 %v4921_v24, %v2354_v20  ;;  %v5296_v16 = vadd.f32 %v4934_v28, %v2350_v25 }
 0x5fe   :  { %v2439_v11 = vmax.f32 %v2437_v22, %v5288_v9  ;;  %v2438_v63 = vmax.f32 %v2436_v26, %v5296_v16 }
 0x5ff   :  { %v2287_v55 = vpop.permute.xlu0 %2286  ;;  %v2283_v33 = vpop.permute.xlu1 %2282 }
 0x600   :  { %v5316_v8 = vadd.f32 %v4921_v24, %v2287_v55  ;;  %v5319_v40 = vadd.f32 %v4934_v28, %v2283_v33 }
 0x602   :  { %v2418_v55 = vmax.f32 %v2416_v51, %v5316_v8  ;;  %v2417_v33 = vmax.f32 %v2415_v21, %v5319_v40 }
 0x603   :  { %v2362_v44 = vpop.permute.xlu0 %2361  ;;  %v2358_v4 = vpop.permute.xlu1 %2357 }
 0x604   :  { %v5306_v3 = vadd.f32 %v4949_v53, %v2362_v44  ;;  %v5312_v2 = vadd.f32 %v4960_v35, %v2358_v4 }
 0x606   :  { %v2441_v24 = vmax.f32 %v2439_v11, %v5306_v3  ;;  %v2440_v28 = vmax.f32 %v2438_v63, %v5312_v2 }
 0x607   :  { %v2295_v48 = vpop.permute.xlu0 %2294  ;;  %v2291_v1 = vpop.permute.xlu1 %2290 }
 0x608   :  { %v5332_v20 = vadd.f32 %v4949_v53, %v2295_v48  ;;  %v5336_v25 = vadd.f32 %v4960_v35, %v2291_v1 }
 0x60a   :  { %v2420_v1 = vmax.f32 %v2418_v55, %v5332_v20 }
 0x60b   :  { %v2370_v7 = vpop.permute.xlu0 %2369  ;;  %v2366_v42 = vpop.permute.xlu1 %2365 }
 0x60c   :  { %v5322_v46 = vadd.f32 %v4975_v56, %v2370_v7  ;;  %v5326_v19 = vadd.f32 %v4984_v47, %v2366_v42  ;;  %v2419_v7 = vmax.f32 %v2417_v33, %v5336_v25 }
 0x60e   :  { %v2443_v44 = vmax.f32 %v2441_v24, %v5322_v46  ;;  %v2442_v12 = vmax.f32 %v2440_v28, %v5326_v19 }
 0x60f   :  { %v2303_v17 = vpop.permute.xlu0 %2302  ;;  %v2299_v30 = vpop.permute.xlu1 %2298 }
 0x610   :  { %v5342_v4 = vadd.f32 %v4975_v56, %v2303_v17  ;;  %v5346_v53 = vadd.f32 %v4984_v47, %v2299_v30  ;;  %v5867_v47 = vlaneseq }
 0x612   :  { %v2422_v50 = vmax.f32 %v2420_v1, %v5342_v4  ;;  %v5360_v22 = vand.u32 127, %v5867_v47  ;;  %v2421_v27 = vmax.f32 %v2419_v7, %v5346_v53 }
 0x613   :  { %v2378_v37 = vpop.permute.xlu0 %2377  ;;  %v2374_v52 = vpop.permute.xlu1 %2373 }
 0x614   :  { %v5349_v48 = vadd.f32 %v5012_v54, %v2378_v37  ;;  %v5352_v35 = vadd.f32 %v5020_v34, %v2374_v52 }
 0x616   :  { %v2445_v56 = vmax.f32 %v2443_v44, %v5349_v48  ;;  %v2444_v42 = vmax.f32 %v2442_v12, %v5352_v35 }
 0x617   :  { %v2311_v0 = vpop.permute.xlu0 %2310  ;;  %v2307_v6 = vpop.permute.xlu1 %2306 }
 0x618   :  { %v2446_v45 = vmax.f32 %v2444_v42, %v2445_v56  ;;  %v5364_v26 = vadd.f32 %v5012_v54, %v2311_v0  ;;  %v5367_v11 = vadd.f32 %v5020_v34, %v2307_v6  ;;  %v3711_v34 = vmov 1.0  }
 0x61a   :  { %v2447_v17 = vrot.slane %v2446_v45, 4  ;;  %v2424_v30 = vmax.f32 %v2422_v50, %v5364_v26  ;;  %v2423_v63 = vmax.f32 %v2421_v27, %v5367_v11 }
 0x61b   :  { %v64_v51 = vpop.permute.xlu0 %63  ;;  %v57_v21 = vpop.permute.xlu1 %56 }
 0x61c   :  { %v2448_v24 = vmax.f32 %v2446_v45, %v2447_v17  ;;  %v2425_v28 = vmax.f32 %v2423_v63, %v2424_v30  ;;  %vm66_vm9 = vcmp.eq.s32.totalorder %v64_v51, %v5360_v22  ;;  %vm65_vm10 = vcmp.eq.s32.totalorder %v57_v21, %v5360_v22 }
 0x61d   :  { %v5374_v55 = vsel %vm66_vm9, 1.0, %v5831_v29  ;;  %v5377_v54 = vsel %vm65_vm10, 1.0, %v5831_v29  ;;  %3119 = vmatmul.mubr.msk.f32.vlgmr.msra.gmra.mxu0 %vm65_vm10, %v3711_v34  ;;  %3154 = vmatmul.mubr.msk.f32.vlgmr.msra.gmra.mxu1 %vm66_vm9, %v3711_v34 }
 0x61e   :  { %v2449_v33 = vrot.slane %v2448_v24, 2  ;;  %v238_v44 = vrot.slane %v5374_v55, 7  ;;  %v2426_v37 = vrot.slane %v2425_v28, 4 }
 0x620   :  { %v2450_v52 = vmax.f32 %v2448_v24, %v2449_v33  ;;  %v5382_v12 = vsel %vm239_vm0, %v238_v44, %v5377_v54  ;;  %v2427_v7 = vmax.f32 %v2425_v28, %v2426_v37 }
 0x621   :  { %5868 = vst [vmem:[#allocation12_spill] sm:$0xff] %v5382_v12  ;;  %v5869_v12 = vld [vmem:[#allocation5_spill] sm:$0xff] }
 0x622   :  { %v2451_v1 = vrot.slane %v2450_v52, 1  ;;  %v2428_v6 = vrot.slane %v2427_v7, 2 }
 0x624   :  { %v5384_v56 = vmax.f32 %v2450_v52, %v2451_v1  ;;  %v2429_v63 = vmax.f32 %v2427_v7, %v2428_v6 }
 0x626   :  { %v2469_v42 = vsub.f32 %v5250_v31, %v5384_v56  ;;  %v2470_v50 = vsub.f32 %v5247_v39, %v5384_v56  ;;  %v2471_v0 = vsub.f32 %v5244_v13, %v5384_v56  ;;  %v2472_v47 = vsub.f32 %v5241_v62, %v5384_v56 }
 0x627   :  { %v2473_v17 = vsub.f32 %v5262_v5, %v5384_v56  ;;  %v2474_v31 = vsub.f32 %v5253_v58, %v5384_v56  ;;  %v2475_v13 = vsub.f32 %v5284_v60, %v5384_v56  ;;  %v2430_v21 = vrot.slane %v2429_v63, 1 }
 0x628   :  { %v2517_v27 = vmul.f32 1.442695, %v2469_v42  ;;  %v2519_v45 = vmul.f32 1.442695, %v2470_v50  ;;  %v2521_v30 = vmul.f32 1.442695, %v2471_v0  ;;  %v2476_v62 = vsub.f32 %v5272_v32, %v5384_v56 }
 0x629   :  { %v2523_v39 = vmul.f32 1.442695, %v2472_v47  ;;  %v2525_v51 = vmul.f32 1.442695, %v2473_v17  ;;  %v2527_v24 = vmul.f32 1.442695, %v2474_v31  ;;  %v5402_v5 = vmax.f32 %v2429_v63, %v2430_v21 }
 0x62a   :  { %3505 = vpow2.f32 %v2517_v27  ;;  %v2477_v28 = vsub.f32 %v5296_v16, %v5384_v56  ;;  %v2478_v58 = vsub.f32 %v5288_v9, %v5384_v56  ;;  %v2529_v34 = vmul.f32 1.442695, %v2475_v13 }
 0x62b   :  { %3507 = vpow2.f32 %v2519_v45  ;;  %v2453_v60 = vsub.f32 %v5275_v38, %v5402_v5  ;;  %v2531_v33 = vmul.f32 1.442695, %v2476_v62  ;;  %v2454_v32 = vsub.f32 %v5269_v59, %v5402_v5 }
 0x62c   :  { %3509 = vpow2.f32 %v2521_v30  ;;  %v2479_v44 = vsub.f32 %v5312_v2, %v5384_v56  ;;  %v2533_v37 = vmul.f32 1.442695, %v2477_v28  ;;  %v2535_v52 = vmul.f32 1.442695, %v2478_v58 }
 0x62d   :  { %3511 = vpow2.f32 %v2523_v39  ;;  %v2455_v16 = vsub.f32 %v5259_v57, %v5402_v5  ;;  %v2480_v9 = vsub.f32 %v5306_v3, %v5384_v56  ;;  %v2485_v1 = vmul.f32 1.442695, %v2453_v60 }
 0x62e   :  { %3513 = vpow2.f32 %v2525_v51  ;;  %v2456_v38 = vsub.f32 %v5256_v15, %v5402_v5  ;;  %v2487_v42 = vmul.f32 1.442695, %v2454_v32  ;;  %v2481_v2 = vsub.f32 %v5326_v19, %v5384_v56 }
 0x62f   :  { %3515 = vpow2.f32 %v2527_v24  ;;  %v2537_v50 = vmul.f32 1.442695, %v2479_v44  ;;  %v2457_v57 = vsub.f32 %v5281_v43, %v5402_v5  ;;  %v2489_v6 = vmul.f32 1.442695, %v2455_v16 }
 0x630   :  { %3517 = vpow2.f32 %v2529_v34  ;;  %v2482_v47 = vsub.f32 %v5322_v46, %v5384_v56  ;;  %v2539_v27 = vmul.f32 1.442695, %v2480_v9  ;;  %v2458_v45 = vsub.f32 %v5278_v23, %v5402_v5 }
 0x631   :  { %3519 = vpow2.f32 %v2531_v33  ;;  %v2491_v19 = vmul.f32 1.442695, %v2456_v38  ;;  %v2483_v30 = vsub.f32 %v5352_v35, %v5384_v56  ;;  %v2541_v63 = vmul.f32 1.442695, %v2481_v2 }
 0x632   :  { %3521 = vpow2.f32 %v2533_v37  ;;  %v2459_v31 = vsub.f32 %v5303_v14, %v5402_v5  ;;  %v2493_v46 = vmul.f32 1.442695, %v2457_v57  ;;  %v2484_v13 = vsub.f32 %v5349_v48, %v5384_v56 }
 0x633   :  { %3523 = vpow2.f32 %v2535_v52  ;;  %v2543_v23 = vmul.f32 1.442695, %v2482_v47  ;;  %v2460_v21 = vsub.f32 %v5300_v18, %v5402_v5  ;;  %v2495_v35 = vmul.f32 1.442695, %v2458_v45 }
 0x634   :  { %3525 = vpow2.f32 %v2485_v1  ;;  %v2545_v24 = vmul.f32 1.442695, %v2483_v30  ;;  %v2461_v14 = vsub.f32 %v5319_v40, %v5402_v5  ;;  %v2497_v58 = vmul.f32 1.442695, %v2459_v31 }
 0x635   :  { %3527 = vpow2.f32 %v2487_v42  ;;  %v2547_v48 = vmul.f32 1.442695, %v2484_v13  ;;  %v2462_v33 = vsub.f32 %v5316_v8, %v5402_v5  ;;  %v2499_v18 = vmul.f32 1.442695, %v2460_v21 }
 0x636   :  { %3529 = vpow2.f32 %v2537_v50  ;;  %v2463_v52 = vsub.f32 %v5336_v25, %v5402_v5  ;;  %v2501_v40 = vmul.f32 1.442695, %v2461_v14  ;;  %v2465_v42 = vsub.f32 %v5346_v53, %v5402_v5 }
 0x637   :  { %v3506_v7 = vpop.eup %3505  ;;  %3531 = vpow2.f32 %v2489_v6  ;;  %v2503_v8 = vmul.f32 1.442695, %v2462_v33  ;;  %v2466_v57 = vsub.f32 %v5342_v4, %v5402_v5 }
 0x638   :  { %v3508_v59 = vpop.eup %3507  ;;  %3533 = vpow2.f32 %v2539_v27  ;;  %v2505_v50 = vmul.f32 1.442695, %v2463_v52 }
 0x639   :  { %v2570_v0 = vadd.f32 %v3508_v59, %v3506_v7  ;;  %v3510_v3 = vpop.eup %3509  ;;  %3535 = vpow2.f32 %v2491_v19  ;;  %v2464_v7 = vsub.f32 %v5332_v20, %v5402_v5  ;;  %v2509_v19 = vmul.f32 1.442695, %v2465_v42 }
 0x63a   :  { %v3512_v17 = vpop.eup %3511  ;;  %3537 = vpow2.f32 %v2541_v63  ;;  %v2468_v63 = vsub.f32 %v5364_v26, %v5402_v5  ;;  %v2511_v31 = vmul.f32 1.442695, %v2466_v57 }
 0x63b   :  { %v2571_v15 = vadd.f32 %v3510_v3, %v2570_v0  ;;  %v3514_v39 = vpop.eup %3513  ;;  %3539 = vpow2.f32 %v2493_v46  ;;  %v2507_v47 = vmul.f32 1.442695, %v2464_v7 }
 0x63c   :  { %v3516_v62 = vpop.eup %3515  ;;  %3541 = vpow2.f32 %v2543_v23 }
 0x63d   :  { %v2572_v43 = vadd.f32 %v3512_v17, %v2571_v15  ;;  %v3518_v34 = vpop.eup %3517  ;;  %3543 = vpow2.f32 %v2495_v35  ;;  %v2467_v15 = vsub.f32 %v5367_v11, %v5402_v5 }
 0x63e   :  { %v3520_v32 = vpop.eup %3519  ;;  %3545 = vpow2.f32 %v2545_v24  ;;  %v2515_v24 = vmul.f32 1.442695, %v2468_v63 }
 0x63f   :  { %v2573_v51 = vadd.f32 %v3514_v39, %v2572_v43  ;;  %v3522_v44 = vpop.eup %3521  ;;  %3547 = vpow2.f32 %v2497_v58 }
 0x640   :  { %v3524_v16 = vpop.eup %3523  ;;  %3549 = vpow2.f32 %v2547_v48 }
 0x641   :  { %v2574_v28 = vadd.f32 %v3516_v62, %v2573_v51  ;;  %v3526_v9 = vpop.eup %3525  ;;  %3551 = vpow2.f32 %v2499_v18  ;;  %v2513_v51 = vmul.f32 1.442695, %v2467_v15 }
 0x642   :  { %v3528_v38 = vpop.eup %3527  ;;  %3553 = vpow2.f32 %v2501_v40 }
 0x643   :  { %v2575_v60 = vadd.f32 %v3518_v34, %v2574_v28  ;;  %v3530_v59 = vpop.eup %3529  ;;  %v2549_v25 = vadd.f32 %v3528_v38, %v3526_v9  ;;  %3555 = vpow2.f32 %v2503_v8 }
 0x644   :  { %v3532_v0 = vpop.eup %3531  ;;  %3557 = vpow2.f32 %v2505_v50 }
 0x645   :  { %v2576_v37 = vadd.f32 %v3520_v32, %v2575_v60  ;;  %v3534_v6 = vpop.eup %3533  ;;  %v2550_v20 = vadd.f32 %v3532_v0, %v2549_v25  ;;  %3559 = vpow2.f32 %v2507_v47 }
 0x646   :  { %v3536_v27 = vpop.eup %3535  ;;  %3561 = vpow2.f32 %v2509_v19 }
 0x647   :  { %v2577_v1 = vadd.f32 %v3522_v44, %v2576_v37  ;;  %v3538_v45 = vpop.eup %3537  ;;  %v2551_v17 = vadd.f32 %v3536_v27, %v2550_v20  ;;  %3563 = vpow2.f32 %v2511_v31 }
 0x648   :  { %v3540_v30 = vpop.eup %3539  ;;  %3565 = vpow2.f32 %v2513_v51  ;;  %v2616_v51 = vld [vmem:[%s5786_s2 + $0xf] sm:$0x1] }
 0x649   :  { %v2578_v2 = vadd.f32 %v3524_v16, %v2577_v1  ;;  %v3542_v43 = vpop.eup %3541  ;;  %v2552_v46 = vadd.f32 %v3540_v30, %v2551_v17  ;;  %3567 = vpow2.f32 %v2515_v24  ;;  %v2608_v17 = vpop.permute.xlu1 %2607  ;;  %vm2972_vm13 = vcmp.gt.s32.totalorder %v2616_v51, 0 }
 0x64a   :  { %v3544_v39 = vpop.eup %3543  ;;  %vm2610_vm11 = vcmp.eq.s32.totalorder %v2608_v17, 1 }
 0x64b   :  { %v2579_v3 = vadd.f32 %v3530_v59, %v2578_v2  ;;  %v3546_v13 = vpop.eup %3545  ;;  %v2553_v11 = vadd.f32 %v3544_v39, %v2552_v46  ;;  %v2241_v46 = vld [vmem:[%s5784_s0 + $0x6] sm:$0x1] }
 0x64c   :  { %v3548_v21 = vpop.eup %3547 }
 0x64d   :  { %v2580_v53 = vadd.f32 %v3534_v6, %v2579_v3  ;;  %v3550_v35 = vpop.eup %3549  ;;  %v2554_v28 = vadd.f32 %v3548_v21, %v2553_v11 }
 0x64e   :  { %v3552_v14 = vpop.eup %3551 }
 0x64f   :  { %v2581_v4 = vadd.f32 %v3538_v45, %v2580_v53  ;;  %v2555_v26 = vadd.f32 %v3552_v14, %v2554_v28  ;;  %v3554_v34 = vpop.eup %3553  ;;  %v2242_v53 = vld [vmem:[%s5784_s0 + $0xe] sm:$0x1]  ;;  %v219_v28 = vrot.slane %v5377_v54, 1 }
 0x650   :  { %v3556_v33 = vpop.eup %3555 }
 0x651   :  { %v2582_v23 = vadd.f32 %v3542_v43, %v2581_v4  ;;  %v2556_v48 = vadd.f32 %v3554_v34, %v2555_v26  ;;  %v3558_v44 = vpop.eup %3557 }
 0x652   :  { %v3560_v40 = vpop.eup %3559 }
 0x653   :  { %v2583_v62 = vadd.f32 %v3546_v13, %v2582_v23  ;;  %v2557_v18 = vadd.f32 %v3556_v33, %v2556_v48  ;;  %v3562_v1 = vpop.eup %3561  ;;  %v220_v33 = vrot.slane %v5374_v55, 1 }
 0x654   :  { %v3564_v38 = vpop.eup %3563 }
 0x655   :  { %v2584_v58 = vadd.f32 %v3550_v35, %v2583_v62  ;;  %v2558_v37 = vadd.f32 %v3558_v44, %v2557_v18  ;;  %v3566_v2 = vpop.eup %3565  ;;  %v2615_v35 = vld [vmem:[%s5786_s2 + $0x7] sm:$0x1]  ;;  %v2974_v62 = vsel %vm2972_vm13, 1, %v5866_v49 }
 0x656   :  { %v3568_v25 = vpop.eup %3567  ;;  %vm2971_vm14 = vcmp.gt.s32.totalorder %v2615_v35, 0  ;;  %v3679_v18 = vld [vmem:[%s5784_s0] sm:$0xff] }
 0x657   :  { %v2585_v60 = vrot.slane %v2584_v58, 4  ;;  %v2559_v16 = vadd.f32 %v3560_v40, %v2558_v37  ;;  %v2973_v24 = vsel %vm2971_vm14, 1, %v5866_v49  ;;  %v5505_v40 = vld [vmem:[%s5788_s4] ss:$0 sm:$0xff] }
 0x659   :  { %v2586_v32 = vadd.f32 %v2585_v60, %v2584_v58  ;;  %v2560_v7 = vadd.f32 %v3562_v1, %v2559_v16  ;;  %v298_v16 = vmul.f32 %v5505_v40, %v5374_v55 }
 0x65b   :  { %v2587_v52 = vrot.slane %v2586_v32, 2  ;;  %v2561_v42 = vadd.f32 %v3564_v38, %v2560_v7  ;;  %v3680_v7 = vld [vmem:[%s5789_s5 + $0x8] sm:$0xff]  ;;  %v3681_v38 = vld [vmem:[%s5789_s5] sm:$0xff] }
 0x65d   :  { %v2588_v9 = vadd.f32 %v2587_v52, %v2586_v32  ;;  %v2562_v50 = vadd.f32 %v3566_v2, %v2561_v42  ;;  %v71_v32 = vmul.f32 %v3679_v18, %v5377_v54 }
 0x65f   :  { %v2589_v8 = vrot.slane %v2588_v9, 1  ;;  %v2563_v0 = vadd.f32 %v3568_v25, %v2562_v50  ;;  %v3683_v50 = vld [vmem:[%s5789_s5 + $0x10] sm:$0xff] }
 0x661   :  { %v2590_v59 = vadd.f32 %v2589_v8, %v2588_v9  ;;  %v2564_v57 = vrot.slane %v2563_v0, 4 }
 0x663   :  { %3569 = vlog2.f32 %v2590_v59  ;;  %v2565_v6 = vadd.f32 %v2564_v57, %v2563_v0  ;;  %v3682_v59 = vld [vmem:[%s5789_s5 + $0x18] sm:$0xff] }
 0x665   :  { %v2566_v3 = vrot.slane %v2565_v6, 2 }
 0x667   :  { %v2567_v47 = vadd.f32 %v2566_v3, %v2565_v6 }
 0x669   :  { %v2568_v20 = vrot.slane %v2567_v47, 1 }
 0x66b   :  { %v2569_v15 = vadd.f32 %v2568_v20, %v2567_v47 }
 0x66d   :  { %3571 = vlog2.f32 %v2569_v15 }
 0x670   :  { %v3570_v27 = vpop.eup %3569 }
 0x671   :  { %v2594_v45 = vmul.f32 0.6931472, %v3570_v27 }
 0x673   :  { %v2596_v19 = vadd.f32 %v2594_v45, %v5384_v56  ;;  %v2605_v56 = vpop.permute.xlu0 %2604 }
 0x674   :  { %vm2609_vm12 = vcmp.eq.s32.totalorder %v2605_v56, 1 }
 0x675   :  { %v2598_v30 = vadd.f32 %v2596_v19, %v2242_v53 }
 0x677   :  { %v5457_v63 = vsel %vm2610_vm11, %v2598_v30, %v5112_v36 }
 0x678   :  { %v2687_v43 = vrot.slane %v5457_v63, %v3769_v10 }
 0x67a   :  { %2693 = vbcast.lane.b32.xlu0 %v2687_v43, 264  ;;  %2689 = vbcast.lane.b32.xlu1 %v2687_v43, 256  ;;  %v3572_v4 = vpop.eup %3571 }
 0x67b   :  { %v2592_v31 = vmul.f32 0.6931472, %v3572_v4  ;;  %v3684_v4 = vld [vmem:[%s5789_s5 + $0x28] sm:$0xff] }
 0x67d   :  { %v2595_v39 = vadd.f32 %v2592_v31, %v5402_v5  ;;  %v5478_v5 = vld [vmem:[%s5786_s2] sm:$0xff] }
 0x67e   :  { %2701 = vbcast.lane.b32.xlu0 %v2687_v43, 280  ;;  %2697 = vbcast.lane.b32.xlu1 %v2687_v43, 272  ;;  %v5830_v21 = vcvt.s32.f32 %v5478_v5 }
 0x67f   :  { %v2597_v13 = vadd.f32 %v2595_v39, %v2241_v46  ;;  %v3685_v46 = vld [vmem:[%s5789_s5 + $0x20] sm:$0xff] }
 0x681   :  { %v5466_v36 = vsel %vm2609_vm12, %v2597_v13, %v5127_v61  ;;  %v5473_v61 = vld [vmem:[%s5786_s2 + $0x8] sm:$0xff] }
 0x682   :  { %v2620_v23 = vrot.slane %v5466_v36, %v3769_v10  ;;  %v5829_v11 = vcvt.s32.f32 %v5473_v61 }
 0x684   :  { %2626 = vbcast.lane.b32.xlu0 %v2620_v23, 264  ;;  %2622 = vbcast.lane.b32.xlu1 %v2620_v23, 256 }
 0x688   :  { %2634 = vbcast.lane.b32.xlu0 %v2620_v23, 280  ;;  %2630 = vbcast.lane.b32.xlu1 %v2620_v23, 272 }
 0x68c   :  { %2709 = vbcast.lane.b32.xlu0 %v2687_v43, 296  ;;  %2705 = vbcast.lane.b32.xlu1 %v2687_v43, 288 }
 0x690   :  { %2642 = vbcast.lane.b32.xlu0 %v2620_v23, 296  ;;  %2638 = vbcast.lane.b32.xlu1 %v2620_v23, 288 }
 0x694   :  { %2717 = vbcast.lane.b32.xlu0 %v2687_v43, 312  ;;  %2713 = vbcast.lane.b32.xlu1 %v2687_v43, 304 }
 0x698   :  { %2650 = vbcast.lane.b32.xlu0 %v2620_v23, 312  ;;  %2646 = vbcast.lane.b32.xlu1 %v2620_v23, 304 }
 0x69c   :  { %2725 = vbcast.lane.b32.xlu0 %v2687_v43, 328  ;;  %2721 = vbcast.lane.b32.xlu1 %v2687_v43, 320 }
 0x6a0   :  { %2658 = vbcast.lane.b32.xlu0 %v2620_v23, 328  ;;  %2654 = vbcast.lane.b32.xlu1 %v2620_v23, 320 }
 0x6a4   :  { %2733 = vbcast.lane.b32.xlu0 %v2687_v43, 344  ;;  %2729 = vbcast.lane.b32.xlu1 %v2687_v43, 336 }
 0x6a8   :  { %2666 = vbcast.lane.b32.xlu0 %v2620_v23, 344  ;;  %2662 = vbcast.lane.b32.xlu1 %v2620_v23, 336 }
 0x6ac   :  { %2741 = vbcast.lane.b32.xlu0 %v2687_v43, 360  ;;  %2737 = vbcast.lane.b32.xlu1 %v2687_v43, 352 }
 0x6b0   :  { %2674 = vbcast.lane.b32.xlu0 %v2620_v23, 360  ;;  %2670 = vbcast.lane.b32.xlu1 %v2620_v23, 352 }
 0x6b4   :  { %2749 = vbcast.lane.b32.xlu0 %v2687_v43, 376  ;;  %2745 = vbcast.lane.b32.xlu1 %v2687_v43, 368 }
 0x6b8   :  { %2682 = vbcast.lane.b32.xlu0 %v2620_v23, 376  ;;  %2678 = vbcast.lane.b32.xlu1 %v2620_v23, 368 }
 0x6bc   :  { %309 = vperm.xlu0 %3163, %v5829_v11   ;;  %306 = vperm.xlu1 %3164, %v5830_v21  }
 0x6c0   :  { %2979 = vperm.xlu0 %3163, %v2974_v62  }
 0x6c4   :  { %2976 = vperm.xlu0 %3163, %v2973_v24  }
 0x6dd   :  { %v143_v14 = vpop.f32.mrf.mxu0  ;;  %v213_v58 = vpop.f32.mrf.mxu1 }
 0x6de   :  { %v223_v26 = vmul.f32 %v219_v28, %v143_v14  ;;  %v224_v49 = vmul.f32 %v220_v33, %v213_v58 }
 0x6df   :  { %v3120_v34 = vpop.f32.mrf.mxu0  ;;  %v3155_v48 = vpop.f32.mrf.mxu1 }
 0x6e0   :  { %v5495_v60 = vsel %vm225_vm15, %v223_v26, 0.0  ;;  %v229_v44 = vsel %vm225_vm15, %v224_v49, 0.0  ;;  %v3686_v26 = vld [vmem:[%s5789_s5 + $0x38] sm:$0xff]  ;;  %v3687_v48 = vld [vmem:[%s5789_s5 + $0x30] sm:$0xff] }
 0x6e3   :  { %73 = vadd.xlane.f32.xlu0 %v71_v32 }
 0x6e7   :  { %230 = vadd.xlane.f32.xlu0 %v229_v44 }
 0x6eb   :  { %301 = vadd.xlane.f32.xlu0 %v298_v16 }
 0x6ec   :  { %v2694_v37 = vpop.permute.xlu0 %2693  ;;  %v2690_v52 = vpop.permute.xlu1 %2689 }
 0x6ed   :  { %v5512_v8 = vadd.f32 %v3680_v7, %v2694_v37  ;;  %v5517_v42 = vadd.f32 %v3681_v38, %v2690_v52 }
 0x6f0   :  { %v2702_v9 = vpop.permute.xlu0 %2701  ;;  %v2698_v1 = vpop.permute.xlu1 %2697 }
 0x6f1   :  { %v5522_v2 = vadd.f32 %v3682_v59, %v2702_v9  ;;  %v5527_v25 = vadd.f32 %v3683_v50, %v2698_v1 }
 0x6f3   :  { %v2805_v0 = vmax.f32 %v5512_v8, %v5522_v2  ;;  %v2804_v57 = vmax.f32 %v5517_v42, %v5527_v25 }
 0x6f6   :  { %v2627_v6 = vpop.permute.xlu0 %2626  ;;  %v2623_v3 = vpop.permute.xlu1 %2622 }
 0x6f7   :  { %v5533_v27 = vadd.f32 %v3680_v7, %v2627_v6  ;;  %v5535_v15 = vadd.f32 %v3681_v38, %v2623_v3  ;;  %v3688_v38 = vld [vmem:[%s5789_s5 + $0x48] sm:$0xff] }
 0x6fa   :  { %v2635_v47 = vpop.permute.xlu0 %2634  ;;  %v2631_v20 = vpop.permute.xlu1 %2630 }
 0x6fb   :  { %v5537_v45 = vadd.f32 %v3682_v59, %v2635_v47  ;;  %v5539_v53 = vadd.f32 %v3683_v50, %v2631_v20  ;;  %v3689_v50 = vld [vmem:[%s5789_s5 + $0x40] sm:$0xff] }
 0x6fd   :  { %v2784_v19 = vmax.f32 %v5533_v27, %v5537_v45  ;;  %v2783_v17 = vmax.f32 %v5535_v15, %v5539_v53 }
 0x6fe   :  { %v2710_v30 = vpop.permute.xlu0 %2709  ;;  %v2706_v43 = vpop.permute.xlu1 %2705 }
 0x6ff   :  { %v5548_v31 = vadd.f32 %v3684_v4, %v2710_v30  ;;  %v5553_v56 = vadd.f32 %v3685_v46, %v2706_v43 }
 0x701   :  { %v2807_v39 = vmax.f32 %v2805_v0, %v5548_v31  ;;  %v2806_v13 = vmax.f32 %v2804_v57, %v5553_v56 }
 0x702   :  { %v2643_v23 = vpop.permute.xlu0 %2642  ;;  %v2639_v51 = vpop.permute.xlu1 %2638 }
 0x703   :  { %v5557_v35 = vadd.f32 %v3684_v4, %v2643_v23  ;;  %v5559_v62 = vadd.f32 %v3685_v46, %v2639_v51  ;;  %v3690_v46 = vld [vmem:[%s5789_s5 + $0x58] sm:$0xff] }
 0x705   :  { %v2786_v24 = vmax.f32 %v2784_v19, %v5557_v35  ;;  %v2785_v28 = vmax.f32 %v2783_v17, %v5559_v62 }
 0x706   :  { %v2718_v14 = vpop.permute.xlu0 %2717  ;;  %v2714_v58 = vpop.permute.xlu1 %2713 }
 0x707   :  { %v5566_v34 = vadd.f32 %v3686_v26, %v2718_v14  ;;  %v5571_v33 = vadd.f32 %v3687_v48, %v2714_v58 }
 0x709   :  { %v2809_v18 = vmax.f32 %v2807_v39, %v5566_v34  ;;  %v2808_v32 = vmax.f32 %v2806_v13, %v5571_v33  ;;  %v3691_v13 = vld [vmem:[%s5789_s5 + $0x50] sm:$0xff] }
 0x70a   :  { %v2651_v49 = vpop.permute.xlu0 %2650  ;;  %v2647_v44 = vpop.permute.xlu1 %2646 }
 0x70b   :  { %v5575_v37 = vadd.f32 %v3686_v26, %v2651_v49  ;;  %v5577_v52 = vadd.f32 %v3687_v48, %v2647_v44  ;;  %v3692_v44 = vld [vmem:[%s5789_s5 + $0x68] sm:$0xff] }
 0x70d   :  { %v2788_v16 = vmax.f32 %v2786_v24, %v5575_v37  ;;  %v2787_v9 = vmax.f32 %v2785_v28, %v5577_v52 }
 0x70e   :  { %v2726_v1 = vpop.permute.xlu0 %2725  ;;  %v2722_v7 = vpop.permute.xlu1 %2721 }
 0x70f   :  { %v5584_v59 = vadd.f32 %v3688_v38, %v2726_v1  ;;  %v5589_v0 = vadd.f32 %v3689_v50, %v2722_v7 }
 0x711   :  { %v2811_v57 = vmax.f32 %v2809_v18, %v5584_v59  ;;  %v2810_v6 = vmax.f32 %v2808_v32, %v5589_v0 }
 0x712   :  { %v2659_v3 = vpop.permute.xlu0 %2658  ;;  %v2655_v47 = vpop.permute.xlu1 %2654 }
 0x713   :  { %v5593_v20 = vadd.f32 %v3688_v38, %v2659_v3  ;;  %v5595_v19 = vadd.f32 %v3689_v50, %v2655_v47 }
 0x715   :  { %v2790_v17 = vmax.f32 %v2788_v16, %v5593_v20  ;;  %v2789_v30 = vmax.f32 %v2787_v9, %v5595_v19  ;;  %v3693_v9 = vld [vmem:[%s5789_s5 + $0x60] sm:$0xff] }
 0x716   :  { %v2734_v43 = vpop.permute.xlu0 %2733  ;;  %v2730_v4 = vpop.permute.xlu1 %2729 }
 0x717   :  { %v5602_v39 = vadd.f32 %v3690_v46, %v2734_v43  ;;  %v5607_v23 = vadd.f32 %v3691_v13, %v2730_v4  ;;  %v3694_v4 = vld [vmem:[%s5789_s5 + $0x78] sm:$0xff] }
 0x719   :  { %v2813_v51 = vmax.f32 %v2811_v57, %v5602_v39  ;;  %v2812_v24 = vmax.f32 %v2810_v6, %v5607_v23 }
 0x71a   :  { %v2667_v28 = vpop.permute.xlu0 %2666  ;;  %v2663_v14 = vpop.permute.xlu1 %2662 }
 0x71b   :  { %v5611_v58 = vadd.f32 %v3690_v46, %v2667_v28  ;;  %v5613_v26 = vadd.f32 %v3691_v13, %v2663_v14  ;;  %v3695_v13 = vld [vmem:[%s5789_s5 + $0x70] sm:$0xff] }
 0x71d   :  { %v2792_v48 = vmax.f32 %v2790_v17, %v5611_v58  ;;  %v2791_v18 = vmax.f32 %v2789_v30, %v5613_v26 }
 0x71e   :  { %v2742_v32 = vpop.permute.xlu0 %2741  ;;  %v2738_v49 = vpop.permute.xlu1 %2737 }
 0x71f   :  { %v5620_v16 = vadd.f32 %v3692_v44, %v2742_v32  ;;  %v5625_v1 = vadd.f32 %v3693_v9, %v2738_v49 }
 0x721   :  { %v2815_v7 = vmax.f32 %v2813_v51, %v5620_v16  ;;  %v2814_v38 = vmax.f32 %v2812_v24, %v5625_v1 }
 0x722   :  { %v2675_v50 = vpop.permute.xlu0 %2674  ;;  %v2671_v57 = vpop.permute.xlu1 %2670 }
 0x723   :  { %v5629_v6 = vadd.f32 %v3692_v44, %v2675_v50  ;;  %v5631_v3 = vadd.f32 %v3693_v9, %v2671_v57 }
 0x725   :  { %v2794_v47 = vmax.f32 %v2792_v48, %v5629_v6  ;;  %v2793_v17 = vmax.f32 %v2791_v18, %v5631_v3 }
 0x726   :  { %v2750_v30 = vpop.permute.xlu0 %2749  ;;  %v2746_v43 = vpop.permute.xlu1 %2745 }
 0x727   :  { %v5638_v46 = vadd.f32 %v3694_v4, %v2750_v30  ;;  %v5643_v51 = vadd.f32 %v3695_v13, %v2746_v43 }
 0x729   :  { %v2817_v24 = vmax.f32 %v2815_v7, %v5638_v46  ;;  %v2816_v28 = vmax.f32 %v2814_v38, %v5643_v51 }
 0x72a   :  { %v2683_v14 = vpop.permute.xlu0 %2682  ;;  %v2679_v48 = vpop.permute.xlu1 %2678 }
 0x72b   :  { %v2818_v18 = vmax.f32 %v2816_v28, %v2817_v24  ;;  %v5647_v32 = vadd.f32 %v3694_v4, %v2683_v14  ;;  %v5649_v49 = vadd.f32 %v3695_v13, %v2679_v48  ;;  %v5657_v4 = vsub.s32 %v5360_v22, %v5869_v12 }
 0x72d   :  { %v2819_v44 = vrot.slane %v2818_v18, 4  ;;  %v2796_v9 = vmax.f32 %v2794_v47, %v5647_v32  ;;  %v2795_v50 = vmax.f32 %v2793_v17, %v5649_v49 }
 0x72f   :  { %v2820_v57 = vmax.f32 %v2818_v18, %v2819_v44  ;;  %v2797_v30 = vmax.f32 %v2795_v50, %v2796_v9 }
 0x731   :  { %v2821_v43 = vrot.slane %v2820_v57, 2  ;;  %v2798_v11 = vrot.slane %v2797_v30, 4 }
 0x733   :  { %v2822_v21 = vmax.f32 %v2820_v57, %v2821_v43  ;;  %v2799_v29 = vmax.f32 %v2797_v30, %v2798_v11 }
 0x735   :  { %v2823_v7 = vrot.slane %v2822_v21, 1  ;;  %v2800_v14 = vrot.slane %v2799_v29, 2 }
 0x737   :  { %v5653_v38 = vmax.f32 %v2822_v21, %v2823_v7  ;;  %v310_v17 = vpop.permute.xlu0 %309  ;;  %v307_v24 = vpop.permute.xlu1 %306 }
 0x738   :  { %v318_v21 = vrot.slane %v310_v17, %v5657_v4  ;;  %v314_v48 = vrot.slane %v307_v24, %v5657_v4  ;;  %v3696_v17 = vld [vmem:[%s5784_s0 + $0x8] sm:$0xff] }
 0x739   :  { %v2841_v13 = vsub.f32 %v5517_v42, %v5653_v38  ;;  %v2842_v47 = vsub.f32 %v5512_v8, %v5653_v38  ;;  %v2843_v28 = vsub.f32 %v5527_v25, %v5653_v38  ;;  %v2844_v11 = vsub.f32 %v5522_v2, %v5653_v38 }
 0x73a   :  { %v2845_v42 = vsub.f32 %v5553_v56, %v5653_v38  ;;  %v2801_v8 = vmax.f32 %v2799_v29, %v2800_v14  ;;  %v2846_v25 = vsub.f32 %v5548_v31, %v5653_v38  ;;  %v319_v2 = vsel %vm239_vm0, %v318_v21, %v314_v48 }
 0x73b   :  { %v2889_v18 = vmul.f32 1.442695, %v2841_v13  ;;  %v2891_v44 = vmul.f32 1.442695, %v2842_v47  ;;  %v2893_v9 = vmul.f32 1.442695, %v2843_v28  ;;  %v2847_v57 = vsub.f32 %v5571_v33, %v5653_v38 }
 0x73c   :  { %v2895_v50 = vmul.f32 1.442695, %v2844_v11  ;;  %v2897_v30 = vmul.f32 1.442695, %v2845_v42  ;;  %v2802_v43 = vrot.slane %v2801_v8, 1  ;;  %v322_v7 = vsel %vm321_vm1, %v319_v2, 0.0 }
 0x73d   :  { %3573 = vpow2.f32 %v2889_v18  ;;  %v2848_v29 = vsub.f32 %v5566_v34, %v5653_v38  ;;  %v2899_v56 = vmul.f32 1.442695, %v2846_v25  ;;  %323 = vadd.xlane.f32.xlu1 %v322_v7  ;;  %v2849_v31 = vsub.f32 %v5589_v0, %v5653_v38 }
 0x73e   :  { %3575 = vpow2.f32 %v2891_v44  ;;  %v5679_v13 = vmax.f32 %v2801_v8, %v2802_v43  ;;  %v2850_v47 = vsub.f32 %v5584_v59, %v5653_v38  ;;  %v2901_v33 = vmul.f32 1.442695, %v2847_v57 }
 0x73f   :  { %3577 = vpow2.f32 %v2893_v9  ;;  %v72_v24 = vmul.f32 %v3696_v17, %v5374_v55  ;;  %v2903_v28 = vmul.f32 1.442695, %v2848_v29  ;;  %v2851_v59 = vsub.f32 %v5607_v23, %v5653_v38 }
 0x740   :  { %3579 = vpow2.f32 %v2895_v50  ;;  %v2825_v34 = vsub.f32 %v5535_v15, %v5679_v13  ;;  %v2826_v14 = vsub.f32 %v5533_v27, %v5679_v13  ;;  %v2905_v0 = vmul.f32 1.442695, %v2849_v31 }
 0x741   :  { %3581 = vpow2.f32 %v2897_v30  ;;  %75 = vadd.xlane.f32.xlu1 %v72_v24  ;;  %v2907_v11 = vmul.f32 1.442695, %v2850_v47  ;;  %v2827_v21 = vsub.f32 %v5539_v53, %v5679_v13  ;;  %v2852_v55 = vsub.f32 %v5602_v39, %v5653_v38 }
 0x742   :  { %3583 = vpow2.f32 %v2899_v56  ;;  %v2857_v48 = vmul.f32 1.442695, %v2825_v34  ;;  %v2828_v18 = vsub.f32 %v5537_v45, %v5679_v13  ;;  %v2859_v27 = vmul.f32 1.442695, %v2826_v14 }
 0x743   :  { %3585 = vpow2.f32 %v2901_v33  ;;  %v2853_v23 = vsub.f32 %v5625_v1, %v5653_v38  ;;  %v2909_v42 = vmul.f32 1.442695, %v2851_v59  ;;  %v297_v53 = vmul.f32 %v5505_v40, %v5377_v54 }
 0x744   :  { %3587 = vpow2.f32 %v2903_v28  ;;  %v2829_v9 = vsub.f32 %v5559_v62, %v5679_v13  ;;  %v2861_v8 = vmul.f32 1.442695, %v2827_v21  ;;  %v2854_v45 = vsub.f32 %v5620_v16, %v5653_v38 }
 0x745   :  { %227 = vadd.xlane.f32.xlu1 %v5495_v60  ;;  %3589 = vpow2.f32 %v2905_v0  ;;  %v2911_v60 = vmul.f32 1.442695, %v2852_v55  ;;  %v2830_v1 = vsub.f32 %v5557_v35, %v5679_v13  ;;  %v2863_v2 = vmul.f32 1.442695, %v2828_v18 }
 0x746   :  { %3591 = vpow2.f32 %v2907_v11  ;;  %v2855_v57 = vsub.f32 %v5643_v51, %v5653_v38  ;;  %v2913_v62 = vmul.f32 1.442695, %v2853_v23  ;;  %v2831_v43 = vsub.f32 %v5577_v52, %v5679_v13 }
 0x747   :  { %3593 = vpow2.f32 %v2857_v48  ;;  %v2865_v16 = vmul.f32 1.442695, %v2829_v9  ;;  %v2856_v29 = vsub.f32 %v5638_v46, %v5653_v38  ;;  %v2915_v35 = vmul.f32 1.442695, %v2854_v45 }
 0x748   :  { %3595 = vpow2.f32 %v2859_v27  ;;  %v2832_v31 = vsub.f32 %v5575_v37, %v5679_v13  ;;  %v2867_v51 = vmul.f32 1.442695, %v2830_v1  ;;  %v2917_v33 = vmul.f32 1.442695, %v2855_v57 }
 0x749   :  { %299 = vadd.xlane.f32.xlu1 %v297_v53  ;;  %3597 = vpow2.f32 %v2909_v42  ;;  %v2833_v52 = vsub.f32 %v5595_v19, %v5679_v13  ;;  %v2869_v24 = vmul.f32 1.442695, %v2831_v43  ;;  %v2919_v46 = vmul.f32 1.442695, %v2856_v29 }
 0x74a   :  { %v3574_v15 = vpop.eup %3573  ;;  %3599 = vpow2.f32 %v2861_v8  ;;  %v2834_v14 = vsub.f32 %v5593_v20, %v5679_v13  ;;  %v2871_v37 = vmul.f32 1.442695, %v2832_v31  ;;  %v2835_v21 = vsub.f32 %v5613_v26, %v5679_v13 }
 0x74b   :  { %v3576_v44 = vpop.eup %3575  ;;  %3601 = vpow2.f32 %v2911_v60  ;;  %v2873_v19 = vmul.f32 1.442695, %v2833_v52  ;;  %v2836_v18 = vsub.f32 %v5611_v58, %v5679_v13  ;;  %v2838_v9 = vsub.f32 %v5629_v6, %v5679_v13 }
 0x74c   :  { %v2942_v39 = vadd.f32 %v3576_v44, %v3574_v15  ;;  %v3578_v25 = vpop.eup %3577  ;;  %3603 = vpow2.f32 %v2863_v2  ;;  %v2875_v20 = vmul.f32 1.442695, %v2834_v14  ;;  %v2837_v44 = vsub.f32 %v5631_v3, %v5679_v13 }
 0x74d   :  { %v3580_v54 = vpop.eup %3579  ;;  %3605 = vpow2.f32 %v2913_v62  ;;  %v2877_v53 = vmul.f32 1.442695, %v2835_v21  ;;  %v2879_v45 = vmul.f32 1.442695, %v2836_v18  ;;  %v2840_v62 = vsub.f32 %v5647_v32, %v5679_v13 }
 0x74e   :  { %v2943_v50 = vadd.f32 %v3578_v25, %v2942_v39  ;;  %v3582_v7 = vpop.eup %3581  ;;  %3607 = vpow2.f32 %v2865_v16  ;;  %v2881_v2 = vmul.f32 1.442695, %v2837_v44  ;;  %v2883_v43 = vmul.f32 1.442695, %v2838_v9 }
 0x74f   :  { %v3584_v47 = vpop.eup %3583  ;;  %3609 = vpow2.f32 %v2915_v35 }
 0x750   :  { %v2944_v30 = vadd.f32 %v3580_v54, %v2943_v50  ;;  %v3586_v34 = vpop.eup %3585  ;;  %3611 = vpow2.f32 %v2867_v51  ;;  %v2839_v50 = vsub.f32 %v5649_v49, %v5679_v13 }
 0x751   :  { %v3588_v59 = vpop.eup %3587  ;;  %3613 = vpow2.f32 %v2917_v33  ;;  %v2887_v33 = vmul.f32 1.442695, %v2840_v62  ;;  %v5870_v62 = vmov 0.0  }
 0x752   :  { %v2945_v56 = vadd.f32 %v3582_v7, %v2944_v30  ;;  %v3590_v0 = vpop.eup %3589  ;;  %3615 = vpow2.f32 %v2869_v24 }
 0x753   :  { %v3592_v55 = vpop.eup %3591  ;;  %3617 = vpow2.f32 %v2919_v46 }
 0x754   :  { %v2946_v17 = vadd.f32 %v3584_v47, %v2945_v56  ;;  %v3594_v48 = vpop.eup %3593  ;;  %3619 = vpow2.f32 %v2871_v37  ;;  %v2885_v56 = vmul.f32 1.442695, %v2839_v50 }
 0x755   :  { %v3596_v27 = vpop.eup %3595  ;;  %3621 = vpow2.f32 %v2873_v19 }
 0x756   :  { %v2947_v28 = vadd.f32 %v3586_v34, %v2946_v17  ;;  %v3598_v23 = vpop.eup %3597  ;;  %v2921_v26 = vadd.f32 %v3596_v27, %v3594_v48  ;;  %3623 = vpow2.f32 %v2875_v20 }
 0x757   :  { %v3600_v39 = vpop.eup %3599  ;;  %3625 = vpow2.f32 %v2877_v53 }
 0x758   :  { %v2948_v11 = vadd.f32 %v3588_v59, %v2947_v28  ;;  %v3602_v8 = vpop.eup %3601  ;;  %v2922_v58 = vadd.f32 %v3600_v39, %v2921_v26  ;;  %3627 = vpow2.f32 %v2879_v45 }
 0x759   :  { %v3604_v60 = vpop.eup %3603  ;;  %3629 = vpow2.f32 %v2881_v2 }
 0x75a   :  { %v2949_v15 = vadd.f32 %v3590_v0, %v2948_v11  ;;  %v3606_v1 = vpop.eup %3605  ;;  %v2923_v54 = vadd.f32 %v3604_v60, %v2922_v58  ;;  %3631 = vpow2.f32 %v2883_v43 }
 0x75b   :  { %v3608_v57 = vpop.eup %3607  ;;  %3633 = vpow2.f32 %v2885_v56 }
 0x75c   :  { %v2950_v42 = vadd.f32 %v3592_v55, %v2949_v15  ;;  %v3610_v30 = vpop.eup %3609  ;;  %v2924_v16 = vadd.f32 %v3608_v57, %v2923_v54  ;;  %3635 = vpow2.f32 %v2887_v33  ;;  %v5871_v33 = vcvt.s32.f32 %v5478_v5  ;;  %v2613_v5 = vld [vmem:[%s5784_s0 + $0x7] sm:$0x1] }
 0x75d   :  { %v3612_v7 = vpop.eup %3611 }
 0x75e   :  { %v2951_v25 = vadd.f32 %v3598_v23, %v2950_v42  ;;  %v3614_v29 = vpop.eup %3613  ;;  %v2925_v49 = vadd.f32 %v3612_v7, %v2924_v16 }
 0x75f   :  { %v3616_v31 = vpop.eup %3615 }
 0x760   :  { %v2952_v3 = vadd.f32 %v3602_v8, %v2951_v25  ;;  %v3618_v51 = vpop.eup %3617  ;;  %v2926_v17 = vadd.f32 %v3616_v31, %v2925_v49  ;;  %v2980_v8 = vpop.permute.xlu0 %2979 }
 0x761   :  { %v3620_v52 = vpop.eup %3619  ;;  %vm2982_vm3 = vcmp.eq.s32.totalorder %v2980_v8, 1 }
 0x762   :  { %v2953_v6 = vadd.f32 %v3606_v1, %v2952_v3  ;;  %v2927_v32 = vadd.f32 %v3620_v52, %v2926_v17  ;;  %v3622_v34 = vpop.eup %3621  ;;  %v325_v1 = vcvt.s32.f32 %v5360_v22 }
 0x763   :  { %v3624_v28 = vpop.eup %3623 }
 0x764   :  { %v2954_v35 = vadd.f32 %v3610_v30, %v2953_v6  ;;  %v2928_v46 = vadd.f32 %v3622_v34, %v2927_v32  ;;  %v3626_v37 = vpop.eup %3625  ;;  %v2977_v50 = vpop.permute.xlu0 %2976 }
 0x765   :  { %v3628_v0 = vpop.eup %3627  ;;  %vm2981_vm4 = vcmp.eq.s32.totalorder %v2977_v50, 1 }
 0x766   :  { %v2955_v47 = vadd.f32 %v3614_v29, %v2954_v35  ;;  %v2929_v14 = vadd.f32 %v3624_v28, %v2928_v46  ;;  %v3630_v21 = vpop.eup %3629  ;;  %v2614_v28 = vld [vmem:[%s5784_s0 + $0xf] sm:$0x1] }
 0x767   :  { %v3632_v55 = vpop.eup %3631 }
 0x768   :  { %v2956_v24 = vadd.f32 %v3618_v51, %v2955_v47  ;;  %v2930_v59 = vadd.f32 %v3626_v37, %v2929_v14  ;;  %v3634_v15 = vpop.eup %3633 }
 0x769   :  { %v3636_v20 = vpop.eup %3635 }
 0x76a   :  { %v2931_v11 = vadd.f32 %v3628_v0, %v2930_v59  ;;  %v2957_v44 = vrot.slane %v2956_v24, 4 }
 0x76c   :  { %v2932_v19 = vadd.f32 %v3630_v21, %v2931_v11  ;;  %v2958_v42 = vadd.f32 %v2957_v44, %v2956_v24  ;;  %v5737_v57 = vpop.xlane.xlu0 %73 }
 0x76d   :  { %v253_v29 = vrot.slane %v5737_v57, 1 }
 0x76e   :  { %v2933_v48 = vadd.f32 %v3632_v55, %v2932_v19  ;;  %v2959_v26 = vrot.slane %v2958_v42, 2  ;;  %v3697_v55 = vld [vmem:[%s5787_s3] ss:$0 sm:$0xff] }
 0x770   :  { %v2934_v18 = vadd.f32 %v3634_v15, %v2933_v48  ;;  %v2960_v9 = vadd.f32 %v2959_v26, %v2958_v42  ;;  %v231_v35 = vpop.xlane.xlu0 %230  ;;  %v5873_v48 = vld [vmem:[#allocation12_spill] sm:$0xff] }
 0x771   :  { %v242_v15 = vmul.f32 %v3697_v55, %v5873_v48 }
 0x772   :  { %v2935_v27 = vadd.f32 %v3636_v20, %v2934_v18  ;;  %v2961_v45 = vrot.slane %v2960_v9, 1 }
 0x774   :  { %v2936_v23 = vrot.slane %v2935_v27, 4  ;;  %v2962_v60 = vadd.f32 %v2961_v45, %v2960_v9  ;;  %v302_v18 = vpop.xlane.xlu0 %301 }
 0x776   :  { %v2937_v53 = vadd.f32 %v2936_v23, %v2935_v27  ;;  %3637 = vlog2.f32 %v2962_v60  ;;  %v275_v23 = vadd.s32 1, %v5360_v22 }
 0x778   :  { %v2938_v39 = vrot.slane %v2937_v53, 2 }
 0x77a   :  { %v2939_v25 = vadd.f32 %v2938_v39, %v2937_v53  ;;  %v278_v53 = vsub.s32 %v275_v23, %v5869_v12 }
 0x77c   :  { %v2940_v58 = vrot.slane %v2939_v25, 1 }
 0x77e   :  { %v2941_v3 = vadd.f32 %v2940_v58, %v2939_v25 }
 0x780   :  { %3639 = vlog2.f32 %v2941_v3 }
 0x783   :  { %v3638_v52 = vpop.eup %3637 }
 0x78d   :  { %v3640_v24 = vpop.eup %3639 }
 0x78e   :  { %v2964_v34 = vmul.f32 0.6931472, %v3640_v24 }
 0x790   :  { %v2967_v14 = vadd.f32 %v2964_v34, %v5679_v13 }
 0x792   :  { %v2969_v59 = vadd.f32 %v2967_v14, %v2613_v5 }
 0x794   :  { %v2983_v0 = vsel %vm2981_vm4, %v2969_v59, %v5466_v36 }
 0x795   :  { %v2985_v11 = vadd.f32 %v5505_v40, %v2983_v0 }
 0x7c6   :  { %v324_v2 = vpop.xlane.xlu1 %323 }
 0x7c7   :  { %v3050_v54 = vadd.f32 -1.0, %v324_v2 }
 0x7c9   :  { %vm327_vm2 = vcmp.eq.f32.partialorder %v325_v1, %v3050_v54 }
 0x7ca   :  { %v3051_v30 = vsel %vm327_vm2, 1.0, %v5870_v62  ;;  %v5740_v6 = vpop.xlane.xlu1 %75 }
 0x7cb   :  { %v254_v43 = vrot.slane %v5740_v6, 1  ;;  %v341_v16 = vrot.slane %v3051_v30, %v5863_v41  ;;  %v334_v7 = vrot.slane %v3051_v30, %v3769_v10  ;;  %v5872_v41 = vcvt.s32.f32 %v5473_v61 }
 0x7cc   :  { %v2966_v10 = vmul.f32 0.6931472, %v3638_v52 }
 0x7cd   :  { %343 = vbcast.lane.b32.xlu0 %v341_v16, 256  ;;  %336 = vbcast.lane.b32.xlu1 %v334_v7, 256  ;;  %v258_v49 = vadd.f32 %v254_v43, %v231_v35 }
 0x7ce   :  { %v228_v56 = vpop.xlane.xlu1 %227  ;;  %v2968_v46 = vadd.f32 %v2966_v10, %v5653_v38 }
 0x7cf   :  { %v257_v31 = vadd.f32 %v253_v29, %v228_v56  ;;  %v262_v47 = vrot.slane %v258_v49, 7  ;;  %v249_v49 = vrot.slane %v5740_v6, 7 }
 0x7d0   :  { %v2970_v37 = vadd.f32 %v2968_v46, %v2614_v28 }
 0x7d1   :  { %v261_v51 = vrot.slane %v257_v31, 7  ;;  %v266_v32 = vmul.f32 %v262_v47, %v5872_v41  ;;  %v250_v47 = vsel %vm239_vm0, %v249_v49, %v5737_v57 }
 0x7d2   :  { %v2984_v61 = vsel %vm2982_vm3, %v2970_v37, %v5457_v63  ;;  %v244_v63 = vsel %vm243_vm5, %v242_v15, 0.0  ;;  %v300_v36 = vpop.xlane.xlu1 %299 }
 0x7d3   :  { %v265_v17 = vmul.f32 %v261_v51, %v5871_v33  ;;  %v2986_v38 = vadd.f32 %v5505_v40, %v2984_v61 }
 0x7d5   :  { %270 = vperm.xlu0 %3163, %v265_v17   ;;  %v2989_v21 = vrot.slane %v2986_v38, 7 }
 0x7d7   :  { %v2990_v19 = vsel %vm239_vm0, %v2989_v21, %v2985_v11 }
 0x7d8   :  { %v2992_v13 = vsel %vm243_vm5, %v2990_v19, -inf }
 0x7d9   :  { %273 = vperm.xlu0 %3163, %v266_v32  }
 0x7f1   :  { %2993 = vmax.xlane.f32.xlu1 %v2992_v13 }
 0x7f5   :  { %245 = vadd.xlane.f32.xlu1 %v244_v63 }
 0x83f   :  { %v337_v20 = vpop.permute.xlu1 %336  ;;  %v344_v27 = vpop.permute.xlu0 %343 }
 0x840   :  { %v347_v40 = vmul.f32 %v337_v20, %v300_v36  ;;  %v348_v44 = vmul.f32 %v344_v27, %v302_v18 }
 0x842   :  { %352 = vperm.xlu0 %3163, %v347_v40  }
 0x846   :  { %355 = vperm.xlu0 %3163, %v348_v44  }
 0x850   :  { %v271_v42 = vpop.permute.xlu0 %270 }
 0x851   :  { %v279_v39 = vrot.slane %v271_v42, %v278_v53 }
 0x854   :  { %v274_v26 = vpop.permute.xlu0 %273 }
 0x855   :  { %v283_v9 = vrot.slane %v274_v26, %v278_v53 }
 0x857   :  { %v284_v8 = vsel %vm239_vm0, %v283_v9, %v279_v39 }
 0x858   :  { %v287_v25 = vsel %vm286_vm6, %v284_v8, 0.0 }
 0x859   :  { %288 = vadd.xlane.f32.xlu1 %v287_v25 }
 0x87a   :  { %v2994_v45 = vpop.xlane.xlu1 %2993 }
 0x87b   :  { %v2996_v58 = vrot.slane %v2994_v45, 1  ;;  %v2999_v60 = vsub.f32 %v2985_v11, %v2994_v45 }
 0x87d   :  { %v3000_v50 = vsub.f32 %v2986_v38, %v2996_v58  ;;  %v3001_v1 = vmul.f32 1.442695, %v2999_v60 }
 0x87e   :  { %v246_v31 = vpop.xlane.xlu1 %245 }
 0x87f   :  { %v3003_v3 = vmul.f32 1.442695, %v3000_v50  ;;  %v252_v17 = vadd.f32 %v250_v47, %v246_v31 }
 0x881   :  { %3641 = vpow2.f32 %v3003_v3 }
 0x882   :  { %3643 = vpow2.f32 %v3001_v1 }
 0x88e   :  { %v3642_v22 = vpop.eup %3641 }
 0x88f   :  { %v3007_v2 = vrot.slane %v3642_v22, 7  ;;  %v3644_v54 = vpop.eup %3643 }
 0x891   :  { %v3008_v12 = vsel %vm239_vm0, %v3007_v2, %v3644_v54 }
 0x892   :  { %v3010_v62 = vsel %vm243_vm5, %v3008_v12, 0.0 }
 0x893   :  { %3011 = vadd.xlane.f32.xlu0 %v3010_v62 }
 0x8bd   :  { %v353_v30 = vpop.permute.xlu0 %352 }
 0x8be   :  { %v360_v16 = vrot.slane %v353_v30, %v5657_v4 }
 0x8c1   :  { %v356_v43 = vpop.permute.xlu0 %355 }
 0x8c2   :  { %v364_v7 = vrot.slane %v356_v43, %v5657_v4 }
 0x8c4   :  { %v365_v29 = vsel %vm239_vm0, %v364_v7, %v360_v16 }
 0x8c5   :  { %v367_v35 = vsel %vm321_vm1, %v365_v29, 0.0 }
 0x8c6   :  { %368 = vadd.xlane.f32.xlu1 %v367_v35 }
 0x8e2   :  { %v289_v33 = vpop.xlane.xlu1 %288 }
 0x8e3   :  { %v290_v24 = vadd.f32 %v289_v33, %v252_v17 }
 0x91c   :  { %v3012_v56 = vpop.xlane.xlu0 %3011 }
 0x91d   :  { %3645 = vlog2.f32 %v3012_v56 }
 0x92a   :  { %v3646_v51 = vpop.eup %3645 }
 0x92b   :  { %v3014_v52 = vmul.f32 0.6931472, %v3646_v51 }
 0x92d   :  { %v3015_v4 = vadd.f32 %v3014_v52, %v2994_v45 }
 0x94f   :  { %v369_v41 = vpop.xlane.xlu1 %368 }
 0x950   :  { %v370_v32 = vadd.f32 %v369_v41, %v290_v24 }
 0x952   :  { %v3016_v10 = vsub.f32 %v370_v32, %v3015_v4 }
 0x954   :  { %v3018_v34 = vsel %vm3017_vm7, %v3016_v10, 0.0 }
 0x955   :  { %3019 = vadd.xlane.f32.xlu1 %v3018_v34 }
 0x9de   :  { %v3020_v46 = vpop.xlane.xlu1 %3019 }
 0x9df   :  { %v3021_v28 = vrot.slane %v3020_v46, 4 }
 0x9e1   :  { %v3022_v14 = vadd.f32 %v3021_v28, %v3020_v46 }
 0x9e3   :  { %v3023_v6 = vrot.slane %v3022_v14, 2 }
 0x9e5   :  { %v3024_v5 = vadd.f32 %v3023_v6, %v3022_v14 }
 0x9e7   :  { %v3025_v37 = vrot.slane %v3024_v5, 1 }
 0x9e9   :  { %v3026_v59 = vadd.f32 %v3025_v37, %v3024_v5 }
 0x9eb   :  { %3156 = vpush %v3026_v59 }
 0xa1c   :  { %s3157_s3 = spop %3156 }
 0xa1d   :  { %s3028_s1 = ssub.f32 0.0, %s3157_s3 }
 0xa1f   :  { %3030 = sst [smem:[#allocation2]] %s3028_s1 }
 0xa20   :  { %3038 = dma.smem_to_hbm %s3712_s25, 16, %s5790_s6, [#allocation3]  }
 0xa21   :  { %3706 = dma.done.wait [#allocation3], 16  }
 0xa22   :  { %3707 = vsyncadd [#allocation3], 4294967280 }
 0xa23   :  { %3042 = sfence }
 0xa24   :  { %3043 = vsyncpa [#allocation3], 1 }

</bundles_post_ra>
